<compile_context>
chip_gen: v7x
topology: tpu7x:2x2x1
jax: 0.10.0
libtpu: 0.0.40
codegen_flags: <defaults>
</compile_context>

<pallas_src>
import functools

import jax
import jax.numpy as jnp
from jax.experimental import pallas as pl
from jax.experimental.pallas import tpu as pltpu


# ----------------------------------------------------------------------------
# Fused Og2 kernel: one grid step handles TH low-res rows of x1 and the
# corresponding 2*TH high-res rows of x0 / output.
# ----------------------------------------------------------------------------
def _og2_kernel(*refs, TH, n_pass, W):
    x1_refs = refs[:n_pass]                       # row-shifted views of padded x1
    (x0_ref, w3_ref, b3_ref, w2b_ref, wl1_ref, bl1_ref, wl2_ref, bl2_ref,
     w2a_ref, b2_ref, e_ref, o_ref) = refs[n_pass:]

    f32 = jnp.float32

    # Hoist all (small) weight loads out of the row loop.
    w_taps = [[w3_ref[kh, kw] for kw in range(3)] for kh in range(3)]   # (2c1, c1)
    b3 = b3_ref[...]
    w2b = w2b_ref[...]
    wl1, bl1 = wl1_ref[...], bl1_ref[...]
    wl2, bl2 = wl2_ref[...], bl2_ref[...]
    w2a, b2 = w2a_ref[...], b2_ref[...]
    e_up = e_ref[...]                                                   # (2W, W)

    # The TH + 2 padded input rows this block needs (load each once).
    rows = [x1_refs[p // TH][0, p % TH] for p in range(TH + 2)]         # (W+2, 2c1)

    for j in range(TH):
        # ---- cv1: 3x3 conv + BN + SiLU for low-res row j, then cv2's W2b ----
        acc = None
        for kh in range(3):
            row = rows[j + kh]
            for kw in range(3):
                d = jnp.dot(row[kw:kw + W, :], w_taps[kh][kw],
                            preferred_element_type=f32)
                acc = d if acc is None else acc + d
        y1 = acc + b3
        y1 = y1 * jax.nn.sigmoid(y1)                                    # SiLU
        z1 = jnp.dot(y1.astype(w2b.dtype), w2b,
                     preferred_element_type=f32)                       # (W, c1)
        # nearest 2x upsample along W: z_up[w2] = z1[w2 // 2]
        z_up = jnp.dot(e_up, z1, preferred_element_type=f32)            # (2W, c1)

        # ---- link1 + concat + cv2 for the two matching high-res rows --------
        for r in range(2):
            xr = x0_ref[0, 2 * j + r]                                   # (2W, c1)
            a = jnp.dot(xr, wl1, preferred_element_type=f32) + bl1
            a = a * jax.nn.sigmoid(a)                                   # SiLU
            t = jnp.dot(a.astype(wl2.dtype), wl2,
                        preferred_element_type=f32) + bl2
            att = jax.nn.sigmoid(t)                                     # link1 Sigmoid
            z0 = jnp.dot(att.astype(w2a.dtype), w2a,
                         preferred_element_type=f32)
            y = z0 + z_up + b2
            o_ref[0, 2 * j + r] = (y * jax.nn.sigmoid(y)).astype(o_ref.dtype)


# ----------------------------------------------------------------------------
# pallas_call wrapper (NCHW in / NCHW out, PyTorch convention)
# ----------------------------------------------------------------------------
@jax.jit
def og2_forward(params, x0, x1):
    """x0: (N, c1, 2H, 2W), x1: (N, 2*c1, H, W)  ->  (N, c1, 2H, 2W)."""
    x0 = jnp.transpose(x0, (0, 2, 3, 1)).astype(jnp.bfloat16)   # (N, 2H, 2W, c1)
    x1 = jnp.transpose(x1, (0, 2, 3, 1)).astype(jnp.bfloat16)   # (N, H,  W, 2c1)
    N, H2, W2, c1 = x0.shape
    _, H, W, c2 = x1.shape
    c14 = params["wl1"].shape[1]

    # low-res rows per grid step; 2 halo passes cover TH+2 rows when TH >= 2.
    TH = 4 if H % 4 == 0 else (2 if H % 2 == 0 else 1)
    n_pass = 2 if TH >= 2 else 3
    Hp = H + (n_pass - 1) * TH                    # >= H + 2
    x1p = jnp.pad(x1, ((0, 0), (1, Hp - H - 1), (1, 1), (0, 0)))

    # one-hot W-expansion matrix for the nearest 2x upsample
    e_up = jnp.repeat(jnp.eye(W, dtype=jnp.float32), 2, axis=0)  # (2W, W)

    grid = (N, H // TH)

    x1_specs = [
        pl.BlockSpec((1, TH, W + 2, c2), (lambda n, hb, q=q: (n, hb + q, 0, 0)))
        for q in range(n_pass)
    ]
    const2 = lambda n, hb: (0, 0)
    in_specs = x1_specs + [
        pl.BlockSpec((1, 2 * TH, W2, c1), lambda n, hb: (n, hb, 0, 0)),   # x0
        pl.BlockSpec((3, 3, c2, c1), lambda n, hb: (0, 0, 0, 0)),         # w3
        pl.BlockSpec((1, c1), const2),                                    # b3
        pl.BlockSpec((c1, c1), const2),                                   # w2b
        pl.BlockSpec((c1, c14), const2),                                  # wl1
        pl.BlockSpec((1, c14), const2),                                   # bl1
        pl.BlockSpec((c14, c1), const2),                                  # wl2
        pl.BlockSpec((1, c1), const2),                                    # bl2
        pl.BlockSpec((c1, c1), const2),                                   # w2a
        pl.BlockSpec((1, c1), const2),                                    # b2
        pl.BlockSpec((W2, W), const2),                                    # e_up
    ]
    out_specs = pl.BlockSpec((1, 2 * TH, W2, c1), lambda n, hb: (n, hb, 0, 0))

    out = pl.pallas_call(
        functools.partial(_og2_kernel, TH=TH, n_pass=n_pass, W=W),
        out_shape=jax.ShapeDtypeStruct((N, H2, W2, c1), jnp.float32),
        grid_spec=pltpu.PrefetchScalarGridSpec(
            num_scalar_prefetch=0, grid=grid,
            in_specs=in_specs, out_specs=out_specs),
        compiler_params=pltpu.CompilerParams(
            dimension_semantics=("parallel", "parallel")),
    )(*([x1p] * n_pass), x0,
      params["w3"], params["b3"], params["w2b"],
      params["wl1"], params["bl1"], params["wl2"], params["bl2"],
      params["w2a"], params["b2"], e_up)
    return jnp.transpose(out, (0, 3, 1, 2))


# ----------------------------------------------------------------------------
# parameter construction (Conv2d(bias=False) + BatchNorm2d(eps=1e-3) fused)
# ----------------------------------------------------------------------------
def make_conv(key, cin, cout, k=1):
    kw_, kg, kb, km, kv = jax.random.split(key, 5)
    w = 0.1 * jax.random.normal(kw_, (cout, cin, k, k), jnp.float32)   # torch layout
    gamma = 1.0 + 0.1 * jax.random.normal(kg, (cout,), jnp.float32)
    beta = 0.1 * jax.random.normal(kb, (cout,), jnp.float32)
    rmean = 0.1 * jax.random.normal(km, (cout,), jnp.float32)
    rvar = jax.random.uniform(kv, (cout,), jnp.float32, minval=0.5, maxval=1.5)
    eps = 1e-3
    scale = gamma / jnp.sqrt(rvar + eps)
    bias = beta - rmean * scale
    w_hwio = jnp.transpose(w, (2, 3, 1, 0)) * scale        # fold BN scale, HWIO
    return w_hwio.astype(jnp.bfloat16), bias.reshape(1, cout).astype(jnp.float32)


def make_og2(key, c1):
    c14 = c1 // 4                                          # int(c1 / 4)
    k1, k2, k3, k4 = jax.random.split(key, 4)
    w3, b3 = make_conv(k1, 2 * c1, c1, k=3)
    wl1, bl1 = make_conv(k2, c1, c14, k=1)
    wl2, bl2 = make_conv(k3, c14, c1, k=1)
    w2, b2 = make_conv(k4, 2 * c1, c1, k=1)
    w2 = w2[0, 0]                                          # (2c1, c1)
    # cv2 acts on cat([link_out, up(cv1_out)], C): split its rows accordingly.
    return dict(w3=w3, b3=b3,
                wl1=wl1[0, 0], bl1=bl1, wl2=wl2[0, 0], bl2=bl2,
                w2a=w2[:c1], w2b=w2[c1:], b2=b2)


# ----------------------------------------------------------------------------
# pure-JAX reference (identical bf16 weight folding / casts)
# ----------------------------------------------------------------------------
def og2_reference(params, x0, x1):
    silu = lambda v: v * jax.nn.sigmoid(v)
    x0 = jnp.transpose(x0, (0, 2, 3, 1)).astype(jnp.bfloat16)
    x1 = jnp.transpose(x1, (0, 2, 3, 1)).astype(jnp.bfloat16)

    y1 = jax.lax.conv_general_dilated(
        x1, params["w3"], window_strides=(1, 1), padding="SAME",
        dimension_numbers=("NHWC", "HWIO", "NHWC"),
        preferred_element_type=jnp.float32) + params["b3"]
    y1 = silu(y1)
    z1 = jnp.einsum("nhwc,cd->nhwd", y1.astype(jnp.bfloat16), params["w2b"],
                    preferred_element_type=jnp.float32)
    z1_up = jnp.repeat(jnp.repeat(z1, 2, axis=1), 2, axis=2)

    a = jnp.einsum("nhwc,cd->nhwd", x0, params["wl1"],
                   preferred_element_type=jnp.float32) + params["bl1"]
    a = silu(a)
    t = jnp.einsum("nhwc,cd->nhwd", a.astype(jnp.bfloat16), params["wl2"],
                   preferred_element_type=jnp.float32) + params["bl2"]
    att = jax.nn.sigmoid(t)
    z0 = jnp.einsum("nhwc,cd->nhwd", att.astype(jnp.bfloat16), params["w2a"],
                    preferred_element_type=jnp.float32)
    out = silu(z0 + z1_up + params["b2"])
    return jnp.transpose(out, (0, 3, 1, 2))


# ----------------------------------------------------------------------------
if __name__ == "__main__":
    c1 = 16
    B, H, W = 2, 8, 8
    key = jax.random.PRNGKey(0)
    kp, k0, k1 = jax.random.split(key, 3)

    params = make_og2(kp, c1)

    # forward(x0, x1): x0 has c1 channels at 2H x 2W, x1 has 2*c1 channels at H x W
    x0 = jax.random.normal(k0, (B, c1, 2 * H, 2 * W), jnp.float32)
    x1 = jax.random.normal(k1, (B, 2 * c1, H, W), jnp.float32)

    out = og2_forward(params, x0, x1)
    jax.block_until_ready(out)

    assert out.shape == (B, c1, 2 * H, 2 * W), out.shape
    assert bool(jnp.all(jnp.isfinite(out)))

    ref = og2_reference(params, x0, x1)
    err = float(jnp.max(jnp.abs(out - ref)))
    assert err < 1e-2, f"max abs error vs reference: {err}"

    print("KERNEL_OK")
</pallas_src>

<mosaic_0001>
module attributes {stable_mosaic.version = 11 : i64} {
  func.func @_og2_kernel(%arg0: i32, %arg1: i32, %arg2: memref<1x4x10x32xbf16, #tpu.memory_space<vmem>>, %arg3: memref<1x4x10x32xbf16, #tpu.memory_space<vmem>>, %arg4: memref<1x8x16x16xbf16, #tpu.memory_space<vmem>>, %arg5: memref<3x3x32x16xbf16, #tpu.memory_space<vmem>>, %arg6: memref<1x16xf32, #tpu.memory_space<vmem>>, %arg7: memref<16x16xbf16, #tpu.memory_space<vmem>>, %arg8: memref<16x4xbf16, #tpu.memory_space<vmem>>, %arg9: memref<1x4xf32, #tpu.memory_space<vmem>>, %arg10: memref<4x16xbf16, #tpu.memory_space<vmem>>, %arg11: memref<1x16xf32, #tpu.memory_space<vmem>>, %arg12: memref<16x16xbf16, #tpu.memory_space<vmem>>, %arg13: memref<1x16xf32, #tpu.memory_space<vmem>>, %arg14: memref<16x8xf32, #tpu.memory_space<vmem>>, %arg15: memref<1x8x16x16xf32, #tpu.memory_space<vmem>>) attributes {dimension_semantics = [#tpu.dimension_semantics<parallel>, #tpu.dimension_semantics<parallel>], iteration_bounds = array<i64: 2, 2>, scalar_prefetch = 0 : i64, scratch_operands = 0 : i64, tpu.core_type = #tpu.core_type<tc>, window_params = [{transform_indices = @transform_0, window_bounds = array<i64: 1, 4, 10, 32>}, {transform_indices = @transform_1, window_bounds = array<i64: 1, 4, 10, 32>}, {transform_indices = @transform_2, window_bounds = array<i64: 1, 8, 16, 16>}, {pipeline_mode = #tpu.pipeline_mode<synchronous>, transform_indices = @transform_3, window_bounds = array<i64: 3, 3, 32, 16>}, {pipeline_mode = #tpu.pipeline_mode<synchronous>, transform_indices = @transform_4, window_bounds = array<i64: 1, 16>}, {pipeline_mode = #tpu.pipeline_mode<synchronous>, transform_indices = @transform_5, window_bounds = array<i64: 16, 16>}, {pipeline_mode = #tpu.pipeline_mode<synchronous>, transform_indices = @transform_6, window_bounds = array<i64: 16, 4>}, {pipeline_mode = #tpu.pipeline_mode<synchronous>, transform_indices = @transform_7, window_bounds = array<i64: 1, 4>}, {pipeline_mode = #tpu.pipeline_mode<synchronous>, transform_indices = @transform_8, window_bounds = array<i64: 4, 16>}, {pipeline_mode = #tpu.pipeline_mode<synchronous>, transform_indices = @transform_9, window_bounds = array<i64: 1, 16>}, {pipeline_mode = #tpu.pipeline_mode<synchronous>, transform_indices = @transform_10, window_bounds = array<i64: 16, 16>}, {pipeline_mode = #tpu.pipeline_mode<synchronous>, transform_indices = @transform_11, window_bounds = array<i64: 1, 16>}, {pipeline_mode = #tpu.pipeline_mode<synchronous>, transform_indices = @transform_12, window_bounds = array<i64: 16, 8>}, {transform_indices = @transform_13, window_bounds = array<i64: 1, 8, 16, 16>}]} {
    %c0 = arith.constant 0 : index
    %c0_0 = arith.constant 0 : index
    %c0_1 = arith.constant 0 : index
    %c0_2 = arith.constant 0 : index
    %0 = vector.load %arg5[%c0, %c0_0, %c0_1, %c0_2] : memref<3x3x32x16xbf16, #tpu.memory_space<vmem>>, vector<1x1x32x16xbf16>
    %1 = vector.shape_cast %0 : vector<1x1x32x16xbf16> to vector<32x16xbf16>
    %c0_3 = arith.constant 0 : index
    %c1 = arith.constant 1 : index
    %c0_4 = arith.constant 0 : index
    %c0_5 = arith.constant 0 : index
    %2 = vector.load %arg5[%c0_3, %c1, %c0_4, %c0_5] : memref<3x3x32x16xbf16, #tpu.memory_space<vmem>>, vector<1x1x32x16xbf16>
    %3 = vector.shape_cast %2 : vector<1x1x32x16xbf16> to vector<32x16xbf16>
    %c0_6 = arith.constant 0 : index
    %c2 = arith.constant 2 : index
    %c0_7 = arith.constant 0 : index
    %c0_8 = arith.constant 0 : index
    %4 = vector.load %arg5[%c0_6, %c2, %c0_7, %c0_8] : memref<3x3x32x16xbf16, #tpu.memory_space<vmem>>, vector<1x1x32x16xbf16>
    %5 = vector.shape_cast %4 : vector<1x1x32x16xbf16> to vector<32x16xbf16>
    %c1_9 = arith.constant 1 : index
    %c0_10 = arith.constant 0 : index
    %c0_11 = arith.constant 0 : index
    %c0_12 = arith.constant 0 : index
    %6 = vector.load %arg5[%c1_9, %c0_10, %c0_11, %c0_12] : memref<3x3x32x16xbf16, #tpu.memory_space<vmem>>, vector<1x1x32x16xbf16>
    %7 = vector.shape_cast %6 : vector<1x1x32x16xbf16> to vector<32x16xbf16>
    %c1_13 = arith.constant 1 : index
    %c1_14 = arith.constant 1 : index
    %c0_15 = arith.constant 0 : index
    %c0_16 = arith.constant 0 : index
    %8 = vector.load %arg5[%c1_13, %c1_14, %c0_15, %c0_16] : memref<3x3x32x16xbf16, #tpu.memory_space<vmem>>, vector<1x1x32x16xbf16>
    %9 = vector.shape_cast %8 : vector<1x1x32x16xbf16> to vector<32x16xbf16>
    %c1_17 = arith.constant 1 : index
    %c2_18 = arith.constant 2 : index
    %c0_19 = arith.constant 0 : index
    %c0_20 = arith.constant 0 : index
    %10 = vector.load %arg5[%c1_17, %c2_18, %c0_19, %c0_20] : memref<3x3x32x16xbf16, #tpu.memory_space<vmem>>, vector<1x1x32x16xbf16>
    %11 = vector.shape_cast %10 : vector<1x1x32x16xbf16> to vector<32x16xbf16>
    %c2_21 = arith.constant 2 : index
    %c0_22 = arith.constant 0 : index
    %c0_23 = arith.constant 0 : index
    %c0_24 = arith.constant 0 : index
    %12 = vector.load %arg5[%c2_21, %c0_22, %c0_23, %c0_24] : memref<3x3x32x16xbf16, #tpu.memory_space<vmem>>, vector<1x1x32x16xbf16>
    %13 = vector.shape_cast %12 : vector<1x1x32x16xbf16> to vector<32x16xbf16>
    %c2_25 = arith.constant 2 : index
    %c1_26 = arith.constant 1 : index
    %c0_27 = arith.constant 0 : index
    %c0_28 = arith.constant 0 : index
    %14 = vector.load %arg5[%c2_25, %c1_26, %c0_27, %c0_28] : memref<3x3x32x16xbf16, #tpu.memory_space<vmem>>, vector<1x1x32x16xbf16>
    %15 = vector.shape_cast %14 : vector<1x1x32x16xbf16> to vector<32x16xbf16>
    %c2_29 = arith.constant 2 : index
    %c2_30 = arith.constant 2 : index
    %c0_31 = arith.constant 0 : index
    %c0_32 = arith.constant 0 : index
    %16 = vector.load %arg5[%c2_29, %c2_30, %c0_31, %c0_32] : memref<3x3x32x16xbf16, #tpu.memory_space<vmem>>, vector<1x1x32x16xbf16>
    %17 = vector.shape_cast %16 : vector<1x1x32x16xbf16> to vector<32x16xbf16>
    %c0_33 = arith.constant 0 : index
    %c0_34 = arith.constant 0 : index
    %18 = vector.load %arg6[%c0_33, %c0_34] : memref<1x16xf32, #tpu.memory_space<vmem>>, vector<1x16xf32>
    %c0_35 = arith.constant 0 : index
    %c0_36 = arith.constant 0 : index
    %19 = vector.load %arg7[%c0_35, %c0_36] : memref<16x16xbf16, #tpu.memory_space<vmem>>, vector<16x16xbf16>
    %c0_37 = arith.constant 0 : index
    %c0_38 = arith.constant 0 : index
    %20 = vector.load %arg8[%c0_37, %c0_38] : memref<16x4xbf16, #tpu.memory_space<vmem>>, vector<16x4xbf16>
    %c0_39 = arith.constant 0 : index
    %c0_40 = arith.constant 0 : index
    %21 = vector.load %arg9[%c0_39, %c0_40] : memref<1x4xf32, #tpu.memory_space<vmem>>, vector<1x4xf32>
    %c0_41 = arith.constant 0 : index
    %c0_42 = arith.constant 0 : index
    %22 = vector.load %arg10[%c0_41, %c0_42] : memref<4x16xbf16, #tpu.memory_space<vmem>>, vector<4x16xbf16>
    %c0_43 = arith.constant 0 : index
    %c0_44 = arith.constant 0 : index
    %23 = vector.load %arg11[%c0_43, %c0_44] : memref<1x16xf32, #tpu.memory_space<vmem>>, vector<1x16xf32>
    %c0_45 = arith.constant 0 : index
    %c0_46 = arith.constant 0 : index
    %24 = vector.load %arg12[%c0_45, %c0_46] : memref<16x16xbf16, #tpu.memory_space<vmem>>, vector<16x16xbf16>
    %c0_47 = arith.constant 0 : index
    %c0_48 = arith.constant 0 : index
    %25 = vector.load %arg13[%c0_47, %c0_48] : memref<1x16xf32, #tpu.memory_space<vmem>>, vector<1x16xf32>
    %c0_49 = arith.constant 0 : index
    %c0_50 = arith.constant 0 : index
    %26 = vector.load %arg14[%c0_49, %c0_50] : memref<16x8xf32, #tpu.memory_space<vmem>>, vector<16x8xf32>
    %c0_51 = arith.constant 0 : index
    %c0_52 = arith.constant 0 : index
    %c0_53 = arith.constant 0 : index
    %c0_54 = arith.constant 0 : index
    %27 = vector.load %arg2[%c0_51, %c0_52, %c0_53, %c0_54] : memref<1x4x10x32xbf16, #tpu.memory_space<vmem>>, vector<1x1x10x32xbf16>
    %28 = vector.shape_cast %27 : vector<1x1x10x32xbf16> to vector<10x32xbf16>
    %c0_55 = arith.constant 0 : index
    %c1_56 = arith.constant 1 : index
    %c0_57 = arith.constant 0 : index
    %c0_58 = arith.constant 0 : index
    %29 = vector.load %arg2[%c0_55, %c1_56, %c0_57, %c0_58] : memref<1x4x10x32xbf16, #tpu.memory_space<vmem>>, vector<1x1x10x32xbf16>
    %30 = vector.shape_cast %29 : vector<1x1x10x32xbf16> to vector<10x32xbf16>
    %c0_59 = arith.constant 0 : index
    %c2_60 = arith.constant 2 : index
    %c0_61 = arith.constant 0 : index
    %c0_62 = arith.constant 0 : index
    %31 = vector.load %arg2[%c0_59, %c2_60, %c0_61, %c0_62] : memref<1x4x10x32xbf16, #tpu.memory_space<vmem>>, vector<1x1x10x32xbf16>
    %32 = vector.shape_cast %31 : vector<1x1x10x32xbf16> to vector<10x32xbf16>
    %c0_63 = arith.constant 0 : index
    %c3 = arith.constant 3 : index
    %c0_64 = arith.constant 0 : index
    %c0_65 = arith.constant 0 : index
    %33 = vector.load %arg2[%c0_63, %c3, %c0_64, %c0_65] : memref<1x4x10x32xbf16, #tpu.memory_space<vmem>>, vector<1x1x10x32xbf16>
    %34 = vector.shape_cast %33 : vector<1x1x10x32xbf16> to vector<10x32xbf16>
    %c0_66 = arith.constant 0 : index
    %c0_67 = arith.constant 0 : index
    %c0_68 = arith.constant 0 : index
    %c0_69 = arith.constant 0 : index
    %35 = vector.load %arg3[%c0_66, %c0_67, %c0_68, %c0_69] : memref<1x4x10x32xbf16, #tpu.memory_space<vmem>>, vector<1x1x10x32xbf16>
    %36 = vector.shape_cast %35 : vector<1x1x10x32xbf16> to vector<10x32xbf16>
    %c0_70 = arith.constant 0 : index
    %c1_71 = arith.constant 1 : index
    %c0_72 = arith.constant 0 : index
    %c0_73 = arith.constant 0 : index
    %37 = vector.load %arg3[%c0_70, %c1_71, %c0_72, %c0_73] : memref<1x4x10x32xbf16, #tpu.memory_space<vmem>>, vector<1x1x10x32xbf16>
    %38 = vector.shape_cast %37 : vector<1x1x10x32xbf16> to vector<10x32xbf16>
    %39 = vector.extract_strided_slice %28 {offsets = [0, 0], sizes = [8, 32], strides = [1, 1]} : vector<10x32xbf16> to vector<8x32xbf16>
    %cst = arith.constant dense<0.000000e+00> : vector<8x16xf32>
    %40 = tpu.matmul %39, %1, %cst {dimension_numbers = #tpu.dot_dimension_numbers<[1], [0], [0], [1], [0, 0, 1, 1], [], []>} : vector<8x32xbf16>, vector<32x16xbf16>, vector<8x16xf32> -> vector<8x16xf32>
    %41 = vector.extract_strided_slice %28 {offsets = [1, 0], sizes = [8, 32], strides = [1, 1]} : vector<10x32xbf16> to vector<8x32xbf16>
    %cst_74 = arith.constant dense<0.000000e+00> : vector<8x16xf32>
    %42 = tpu.matmul %41, %3, %cst_74 {dimension_numbers = #tpu.dot_dimension_numbers<[1], [0], [0], [1], [0, 0, 1, 1], [], []>} : vector<8x32xbf16>, vector<32x16xbf16>, vector<8x16xf32> -> vector<8x16xf32>
    %43 = arith.addf %40, %42 : vector<8x16xf32>
    %44 = vector.extract_strided_slice %28 {offsets = [2, 0], sizes = [8, 32], strides = [1, 1]} : vector<10x32xbf16> to vector<8x32xbf16>
    %cst_75 = arith.constant dense<0.000000e+00> : vector<8x16xf32>
    %45 = tpu.matmul %44, %5, %cst_75 {dimension_numbers = #tpu.dot_dimension_numbers<[1], [0], [0], [1], [0, 0, 1, 1], [], []>} : vector<8x32xbf16>, vector<32x16xbf16>, vector<8x16xf32> -> vector<8x16xf32>
    %46 = arith.addf %43, %45 : vector<8x16xf32>
    %47 = vector.extract_strided_slice %30 {offsets = [0, 0], sizes = [8, 32], strides = [1, 1]} : vector<10x32xbf16> to vector<8x32xbf16>
    %cst_76 = arith.constant dense<0.000000e+00> : vector<8x16xf32>
    %48 = tpu.matmul %47, %7, %cst_76 {dimension_numbers = #tpu.dot_dimension_numbers<[1], [0], [0], [1], [0, 0, 1, 1], [], []>} : vector<8x32xbf16>, vector<32x16xbf16>, vector<8x16xf32> -> vector<8x16xf32>
    %49 = arith.addf %46, %48 : vector<8x16xf32>
    %50 = vector.extract_strided_slice %30 {offsets = [1, 0], sizes = [8, 32], strides = [1, 1]} : vector<10x32xbf16> to vector<8x32xbf16>
    %cst_77 = arith.constant dense<0.000000e+00> : vector<8x16xf32>
    %51 = tpu.matmul %50, %9, %cst_77 {dimension_numbers = #tpu.dot_dimension_numbers<[1], [0], [0], [1], [0, 0, 1, 1], [], []>} : vector<8x32xbf16>, vector<32x16xbf16>, vector<8x16xf32> -> vector<8x16xf32>
    %52 = arith.addf %49, %51 : vector<8x16xf32>
    %53 = vector.extract_strided_slice %30 {offsets = [2, 0], sizes = [8, 32], strides = [1, 1]} : vector<10x32xbf16> to vector<8x32xbf16>
    %cst_78 = arith.constant dense<0.000000e+00> : vector<8x16xf32>
    %54 = tpu.matmul %53, %11, %cst_78 {dimension_numbers = #tpu.dot_dimension_numbers<[1], [0], [0], [1], [0, 0, 1, 1], [], []>} : vector<8x32xbf16>, vector<32x16xbf16>, vector<8x16xf32> -> vector<8x16xf32>
    %55 = arith.addf %52, %54 : vector<8x16xf32>
    %56 = vector.extract_strided_slice %32 {offsets = [0, 0], sizes = [8, 32], strides = [1, 1]} : vector<10x32xbf16> to vector<8x32xbf16>
    %cst_79 = arith.constant dense<0.000000e+00> : vector<8x16xf32>
    %57 = tpu.matmul %56, %13, %cst_79 {dimension_numbers = #tpu.dot_dimension_numbers<[1], [0], [0], [1], [0, 0, 1, 1], [], []>} : vector<8x32xbf16>, vector<32x16xbf16>, vector<8x16xf32> -> vector<8x16xf32>
    %58 = arith.addf %55, %57 : vector<8x16xf32>
    %59 = vector.extract_strided_slice %32 {offsets = [1, 0], sizes = [8, 32], strides = [1, 1]} : vector<10x32xbf16> to vector<8x32xbf16>
    %cst_80 = arith.constant dense<0.000000e+00> : vector<8x16xf32>
    %60 = tpu.matmul %59, %15, %cst_80 {dimension_numbers = #tpu.dot_dimension_numbers<[1], [0], [0], [1], [0, 0, 1, 1], [], []>} : vector<8x32xbf16>, vector<32x16xbf16>, vector<8x16xf32> -> vector<8x16xf32>
    %61 = arith.addf %58, %60 : vector<8x16xf32>
    %62 = vector.extract_strided_slice %32 {offsets = [2, 0], sizes = [8, 32], strides = [1, 1]} : vector<10x32xbf16> to vector<8x32xbf16>
    %cst_81 = arith.constant dense<0.000000e+00> : vector<8x16xf32>
    %63 = tpu.matmul %62, %17, %cst_81 {dimension_numbers = #tpu.dot_dimension_numbers<[1], [0], [0], [1], [0, 0, 1, 1], [], []>} : vector<8x32xbf16>, vector<32x16xbf16>, vector<8x16xf32> -> vector<8x16xf32>
    %64 = arith.addf %61, %63 : vector<8x16xf32>
    %65 = vector.broadcast %18 : vector<1x16xf32> to vector<8x16xf32>
    %66 = arith.addf %64, %65 : vector<8x16xf32>
    %67 = arith.negf %66 : vector<8x16xf32>
    %68 = math.exp %67 : vector<8x16xf32>
    %cst_82 = arith.constant 1.000000e+00 : f32
    %69 = vector.broadcast %cst_82 : f32 to vector<8x16xf32>
    %70 = arith.addf %69, %68 : vector<8x16xf32>
    %71 = arith.divf %69, %70 : vector<8x16xf32>
    %72 = arith.mulf %66, %71 : vector<8x16xf32>
    %73 = arith.truncf %72 : vector<8x16xf32> to vector<8x16xbf16>
    %cst_83 = arith.constant dense<0.000000e+00> : vector<8x16xf32>
    %74 = tpu.matmul %73, %19, %cst_83 {dimension_numbers = #tpu.dot_dimension_numbers<[1], [0], [0], [1], [0, 0, 1, 1], [], []>} : vector<8x16xbf16>, vector<16x16xbf16>, vector<8x16xf32> -> vector<8x16xf32>
    %cst_84 = arith.constant dense<0.000000e+00> : vector<16x16xf32>
    %75 = tpu.matmul %26, %74, %cst_84 {dimension_numbers = #tpu.dot_dimension_numbers<[1], [0], [0], [1], [0, 0, 1, 1], [], []>} : vector<16x8xf32>, vector<8x16xf32>, vector<16x16xf32> -> vector<16x16xf32>
    %c0_85 = arith.constant 0 : index
    %c0_86 = arith.constant 0 : index
    %c0_87 = arith.constant 0 : index
    %c0_88 = arith.constant 0 : index
    %76 = vector.load %arg4[%c0_85, %c0_86, %c0_87, %c0_88] : memref<1x8x16x16xbf16, #tpu.memory_space<vmem>>, vector<1x1x16x16xbf16>
    %77 = vector.shape_cast %76 : vector<1x1x16x16xbf16> to vector<16x16xbf16>
    %cst_89 = arith.constant dense<0.000000e+00> : vector<16x4xf32>
    %78 = tpu.matmul %77, %20, %cst_89 {dimension_numbers = #tpu.dot_dimension_numbers<[1], [0], [0], [1], [0, 0, 1, 1], [], []>} : vector<16x16xbf16>, vector<16x4xbf16>, vector<16x4xf32> -> vector<16x4xf32>
    %79 = vector.broadcast %21 : vector<1x4xf32> to vector<16x4xf32>
    %80 = arith.addf %78, %79 : vector<16x4xf32>
    %81 = arith.negf %80 : vector<16x4xf32>
    %82 = math.exp %81 : vector<16x4xf32>
    %cst_90 = arith.constant 1.000000e+00 : f32
    %83 = vector.broadcast %cst_90 : f32 to vector<16x4xf32>
    %84 = arith.addf %83, %82 : vector<16x4xf32>
    %85 = arith.divf %83, %84 : vector<16x4xf32>
    %86 = arith.mulf %80, %85 : vector<16x4xf32>
    %87 = arith.truncf %86 : vector<16x4xf32> to vector<16x4xbf16>
    %cst_91 = arith.constant dense<0.000000e+00> : vector<16x16xf32>
    %88 = tpu.matmul %87, %22, %cst_91 {dimension_numbers = #tpu.dot_dimension_numbers<[1], [0], [0], [1], [0, 0, 1, 1], [], []>} : vector<16x4xbf16>, vector<4x16xbf16>, vector<16x16xf32> -> vector<16x16xf32>
    %89 = vector.broadcast %23 : vector<1x16xf32> to vector<16x16xf32>
    %90 = arith.addf %88, %89 : vector<16x16xf32>
    %91 = arith.negf %90 : vector<16x16xf32>
    %92 = math.exp %91 : vector<16x16xf32>
    %cst_92 = arith.constant 1.000000e+00 : f32
    %93 = vector.broadcast %cst_92 : f32 to vector<16x16xf32>
    %94 = arith.addf %93, %92 : vector<16x16xf32>
    %95 = arith.divf %93, %94 : vector<16x16xf32>
    %96 = arith.truncf %95 : vector<16x16xf32> to vector<16x16xbf16>
    %cst_93 = arith.constant dense<0.000000e+00> : vector<16x16xf32>
    %97 = tpu.matmul %96, %24, %cst_93 {dimension_numbers = #tpu.dot_dimension_numbers<[1], [0], [0], [1], [0, 0, 1, 1], [], []>} : vector<16x16xbf16>, vector<16x16xbf16>, vector<16x16xf32> -> vector<16x16xf32>
    %98 = arith.addf %97, %75 : vector<16x16xf32>
    %99 = vector.broadcast %25 : vector<1x16xf32> to vector<16x16xf32>
    %100 = arith.addf %98, %99 : vector<16x16xf32>
    %101 = arith.negf %100 : vector<16x16xf32>
    %102 = math.exp %101 : vector<16x16xf32>
    %cst_94 = arith.constant 1.000000e+00 : f32
    %103 = vector.broadcast %cst_94 : f32 to vector<16x16xf32>
    %104 = arith.addf %103, %102 : vector<16x16xf32>
    %105 = arith.divf %103, %104 : vector<16x16xf32>
    %106 = arith.mulf %100, %105 : vector<16x16xf32>
    %c0_95 = arith.constant 0 : index
    %c0_96 = arith.constant 0 : index
    %c0_97 = arith.constant 0 : index
    %c0_98 = arith.constant 0 : index
    %107 = vector.load %arg15[%c0_95, %c0_96, %c0_97, %c0_98] : memref<1x8x16x16xf32, #tpu.memory_space<vmem>>, vector<1x1x16x16xf32>
    %108 = vector.shape_cast %107 : vector<1x1x16x16xf32> to vector<16x16xf32>
    %109 = vector.shape_cast %106 : vector<16x16xf32> to vector<1x1x16x16xf32>
    tpu.vector_store %arg15[%c0_95, %c0_96, %c0_97, %c0_98], %109 {strides = array<i32>} : memref<1x8x16x16xf32, #tpu.memory_space<vmem>>, vector<1x1x16x16xf32>,
    %c0_99 = arith.constant 0 : index
    %c1_100 = arith.constant 1 : index
    %c0_101 = arith.constant 0 : index
    %c0_102 = arith.constant 0 : index
    %110 = vector.load %arg4[%c0_99, %c1_100, %c0_101, %c0_102] : memref<1x8x16x16xbf16, #tpu.memory_space<vmem>>, vector<1x1x16x16xbf16>
    %111 = vector.shape_cast %110 : vector<1x1x16x16xbf16> to vector<16x16xbf16>
    %cst_103 = arith.constant dense<0.000000e+00> : vector<16x4xf32>
    %112 = tpu.matmul %111, %20, %cst_103 {dimension_numbers = #tpu.dot_dimension_numbers<[1], [0], [0], [1], [0, 0, 1, 1], [], []>} : vector<16x16xbf16>, vector<16x4xbf16>, vector<16x4xf32> -> vector<16x4xf32>
    %113 = vector.broadcast %21 : vector<1x4xf32> to vector<16x4xf32>
    %114 = arith.addf %112, %113 : vector<16x4xf32>
    %115 = arith.negf %114 : vector<16x4xf32>
    %116 = math.exp %115 : vector<16x4xf32>
    %cst_104 = arith.constant 1.000000e+00 : f32
    %117 = vector.broadcast %cst_104 : f32 to vector<16x4xf32>
    %118 = arith.addf %117, %116 : vector<16x4xf32>
    %119 = arith.divf %117, %118 : vector<16x4xf32>
    %120 = arith.mulf %114, %119 : vector<16x4xf32>
    %121 = arith.truncf %120 : vector<16x4xf32> to vector<16x4xbf16>
    %cst_105 = arith.constant dense<0.000000e+00> : vector<16x16xf32>
    %122 = tpu.matmul %121, %22, %cst_105 {dimension_numbers = #tpu.dot_dimension_numbers<[1], [0], [0], [1], [0, 0, 1, 1], [], []>} : vector<16x4xbf16>, vector<4x16xbf16>, vector<16x16xf32> -> vector<16x16xf32>
    %123 = vector.broadcast %23 : vector<1x16xf32> to vector<16x16xf32>
    %124 = arith.addf %122, %123 : vector<16x16xf32>
    %125 = arith.negf %124 : vector<16x16xf32>
    %126 = math.exp %125 : vector<16x16xf32>
    %cst_106 = arith.constant 1.000000e+00 : f32
    %127 = vector.broadcast %cst_106 : f32 to vector<16x16xf32>
    %128 = arith.addf %127, %126 : vector<16x16xf32>
    %129 = arith.divf %127, %128 : vector<16x16xf32>
    %130 = arith.truncf %129 : vector<16x16xf32> to vector<16x16xbf16>
    %cst_107 = arith.constant dense<0.000000e+00> : vector<16x16xf32>
    %131 = tpu.matmul %130, %24, %cst_107 {dimension_numbers = #tpu.dot_dimension_numbers<[1], [0], [0], [1], [0, 0, 1, 1], [], []>} : vector<16x16xbf16>, vector<16x16xbf16>, vector<16x16xf32> -> vector<16x16xf32>
    %132 = arith.addf %131, %75 : vector<16x16xf32>
    %133 = vector.broadcast %25 : vector<1x16xf32> to vector<16x16xf32>
    %134 = arith.addf %132, %133 : vector<16x16xf32>
    %135 = arith.negf %134 : vector<16x16xf32>
    %136 = math.exp %135 : vector<16x16xf32>
    %cst_108 = arith.constant 1.000000e+00 : f32
    %137 = vector.broadcast %cst_108 : f32 to vector<16x16xf32>
    %138 = arith.addf %137, %136 : vector<16x16xf32>
    %139 = arith.divf %137, %138 : vector<16x16xf32>
    %140 = arith.mulf %134, %139 : vector<16x16xf32>
    %c0_109 = arith.constant 0 : index
    %c1_110 = arith.constant 1 : index
    %c0_111 = arith.constant 0 : index
    %c0_112 = arith.constant 0 : index
    %141 = vector.load %arg15[%c0_109, %c1_110, %c0_111, %c0_112] : memref<1x8x16x16xf32, #tpu.memory_space<vmem>>, vector<1x1x16x16xf32>
    %142 = vector.shape_cast %141 : vector<1x1x16x16xf32> to vector<16x16xf32>
    %143 = vector.shape_cast %140 : vector<16x16xf32> to vector<1x1x16x16xf32>
    tpu.vector_store %arg15[%c0_109, %c1_110, %c0_111, %c0_112], %143 {strides = array<i32>} : memref<1x8x16x16xf32, #tpu.memory_space<vmem>>, vector<1x1x16x16xf32>,
    %144 = vector.extract_strided_slice %30 {offsets = [0, 0], sizes = [8, 32], strides = [1, 1]} : vector<10x32xbf16> to vector<8x32xbf16>
    %cst_113 = arith.constant dense<0.000000e+00> : vector<8x16xf32>
    %145 = tpu.matmul %144, %1, %cst_113 {dimension_numbers = #tpu.dot_dimension_numbers<[1], [0], [0], [1], [0, 0, 1, 1], [], []>} : vector<8x32xbf16>, vector<32x16xbf16>, vector<8x16xf32> -> vector<8x16xf32>
    %146 = vector.extract_strided_slice %30 {offsets = [1, 0], sizes = [8, 32], strides = [1, 1]} : vector<10x32xbf16> to vector<8x32xbf16>
    %cst_114 = arith.constant dense<0.000000e+00> : vector<8x16xf32>
    %147 = tpu.matmul %146, %3, %cst_114 {dimension_numbers = #tpu.dot_dimension_numbers<[1], [0], [0], [1], [0, 0, 1, 1], [], []>} : vector<8x32xbf16>, vector<32x16xbf16>, vector<8x16xf32> -> vector<8x16xf32>
    %148 = arith.addf %145, %147 : vector<8x16xf32>
    %149 = vector.extract_strided_slice %30 {offsets = [2, 0], sizes = [8, 32], strides = [1, 1]} : vector<10x32xbf16> to vector<8x32xbf16>
    %cst_115 = arith.constant dense<0.000000e+00> : vector<8x16xf32>
    %150 = tpu.matmul %149, %5, %cst_115 {dimension_numbers = #tpu.dot_dimension_numbers<[1], [0], [0], [1], [0, 0, 1, 1], [], []>} : vector<8x32xbf16>, vector<32x16xbf16>, vector<8x16xf32> -> vector<8x16xf32>
    %151 = arith.addf %148, %150 : vector<8x16xf32>
    %152 = vector.extract_strided_slice %32 {offsets = [0, 0], sizes = [8, 32], strides = [1, 1]} : vector<10x32xbf16> to vector<8x32xbf16>
    %cst_116 = arith.constant dense<0.000000e+00> : vector<8x16xf32>
    %153 = tpu.matmul %152, %7, %cst_116 {dimension_numbers = #tpu.dot_dimension_numbers<[1], [0], [0], [1], [0, 0, 1, 1], [], []>} : vector<8x32xbf16>, vector<32x16xbf16>, vector<8x16xf32> -> vector<8x16xf32>
    %154 = arith.addf %151, %153 : vector<8x16xf32>
    %155 = vector.extract_strided_slice %32 {offsets = [1, 0], sizes = [8, 32], strides = [1, 1]} : vector<10x32xbf16> to vector<8x32xbf16>
    %cst_117 = arith.constant dense<0.000000e+00> : vector<8x16xf32>
    %156 = tpu.matmul %155, %9, %cst_117 {dimension_numbers = #tpu.dot_dimension_numbers<[1], [0], [0], [1], [0, 0, 1, 1], [], []>} : vector<8x32xbf16>, vector<32x16xbf16>, vector<8x16xf32> -> vector<8x16xf32>
    %157 = arith.addf %154, %156 : vector<8x16xf32>
    %158 = vector.extract_strided_slice %32 {offsets = [2, 0], sizes = [8, 32], strides = [1, 1]} : vector<10x32xbf16> to vector<8x32xbf16>
    %cst_118 = arith.constant dense<0.000000e+00> : vector<8x16xf32>
    %159 = tpu.matmul %158, %11, %cst_118 {dimension_numbers = #tpu.dot_dimension_numbers<[1], [0], [0], [1], [0, 0, 1, 1], [], []>} : vector<8x32xbf16>, vector<32x16xbf16>, vector<8x16xf32> -> vector<8x16xf32>
    %160 = arith.addf %157, %159 : vector<8x16xf32>
    %161 = vector.extract_strided_slice %34 {offsets = [0, 0], sizes = [8, 32], strides = [1, 1]} : vector<10x32xbf16> to vector<8x32xbf16>
    %cst_119 = arith.constant dense<0.000000e+00> : vector<8x16xf32>
    %162 = tpu.matmul %161, %13, %cst_119 {dimension_numbers = #tpu.dot_dimension_numbers<[1], [0], [0], [1], [0, 0, 1, 1], [], []>} : vector<8x32xbf16>, vector<32x16xbf16>, vector<8x16xf32> -> vector<8x16xf32>
    %163 = arith.addf %160, %162 : vector<8x16xf32>
    %164 = vector.extract_strided_slice %34 {offsets = [1, 0], sizes = [8, 32], strides = [1, 1]} : vector<10x32xbf16> to vector<8x32xbf16>
    %cst_120 = arith.constant dense<0.000000e+00> : vector<8x16xf32>
    %165 = tpu.matmul %164, %15, %cst_120 {dimension_numbers = #tpu.dot_dimension_numbers<[1], [0], [0], [1], [0, 0, 1, 1], [], []>} : vector<8x32xbf16>, vector<32x16xbf16>, vector<8x16xf32> -> vector<8x16xf32>
    %166 = arith.addf %163, %165 : vector<8x16xf32>
    %167 = vector.extract_strided_slice %34 {offsets = [2, 0], sizes = [8, 32], strides = [1, 1]} : vector<10x32xbf16> to vector<8x32xbf16>
    %cst_121 = arith.constant dense<0.000000e+00> : vector<8x16xf32>
    %168 = tpu.matmul %167, %17, %cst_121 {dimension_numbers = #tpu.dot_dimension_numbers<[1], [0], [0], [1], [0, 0, 1, 1], [], []>} : vector<8x32xbf16>, vector<32x16xbf16>, vector<8x16xf32> -> vector<8x16xf32>
    %169 = arith.addf %166, %168 : vector<8x16xf32>
    %170 = vector.broadcast %18 : vector<1x16xf32> to vector<8x16xf32>
    %171 = arith.addf %169, %170 : vector<8x16xf32>
    %172 = arith.negf %171 : vector<8x16xf32>
    %173 = math.exp %172 : vector<8x16xf32>
    %cst_122 = arith.constant 1.000000e+00 : f32
    %174 = vector.broadcast %cst_122 : f32 to vector<8x16xf32>
    %175 = arith.addf %174, %173 : vector<8x16xf32>
    %176 = arith.divf %174, %175 : vector<8x16xf32>
    %177 = arith.mulf %171, %176 : vector<8x16xf32>
    %178 = arith.truncf %177 : vector<8x16xf32> to vector<8x16xbf16>
    %cst_123 = arith.constant dense<0.000000e+00> : vector<8x16xf32>
    %179 = tpu.matmul %178, %19, %cst_123 {dimension_numbers = #tpu.dot_dimension_numbers<[1], [0], [0], [1], [0, 0, 1, 1], [], []>} : vector<8x16xbf16>, vector<16x16xbf16>, vector<8x16xf32> -> vector<8x16xf32>
    %cst_124 = arith.constant dense<0.000000e+00> : vector<16x16xf32>
    %180 = tpu.matmul %26, %179, %cst_124 {dimension_numbers = #tpu.dot_dimension_numbers<[1], [0], [0], [1], [0, 0, 1, 1], [], []>} : vector<16x8xf32>, vector<8x16xf32>, vector<16x16xf32> -> vector<16x16xf32>
    %c0_125 = arith.constant 0 : index
    %c2_126 = arith.constant 2 : index
    %c0_127 = arith.constant 0 : index
    %c0_128 = arith.constant 0 : index
    %181 = vector.load %arg4[%c0_125, %c2_126, %c0_127, %c0_128] : memref<1x8x16x16xbf16, #tpu.memory_space<vmem>>, vector<1x1x16x16xbf16>
    %182 = vector.shape_cast %181 : vector<1x1x16x16xbf16> to vector<16x16xbf16>
    %cst_129 = arith.constant dense<0.000000e+00> : vector<16x4xf32>
    %183 = tpu.matmul %182, %20, %cst_129 {dimension_numbers = #tpu.dot_dimension_numbers<[1], [0], [0], [1], [0, 0, 1, 1], [], []>} : vector<16x16xbf16>, vector<16x4xbf16>, vector<16x4xf32> -> vector<16x4xf32>
    %184 = vector.broadcast %21 : vector<1x4xf32> to vector<16x4xf32>
    %185 = arith.addf %183, %184 : vector<16x4xf32>
    %186 = arith.negf %185 : vector<16x4xf32>
    %187 = math.exp %186 : vector<16x4xf32>
    %cst_130 = arith.constant 1.000000e+00 : f32
    %188 = vector.broadcast %cst_130 : f32 to vector<16x4xf32>
    %189 = arith.addf %188, %187 : vector<16x4xf32>
    %190 = arith.divf %188, %189 : vector<16x4xf32>
    %191 = arith.mulf %185, %190 : vector<16x4xf32>
    %192 = arith.truncf %191 : vector<16x4xf32> to vector<16x4xbf16>
    %cst_131 = arith.constant dense<0.000000e+00> : vector<16x16xf32>
    %193 = tpu.matmul %192, %22, %cst_131 {dimension_numbers = #tpu.dot_dimension_numbers<[1], [0], [0], [1], [0, 0, 1, 1], [], []>} : vector<16x4xbf16>, vector<4x16xbf16>, vector<16x16xf32> -> vector<16x16xf32>
    %194 = vector.broadcast %23 : vector<1x16xf32> to vector<16x16xf32>
    %195 = arith.addf %193, %194 : vector<16x16xf32>
    %196 = arith.negf %195 : vector<16x16xf32>
    %197 = math.exp %196 : vector<16x16xf32>
    %cst_132 = arith.constant 1.000000e+00 : f32
    %198 = vector.broadcast %cst_132 : f32 to vector<16x16xf32>
    %199 = arith.addf %198, %197 : vector<16x16xf32>
    %200 = arith.divf %198, %199 : vector<16x16xf32>
    %201 = arith.truncf %200 : vector<16x16xf32> to vector<16x16xbf16>
    %cst_133 = arith.constant dense<0.000000e+00> : vector<16x16xf32>
    %202 = tpu.matmul %201, %24, %cst_133 {dimension_numbers = #tpu.dot_dimension_numbers<[1], [0], [0], [1], [0, 0, 1, 1], [], []>} : vector<16x16xbf16>, vector<16x16xbf16>, vector<16x16xf32> -> vector<16x16xf32>
    %203 = arith.addf %202, %180 : vector<16x16xf32>
    %204 = vector.broadcast %25 : vector<1x16xf32> to vector<16x16xf32>
    %205 = arith.addf %203, %204 : vector<16x16xf32>
    %206 = arith.negf %205 : vector<16x16xf32>
    %207 = math.exp %206 : vector<16x16xf32>
    %cst_134 = arith.constant 1.000000e+00 : f32
    %208 = vector.broadcast %cst_134 : f32 to vector<16x16xf32>
    %209 = arith.addf %208, %207 : vector<16x16xf32>
    %210 = arith.divf %208, %209 : vector<16x16xf32>
    %211 = arith.mulf %205, %210 : vector<16x16xf32>
    %c0_135 = arith.constant 0 : index
    %c2_136 = arith.constant 2 : index
    %c0_137 = arith.constant 0 : index
    %c0_138 = arith.constant 0 : index
    %212 = vector.load %arg15[%c0_135, %c2_136, %c0_137, %c0_138] : memref<1x8x16x16xf32, #tpu.memory_space<vmem>>, vector<1x1x16x16xf32>
    %213 = vector.shape_cast %212 : vector<1x1x16x16xf32> to vector<16x16xf32>
    %214 = vector.shape_cast %211 : vector<16x16xf32> to vector<1x1x16x16xf32>
    tpu.vector_store %arg15[%c0_135, %c2_136, %c0_137, %c0_138], %214 {strides = array<i32>} : memref<1x8x16x16xf32, #tpu.memory_space<vmem>>, vector<1x1x16x16xf32>,
    %c0_139 = arith.constant 0 : index
    %c3_140 = arith.constant 3 : index
    %c0_141 = arith.constant 0 : index
    %c0_142 = arith.constant 0 : index
    %215 = vector.load %arg4[%c0_139, %c3_140, %c0_141, %c0_142] : memref<1x8x16x16xbf16, #tpu.memory_space<vmem>>, vector<1x1x16x16xbf16>
    %216 = vector.shape_cast %215 : vector<1x1x16x16xbf16> to vector<16x16xbf16>
    %cst_143 = arith.constant dense<0.000000e+00> : vector<16x4xf32>
    %217 = tpu.matmul %216, %20, %cst_143 {dimension_numbers = #tpu.dot_dimension_numbers<[1], [0], [0], [1], [0, 0, 1, 1], [], []>} : vector<16x16xbf16>, vector<16x4xbf16>, vector<16x4xf32> -> vector<16x4xf32>
    %218 = vector.broadcast %21 : vector<1x4xf32> to vector<16x4xf32>
    %219 = arith.addf %217, %218 : vector<16x4xf32>
    %220 = arith.negf %219 : vector<16x4xf32>
    %221 = math.exp %220 : vector<16x4xf32>
    %cst_144 = arith.constant 1.000000e+00 : f32
    %222 = vector.broadcast %cst_144 : f32 to vector<16x4xf32>
    %223 = arith.addf %222, %221 : vector<16x4xf32>
    %224 = arith.divf %222, %223 : vector<16x4xf32>
    %225 = arith.mulf %219, %224 : vector<16x4xf32>
    %226 = arith.truncf %225 : vector<16x4xf32> to vector<16x4xbf16>
    %cst_145 = arith.constant dense<0.000000e+00> : vector<16x16xf32>
    %227 = tpu.matmul %226, %22, %cst_145 {dimension_numbers = #tpu.dot_dimension_numbers<[1], [0], [0], [1], [0, 0, 1, 1], [], []>} : vector<16x4xbf16>, vector<4x16xbf16>, vector<16x16xf32> -> vector<16x16xf32>
    %228 = vector.broadcast %23 : vector<1x16xf32> to vector<16x16xf32>
    %229 = arith.addf %227, %228 : vector<16x16xf32>
    %230 = arith.negf %229 : vector<16x16xf32>
    %231 = math.exp %230 : vector<16x16xf32>
    %cst_146 = arith.constant 1.000000e+00 : f32
    %232 = vector.broadcast %cst_146 : f32 to vector<16x16xf32>
    %233 = arith.addf %232, %231 : vector<16x16xf32>
    %234 = arith.divf %232, %233 : vector<16x16xf32>
    %235 = arith.truncf %234 : vector<16x16xf32> to vector<16x16xbf16>
    %cst_147 = arith.constant dense<0.000000e+00> : vector<16x16xf32>
    %236 = tpu.matmul %235, %24, %cst_147 {dimension_numbers = #tpu.dot_dimension_numbers<[1], [0], [0], [1], [0, 0, 1, 1], [], []>} : vector<16x16xbf16>, vector<16x16xbf16>, vector<16x16xf32> -> vector<16x16xf32>
    %237 = arith.addf %236, %180 : vector<16x16xf32>
    %238 = vector.broadcast %25 : vector<1x16xf32> to vector<16x16xf32>
    %239 = arith.addf %237, %238 : vector<16x16xf32>
    %240 = arith.negf %239 : vector<16x16xf32>
    %241 = math.exp %240 : vector<16x16xf32>
    %cst_148 = arith.constant 1.000000e+00 : f32
    %242 = vector.broadcast %cst_148 : f32 to vector<16x16xf32>
    %243 = arith.addf %242, %241 : vector<16x16xf32>
    %244 = arith.divf %242, %243 : vector<16x16xf32>
    %245 = arith.mulf %239, %244 : vector<16x16xf32>
    %c0_149 = arith.constant 0 : index
    %c3_150 = arith.constant 3 : index
    %c0_151 = arith.constant 0 : index
    %c0_152 = arith.constant 0 : index
    %246 = vector.load %arg15[%c0_149, %c3_150, %c0_151, %c0_152] : memref<1x8x16x16xf32, #tpu.memory_space<vmem>>, vector<1x1x16x16xf32>
    %247 = vector.shape_cast %246 : vector<1x1x16x16xf32> to vector<16x16xf32>
    %248 = vector.shape_cast %245 : vector<16x16xf32> to vector<1x1x16x16xf32>
    tpu.vector_store %arg15[%c0_149, %c3_150, %c0_151, %c0_152], %248 {strides = array<i32>} : memref<1x8x16x16xf32, #tpu.memory_space<vmem>>, vector<1x1x16x16xf32>,
    %249 = vector.extract_strided_slice %32 {offsets = [0, 0], sizes = [8, 32], strides = [1, 1]} : vector<10x32xbf16> to vector<8x32xbf16>
    %cst_153 = arith.constant dense<0.000000e+00> : vector<8x16xf32>
    %250 = tpu.matmul %249, %1, %cst_153 {dimension_numbers = #tpu.dot_dimension_numbers<[1], [0], [0], [1], [0, 0, 1, 1], [], []>} : vector<8x32xbf16>, vector<32x16xbf16>, vector<8x16xf32> -> vector<8x16xf32>
    %251 = vector.extract_strided_slice %32 {offsets = [1, 0], sizes = [8, 32], strides = [1, 1]} : vector<10x32xbf16> to vector<8x32xbf16>
    %cst_154 = arith.constant dense<0.000000e+00> : vector<8x16xf32>
    %252 = tpu.matmul %251, %3, %cst_154 {dimension_numbers = #tpu.dot_dimension_numbers<[1], [0], [0], [1], [0, 0, 1, 1], [], []>} : vector<8x32xbf16>, vector<32x16xbf16>, vector<8x16xf32> -> vector<8x16xf32>
    %253 = arith.addf %250, %252 : vector<8x16xf32>
    %254 = vector.extract_strided_slice %32 {offsets = [2, 0], sizes = [8, 32], strides = [1, 1]} : vector<10x32xbf16> to vector<8x32xbf16>
    %cst_155 = arith.constant dense<0.000000e+00> : vector<8x16xf32>
    %255 = tpu.matmul %254, %5, %cst_155 {dimension_numbers = #tpu.dot_dimension_numbers<[1], [0], [0], [1], [0, 0, 1, 1], [], []>} : vector<8x32xbf16>, vector<32x16xbf16>, vector<8x16xf32> -> vector<8x16xf32>
    %256 = arith.addf %253, %255 : vector<8x16xf32>
    %257 = vector.extract_strided_slice %34 {offsets = [0, 0], sizes = [8, 32], strides = [1, 1]} : vector<10x32xbf16> to vector<8x32xbf16>
    %cst_156 = arith.constant dense<0.000000e+00> : vector<8x16xf32>
    %258 = tpu.matmul %257, %7, %cst_156 {dimension_numbers = #tpu.dot_dimension_numbers<[1], [0], [0], [1], [0, 0, 1, 1], [], []>} : vector<8x32xbf16>, vector<32x16xbf16>, vector<8x16xf32> -> vector<8x16xf32>
    %259 = arith.addf %256, %258 : vector<8x16xf32>
    %260 = vector.extract_strided_slice %34 {offsets = [1, 0], sizes = [8, 32], strides = [1, 1]} : vector<10x32xbf16> to vector<8x32xbf16>
    %cst_157 = arith.constant dense<0.000000e+00> : vector<8x16xf32>
    %261 = tpu.matmul %260, %9, %cst_157 {dimension_numbers = #tpu.dot_dimension_numbers<[1], [0], [0], [1], [0, 0, 1, 1], [], []>} : vector<8x32xbf16>, vector<32x16xbf16>, vector<8x16xf32> -> vector<8x16xf32>
    %262 = arith.addf %259, %261 : vector<8x16xf32>
    %263 = vector.extract_strided_slice %34 {offsets = [2, 0], sizes = [8, 32], strides = [1, 1]} : vector<10x32xbf16> to vector<8x32xbf16>
    %cst_158 = arith.constant dense<0.000000e+00> : vector<8x16xf32>
    %264 = tpu.matmul %263, %11, %cst_158 {dimension_numbers = #tpu.dot_dimension_numbers<[1], [0], [0], [1], [0, 0, 1, 1], [], []>} : vector<8x32xbf16>, vector<32x16xbf16>, vector<8x16xf32> -> vector<8x16xf32>
    %265 = arith.addf %262, %264 : vector<8x16xf32>
    %266 = vector.extract_strided_slice %36 {offsets = [0, 0], sizes = [8, 32], strides = [1, 1]} : vector<10x32xbf16> to vector<8x32xbf16>
    %cst_159 = arith.constant dense<0.000000e+00> : vector<8x16xf32>
    %267 = tpu.matmul %266, %13, %cst_159 {dimension_numbers = #tpu.dot_dimension_numbers<[1], [0], [0], [1], [0, 0, 1, 1], [], []>} : vector<8x32xbf16>, vector<32x16xbf16>, vector<8x16xf32> -> vector<8x16xf32>
    %268 = arith.addf %265, %267 : vector<8x16xf32>
    %269 = vector.extract_strided_slice %36 {offsets = [1, 0], sizes = [8, 32], strides = [1, 1]} : vector<10x32xbf16> to vector<8x32xbf16>
    %cst_160 = arith.constant dense<0.000000e+00> : vector<8x16xf32>
    %270 = tpu.matmul %269, %15, %cst_160 {dimension_numbers = #tpu.dot_dimension_numbers<[1], [0], [0], [1], [0, 0, 1, 1], [], []>} : vector<8x32xbf16>, vector<32x16xbf16>, vector<8x16xf32> -> vector<8x16xf32>
    %271 = arith.addf %268, %270 : vector<8x16xf32>
    %272 = vector.extract_strided_slice %36 {offsets = [2, 0], sizes = [8, 32], strides = [1, 1]} : vector<10x32xbf16> to vector<8x32xbf16>
    %cst_161 = arith.constant dense<0.000000e+00> : vector<8x16xf32>
    %273 = tpu.matmul %272, %17, %cst_161 {dimension_numbers = #tpu.dot_dimension_numbers<[1], [0], [0], [1], [0, 0, 1, 1], [], []>} : vector<8x32xbf16>, vector<32x16xbf16>, vector<8x16xf32> -> vector<8x16xf32>
    %274 = arith.addf %271, %273 : vector<8x16xf32>
    %275 = vector.broadcast %18 : vector<1x16xf32> to vector<8x16xf32>
    %276 = arith.addf %274, %275 : vector<8x16xf32>
    %277 = arith.negf %276 : vector<8x16xf32>
    %278 = math.exp %277 : vector<8x16xf32>
    %cst_162 = arith.constant 1.000000e+00 : f32
    %279 = vector.broadcast %cst_162 : f32 to vector<8x16xf32>
    %280 = arith.addf %279, %278 : vector<8x16xf32>
    %281 = arith.divf %279, %280 : vector<8x16xf32>
    %282 = arith.mulf %276, %281 : vector<8x16xf32>
    %283 = arith.truncf %282 : vector<8x16xf32> to vector<8x16xbf16>
    %cst_163 = arith.constant dense<0.000000e+00> : vector<8x16xf32>
    %284 = tpu.matmul %283, %19, %cst_163 {dimension_numbers = #tpu.dot_dimension_numbers<[1], [0], [0], [1], [0, 0, 1, 1], [], []>} : vector<8x16xbf16>, vector<16x16xbf16>, vector<8x16xf32> -> vector<8x16xf32>
    %cst_164 = arith.constant dense<0.000000e+00> : vector<16x16xf32>
    %285 = tpu.matmul %26, %284, %cst_164 {dimension_numbers = #tpu.dot_dimension_numbers<[1], [0], [0], [1], [0, 0, 1, 1], [], []>} : vector<16x8xf32>, vector<8x16xf32>, vector<16x16xf32> -> vector<16x16xf32>
    %c0_165 = arith.constant 0 : index
    %c4 = arith.constant 4 : index
    %c0_166 = arith.constant 0 : index
    %c0_167 = arith.constant 0 : index
    %286 = vector.load %arg4[%c0_165, %c4, %c0_166, %c0_167] : memref<1x8x16x16xbf16, #tpu.memory_space<vmem>>, vector<1x1x16x16xbf16>
    %287 = vector.shape_cast %286 : vector<1x1x16x16xbf16> to vector<16x16xbf16>
    %cst_168 = arith.constant dense<0.000000e+00> : vector<16x4xf32>
    %288 = tpu.matmul %287, %20, %cst_168 {dimension_numbers = #tpu.dot_dimension_numbers<[1], [0], [0], [1], [0, 0, 1, 1], [], []>} : vector<16x16xbf16>, vector<16x4xbf16>, vector<16x4xf32> -> vector<16x4xf32>
    %289 = vector.broadcast %21 : vector<1x4xf32> to vector<16x4xf32>
    %290 = arith.addf %288, %289 : vector<16x4xf32>
    %291 = arith.negf %290 : vector<16x4xf32>
    %292 = math.exp %291 : vector<16x4xf32>
    %cst_169 = arith.constant 1.000000e+00 : f32
    %293 = vector.broadcast %cst_169 : f32 to vector<16x4xf32>
    %294 = arith.addf %293, %292 : vector<16x4xf32>
    %295 = arith.divf %293, %294 : vector<16x4xf32>
    %296 = arith.mulf %290, %295 : vector<16x4xf32>
    %297 = arith.truncf %296 : vector<16x4xf32> to vector<16x4xbf16>
    %cst_170 = arith.constant dense<0.000000e+00> : vector<16x16xf32>
    %298 = tpu.matmul %297, %22, %cst_170 {dimension_numbers = #tpu.dot_dimension_numbers<[1], [0], [0], [1], [0, 0, 1, 1], [], []>} : vector<16x4xbf16>, vector<4x16xbf16>, vector<16x16xf32> -> vector<16x16xf32>
    %299 = vector.broadcast %23 : vector<1x16xf32> to vector<16x16xf32>
    %300 = arith.addf %298, %299 : vector<16x16xf32>
    %301 = arith.negf %300 : vector<16x16xf32>
    %302 = math.exp %301 : vector<16x16xf32>
    %cst_171 = arith.constant 1.000000e+00 : f32
    %303 = vector.broadcast %cst_171 : f32 to vector<16x16xf32>
    %304 = arith.addf %303, %302 : vector<16x16xf32>
    %305 = arith.divf %303, %304 : vector<16x16xf32>
    %306 = arith.truncf %305 : vector<16x16xf32> to vector<16x16xbf16>
    %cst_172 = arith.constant dense<0.000000e+00> : vector<16x16xf32>
    %307 = tpu.matmul %306, %24, %cst_172 {dimension_numbers = #tpu.dot_dimension_numbers<[1], [0], [0], [1], [0, 0, 1, 1], [], []>} : vector<16x16xbf16>, vector<16x16xbf16>, vector<16x16xf32> -> vector<16x16xf32>
    %308 = arith.addf %307, %285 : vector<16x16xf32>
    %309 = vector.broadcast %25 : vector<1x16xf32> to vector<16x16xf32>
    %310 = arith.addf %308, %309 : vector<16x16xf32>
    %311 = arith.negf %310 : vector<16x16xf32>
    %312 = math.exp %311 : vector<16x16xf32>
    %cst_173 = arith.constant 1.000000e+00 : f32
    %313 = vector.broadcast %cst_173 : f32 to vector<16x16xf32>
    %314 = arith.addf %313, %312 : vector<16x16xf32>
    %315 = arith.divf %313, %314 : vector<16x16xf32>
    %316 = arith.mulf %310, %315 : vector<16x16xf32>
    %c0_174 = arith.constant 0 : index
    %c4_175 = arith.constant 4 : index
    %c0_176 = arith.constant 0 : index
    %c0_177 = arith.constant 0 : index
    %317 = vector.load %arg15[%c0_174, %c4_175, %c0_176, %c0_177] : memref<1x8x16x16xf32, #tpu.memory_space<vmem>>, vector<1x1x16x16xf32>
    %318 = vector.shape_cast %317 : vector<1x1x16x16xf32> to vector<16x16xf32>
    %319 = vector.shape_cast %316 : vector<16x16xf32> to vector<1x1x16x16xf32>
    tpu.vector_store %arg15[%c0_174, %c4_175, %c0_176, %c0_177], %319 {strides = array<i32>} : memref<1x8x16x16xf32, #tpu.memory_space<vmem>>, vector<1x1x16x16xf32>,
    %c0_178 = arith.constant 0 : index
    %c5 = arith.constant 5 : index
    %c0_179 = arith.constant 0 : index
    %c0_180 = arith.constant 0 : index
    %320 = vector.load %arg4[%c0_178, %c5, %c0_179, %c0_180] : memref<1x8x16x16xbf16, #tpu.memory_space<vmem>>, vector<1x1x16x16xbf16>
    %321 = vector.shape_cast %320 : vector<1x1x16x16xbf16> to vector<16x16xbf16>
    %cst_181 = arith.constant dense<0.000000e+00> : vector<16x4xf32>
    %322 = tpu.matmul %321, %20, %cst_181 {dimension_numbers = #tpu.dot_dimension_numbers<[1], [0], [0], [1], [0, 0, 1, 1], [], []>} : vector<16x16xbf16>, vector<16x4xbf16>, vector<16x4xf32> -> vector<16x4xf32>
    %323 = vector.broadcast %21 : vector<1x4xf32> to vector<16x4xf32>
    %324 = arith.addf %322, %323 : vector<16x4xf32>
    %325 = arith.negf %324 : vector<16x4xf32>
    %326 = math.exp %325 : vector<16x4xf32>
    %cst_182 = arith.constant 1.000000e+00 : f32
    %327 = vector.broadcast %cst_182 : f32 to vector<16x4xf32>
    %328 = arith.addf %327, %326 : vector<16x4xf32>
    %329 = arith.divf %327, %328 : vector<16x4xf32>
    %330 = arith.mulf %324, %329 : vector<16x4xf32>
    %331 = arith.truncf %330 : vector<16x4xf32> to vector<16x4xbf16>
    %cst_183 = arith.constant dense<0.000000e+00> : vector<16x16xf32>
    %332 = tpu.matmul %331, %22, %cst_183 {dimension_numbers = #tpu.dot_dimension_numbers<[1], [0], [0], [1], [0, 0, 1, 1], [], []>} : vector<16x4xbf16>, vector<4x16xbf16>, vector<16x16xf32> -> vector<16x16xf32>
    %333 = vector.broadcast %23 : vector<1x16xf32> to vector<16x16xf32>
    %334 = arith.addf %332, %333 : vector<16x16xf32>
    %335 = arith.negf %334 : vector<16x16xf32>
    %336 = math.exp %335 : vector<16x16xf32>
    %cst_184 = arith.constant 1.000000e+00 : f32
    %337 = vector.broadcast %cst_184 : f32 to vector<16x16xf32>
    %338 = arith.addf %337, %336 : vector<16x16xf32>
    %339 = arith.divf %337, %338 : vector<16x16xf32>
    %340 = arith.truncf %339 : vector<16x16xf32> to vector<16x16xbf16>
    %cst_185 = arith.constant dense<0.000000e+00> : vector<16x16xf32>
    %341 = tpu.matmul %340, %24, %cst_185 {dimension_numbers = #tpu.dot_dimension_numbers<[1], [0], [0], [1], [0, 0, 1, 1], [], []>} : vector<16x16xbf16>, vector<16x16xbf16>, vector<16x16xf32> -> vector<16x16xf32>
    %342 = arith.addf %341, %285 : vector<16x16xf32>
    %343 = vector.broadcast %25 : vector<1x16xf32> to vector<16x16xf32>
    %344 = arith.addf %342, %343 : vector<16x16xf32>
    %345 = arith.negf %344 : vector<16x16xf32>
    %346 = math.exp %345 : vector<16x16xf32>
    %cst_186 = arith.constant 1.000000e+00 : f32
    %347 = vector.broadcast %cst_186 : f32 to vector<16x16xf32>
    %348 = arith.addf %347, %346 : vector<16x16xf32>
    %349 = arith.divf %347, %348 : vector<16x16xf32>
    %350 = arith.mulf %344, %349 : vector<16x16xf32>
    %c0_187 = arith.constant 0 : index
    %c5_188 = arith.constant 5 : index
    %c0_189 = arith.constant 0 : index
    %c0_190 = arith.constant 0 : index
    %351 = vector.load %arg15[%c0_187, %c5_188, %c0_189, %c0_190] : memref<1x8x16x16xf32, #tpu.memory_space<vmem>>, vector<1x1x16x16xf32>
    %352 = vector.shape_cast %351 : vector<1x1x16x16xf32> to vector<16x16xf32>
    %353 = vector.shape_cast %350 : vector<16x16xf32> to vector<1x1x16x16xf32>
    tpu.vector_store %arg15[%c0_187, %c5_188, %c0_189, %c0_190], %353 {strides = array<i32>} : memref<1x8x16x16xf32, #tpu.memory_space<vmem>>, vector<1x1x16x16xf32>,
    %354 = vector.extract_strided_slice %34 {offsets = [0, 0], sizes = [8, 32], strides = [1, 1]} : vector<10x32xbf16> to vector<8x32xbf16>
    %cst_191 = arith.constant dense<0.000000e+00> : vector<8x16xf32>
    %355 = tpu.matmul %354, %1, %cst_191 {dimension_numbers = #tpu.dot_dimension_numbers<[1], [0], [0], [1], [0, 0, 1, 1], [], []>} : vector<8x32xbf16>, vector<32x16xbf16>, vector<8x16xf32> -> vector<8x16xf32>
    %356 = vector.extract_strided_slice %34 {offsets = [1, 0], sizes = [8, 32], strides = [1, 1]} : vector<10x32xbf16> to vector<8x32xbf16>
    %cst_192 = arith.constant dense<0.000000e+00> : vector<8x16xf32>
    %357 = tpu.matmul %356, %3, %cst_192 {dimension_numbers = #tpu.dot_dimension_numbers<[1], [0], [0], [1], [0, 0, 1, 1], [], []>} : vector<8x32xbf16>, vector<32x16xbf16>, vector<8x16xf32> -> vector<8x16xf32>
    %358 = arith.addf %355, %357 : vector<8x16xf32>
    %359 = vector.extract_strided_slice %34 {offsets = [2, 0], sizes = [8, 32], strides = [1, 1]} : vector<10x32xbf16> to vector<8x32xbf16>
    %cst_193 = arith.constant dense<0.000000e+00> : vector<8x16xf32>
    %360 = tpu.matmul %359, %5, %cst_193 {dimension_numbers = #tpu.dot_dimension_numbers<[1], [0], [0], [1], [0, 0, 1, 1], [], []>} : vector<8x32xbf16>, vector<32x16xbf16>, vector<8x16xf32> -> vector<8x16xf32>
    %361 = arith.addf %358, %360 : vector<8x16xf32>
    %362 = vector.extract_strided_slice %36 {offsets = [0, 0], sizes = [8, 32], strides = [1, 1]} : vector<10x32xbf16> to vector<8x32xbf16>
    %cst_194 = arith.constant dense<0.000000e+00> : vector<8x16xf32>
    %363 = tpu.matmul %362, %7, %cst_194 {dimension_numbers = #tpu.dot_dimension_numbers<[1], [0], [0], [1], [0, 0, 1, 1], [], []>} : vector<8x32xbf16>, vector<32x16xbf16>, vector<8x16xf32> -> vector<8x16xf32>
    %364 = arith.addf %361, %363 : vector<8x16xf32>
    %365 = vector.extract_strided_slice %36 {offsets = [1, 0], sizes = [8, 32], strides = [1, 1]} : vector<10x32xbf16> to vector<8x32xbf16>
    %cst_195 = arith.constant dense<0.000000e+00> : vector<8x16xf32>
    %366 = tpu.matmul %365, %9, %cst_195 {dimension_numbers = #tpu.dot_dimension_numbers<[1], [0], [0], [1], [0, 0, 1, 1], [], []>} : vector<8x32xbf16>, vector<32x16xbf16>, vector<8x16xf32> -> vector<8x16xf32>
    %367 = arith.addf %364, %366 : vector<8x16xf32>
    %368 = vector.extract_strided_slice %36 {offsets = [2, 0], sizes = [8, 32], strides = [1, 1]} : vector<10x32xbf16> to vector<8x32xbf16>
    %cst_196 = arith.constant dense<0.000000e+00> : vector<8x16xf32>
    %369 = tpu.matmul %368, %11, %cst_196 {dimension_numbers = #tpu.dot_dimension_numbers<[1], [0], [0], [1], [0, 0, 1, 1], [], []>} : vector<8x32xbf16>, vector<32x16xbf16>, vector<8x16xf32> -> vector<8x16xf32>
    %370 = arith.addf %367, %369 : vector<8x16xf32>
    %371 = vector.extract_strided_slice %38 {offsets = [0, 0], sizes = [8, 32], strides = [1, 1]} : vector<10x32xbf16> to vector<8x32xbf16>
    %cst_197 = arith.constant dense<0.000000e+00> : vector<8x16xf32>
    %372 = tpu.matmul %371, %13, %cst_197 {dimension_numbers = #tpu.dot_dimension_numbers<[1], [0], [0], [1], [0, 0, 1, 1], [], []>} : vector<8x32xbf16>, vector<32x16xbf16>, vector<8x16xf32> -> vector<8x16xf32>
    %373 = arith.addf %370, %372 : vector<8x16xf32>
    %374 = vector.extract_strided_slice %38 {offsets = [1, 0], sizes = [8, 32], strides = [1, 1]} : vector<10x32xbf16> to vector<8x32xbf16>
    %cst_198 = arith.constant dense<0.000000e+00> : vector<8x16xf32>
    %375 = tpu.matmul %374, %15, %cst_198 {dimension_numbers = #tpu.dot_dimension_numbers<[1], [0], [0], [1], [0, 0, 1, 1], [], []>} : vector<8x32xbf16>, vector<32x16xbf16>, vector<8x16xf32> -> vector<8x16xf32>
    %376 = arith.addf %373, %375 : vector<8x16xf32>
    %377 = vector.extract_strided_slice %38 {offsets = [2, 0], sizes = [8, 32], strides = [1, 1]} : vector<10x32xbf16> to vector<8x32xbf16>
    %cst_199 = arith.constant dense<0.000000e+00> : vector<8x16xf32>
    %378 = tpu.matmul %377, %17, %cst_199 {dimension_numbers = #tpu.dot_dimension_numbers<[1], [0], [0], [1], [0, 0, 1, 1], [], []>} : vector<8x32xbf16>, vector<32x16xbf16>, vector<8x16xf32> -> vector<8x16xf32>
    %379 = arith.addf %376, %378 : vector<8x16xf32>
    %380 = vector.broadcast %18 : vector<1x16xf32> to vector<8x16xf32>
    %381 = arith.addf %379, %380 : vector<8x16xf32>
    %382 = arith.negf %381 : vector<8x16xf32>
    %383 = math.exp %382 : vector<8x16xf32>
    %cst_200 = arith.constant 1.000000e+00 : f32
    %384 = vector.broadcast %cst_200 : f32 to vector<8x16xf32>
    %385 = arith.addf %384, %383 : vector<8x16xf32>
    %386 = arith.divf %384, %385 : vector<8x16xf32>
    %387 = arith.mulf %381, %386 : vector<8x16xf32>
    %388 = arith.truncf %387 : vector<8x16xf32> to vector<8x16xbf16>
    %cst_201 = arith.constant dense<0.000000e+00> : vector<8x16xf32>
    %389 = tpu.matmul %388, %19, %cst_201 {dimension_numbers = #tpu.dot_dimension_numbers<[1], [0], [0], [1], [0, 0, 1, 1], [], []>} : vector<8x16xbf16>, vector<16x16xbf16>, vector<8x16xf32> -> vector<8x16xf32>
    %cst_202 = arith.constant dense<0.000000e+00> : vector<16x16xf32>
    %390 = tpu.matmul %26, %389, %cst_202 {dimension_numbers = #tpu.dot_dimension_numbers<[1], [0], [0], [1], [0, 0, 1, 1], [], []>} : vector<16x8xf32>, vector<8x16xf32>, vector<16x16xf32> -> vector<16x16xf32>
    %c0_203 = arith.constant 0 : index
    %c6 = arith.constant 6 : index
    %c0_204 = arith.constant 0 : index
    %c0_205 = arith.constant 0 : index
    %391 = vector.load %arg4[%c0_203, %c6, %c0_204, %c0_205] : memref<1x8x16x16xbf16, #tpu.memory_space<vmem>>, vector<1x1x16x16xbf16>
    %392 = vector.shape_cast %391 : vector<1x1x16x16xbf16> to vector<16x16xbf16>
    %cst_206 = arith.constant dense<0.000000e+00> : vector<16x4xf32>
    %393 = tpu.matmul %392, %20, %cst_206 {dimension_numbers = #tpu.dot_dimension_numbers<[1], [0], [0], [1], [0, 0, 1, 1], [], []>} : vector<16x16xbf16>, vector<16x4xbf16>, vector<16x4xf32> -> vector<16x4xf32>
    %394 = vector.broadcast %21 : vector<1x4xf32> to vector<16x4xf32>
    %395 = arith.addf %393, %394 : vector<16x4xf32>
    %396 = arith.negf %395 : vector<16x4xf32>
    %397 = math.exp %396 : vector<16x4xf32>
    %cst_207 = arith.constant 1.000000e+00 : f32
    %398 = vector.broadcast %cst_207 : f32 to vector<16x4xf32>
    %399 = arith.addf %398, %397 : vector<16x4xf32>
    %400 = arith.divf %398, %399 : vector<16x4xf32>
    %401 = arith.mulf %395, %400 : vector<16x4xf32>
    %402 = arith.truncf %401 : vector<16x4xf32> to vector<16x4xbf16>
    %cst_208 = arith.constant dense<0.000000e+00> : vector<16x16xf32>
    %403 = tpu.matmul %402, %22, %cst_208 {dimension_numbers = #tpu.dot_dimension_numbers<[1], [0], [0], [1], [0, 0, 1, 1], [], []>} : vector<16x4xbf16>, vector<4x16xbf16>, vector<16x16xf32> -> vector<16x16xf32>
    %404 = vector.broadcast %23 : vector<1x16xf32> to vector<16x16xf32>
    %405 = arith.addf %403, %404 : vector<16x16xf32>
    %406 = arith.negf %405 : vector<16x16xf32>
    %407 = math.exp %406 : vector<16x16xf32>
    %cst_209 = arith.constant 1.000000e+00 : f32
    %408 = vector.broadcast %cst_209 : f32 to vector<16x16xf32>
    %409 = arith.addf %408, %407 : vector<16x16xf32>
    %410 = arith.divf %408, %409 : vector<16x16xf32>
    %411 = arith.truncf %410 : vector<16x16xf32> to vector<16x16xbf16>
    %cst_210 = arith.constant dense<0.000000e+00> : vector<16x16xf32>
    %412 = tpu.matmul %411, %24, %cst_210 {dimension_numbers = #tpu.dot_dimension_numbers<[1], [0], [0], [1], [0, 0, 1, 1], [], []>} : vector<16x16xbf16>, vector<16x16xbf16>, vector<16x16xf32> -> vector<16x16xf32>
    %413 = arith.addf %412, %390 : vector<16x16xf32>
    %414 = vector.broadcast %25 : vector<1x16xf32> to vector<16x16xf32>
    %415 = arith.addf %413, %414 : vector<16x16xf32>
    %416 = arith.negf %415 : vector<16x16xf32>
    %417 = math.exp %416 : vector<16x16xf32>
    %cst_211 = arith.constant 1.000000e+00 : f32
    %418 = vector.broadcast %cst_211 : f32 to vector<16x16xf32>
    %419 = arith.addf %418, %417 : vector<16x16xf32>
    %420 = arith.divf %418, %419 : vector<16x16xf32>
    %421 = arith.mulf %415, %420 : vector<16x16xf32>
    %c0_212 = arith.constant 0 : index
    %c6_213 = arith.constant 6 : index
    %c0_214 = arith.constant 0 : index
    %c0_215 = arith.constant 0 : index
    %422 = vector.load %arg15[%c0_212, %c6_213, %c0_214, %c0_215] : memref<1x8x16x16xf32, #tpu.memory_space<vmem>>, vector<1x1x16x16xf32>
    %423 = vector.shape_cast %422 : vector<1x1x16x16xf32> to vector<16x16xf32>
    %424 = vector.shape_cast %421 : vector<16x16xf32> to vector<1x1x16x16xf32>
    tpu.vector_store %arg15[%c0_212, %c6_213, %c0_214, %c0_215], %424 {strides = array<i32>} : memref<1x8x16x16xf32, #tpu.memory_space<vmem>>, vector<1x1x16x16xf32>,
    %c0_216 = arith.constant 0 : index
    %c7 = arith.constant 7 : index
    %c0_217 = arith.constant 0 : index
    %c0_218 = arith.constant 0 : index
    %425 = vector.load %arg4[%c0_216, %c7, %c0_217, %c0_218] : memref<1x8x16x16xbf16, #tpu.memory_space<vmem>>, vector<1x1x16x16xbf16>
    %426 = vector.shape_cast %425 : vector<1x1x16x16xbf16> to vector<16x16xbf16>
    %cst_219 = arith.constant dense<0.000000e+00> : vector<16x4xf32>
    %427 = tpu.matmul %426, %20, %cst_219 {dimension_numbers = #tpu.dot_dimension_numbers<[1], [0], [0], [1], [0, 0, 1, 1], [], []>} : vector<16x16xbf16>, vector<16x4xbf16>, vector<16x4xf32> -> vector<16x4xf32>
    %428 = vector.broadcast %21 : vector<1x4xf32> to vector<16x4xf32>
    %429 = arith.addf %427, %428 : vector<16x4xf32>
    %430 = arith.negf %429 : vector<16x4xf32>
    %431 = math.exp %430 : vector<16x4xf32>
    %cst_220 = arith.constant 1.000000e+00 : f32
    %432 = vector.broadcast %cst_220 : f32 to vector<16x4xf32>
    %433 = arith.addf %432, %431 : vector<16x4xf32>
    %434 = arith.divf %432, %433 : vector<16x4xf32>
    %435 = arith.mulf %429, %434 : vector<16x4xf32>
    %436 = arith.truncf %435 : vector<16x4xf32> to vector<16x4xbf16>
    %cst_221 = arith.constant dense<0.000000e+00> : vector<16x16xf32>
    %437 = tpu.matmul %436, %22, %cst_221 {dimension_numbers = #tpu.dot_dimension_numbers<[1], [0], [0], [1], [0, 0, 1, 1], [], []>} : vector<16x4xbf16>, vector<4x16xbf16>, vector<16x16xf32> -> vector<16x16xf32>
    %438 = vector.broadcast %23 : vector<1x16xf32> to vector<16x16xf32>
    %439 = arith.addf %437, %438 : vector<16x16xf32>
    %440 = arith.negf %439 : vector<16x16xf32>
    %441 = math.exp %440 : vector<16x16xf32>
    %cst_222 = arith.constant 1.000000e+00 : f32
    %442 = vector.broadcast %cst_222 : f32 to vector<16x16xf32>
    %443 = arith.addf %442, %441 : vector<16x16xf32>
    %444 = arith.divf %442, %443 : vector<16x16xf32>
    %445 = arith.truncf %444 : vector<16x16xf32> to vector<16x16xbf16>
    %cst_223 = arith.constant dense<0.000000e+00> : vector<16x16xf32>
    %446 = tpu.matmul %445, %24, %cst_223 {dimension_numbers = #tpu.dot_dimension_numbers<[1], [0], [0], [1], [0, 0, 1, 1], [], []>} : vector<16x16xbf16>, vector<16x16xbf16>, vector<16x16xf32> -> vector<16x16xf32>
    %447 = arith.addf %446, %390 : vector<16x16xf32>
    %448 = vector.broadcast %25 : vector<1x16xf32> to vector<16x16xf32>
    %449 = arith.addf %447, %448 : vector<16x16xf32>
    %450 = arith.negf %449 : vector<16x16xf32>
    %451 = math.exp %450 : vector<16x16xf32>
    %cst_224 = arith.constant 1.000000e+00 : f32
    %452 = vector.broadcast %cst_224 : f32 to vector<16x16xf32>
    %453 = arith.addf %452, %451 : vector<16x16xf32>
    %454 = arith.divf %452, %453 : vector<16x16xf32>
    %455 = arith.mulf %449, %454 : vector<16x16xf32>
    %c0_225 = arith.constant 0 : index
    %c7_226 = arith.constant 7 : index
    %c0_227 = arith.constant 0 : index
    %c0_228 = arith.constant 0 : index
    %456 = vector.load %arg15[%c0_225, %c7_226, %c0_227, %c0_228] : memref<1x8x16x16xf32, #tpu.memory_space<vmem>>, vector<1x1x16x16xf32>
    %457 = vector.shape_cast %456 : vector<1x1x16x16xf32> to vector<16x16xf32>
    %458 = vector.shape_cast %455 : vector<16x16xf32> to vector<1x1x16x16xf32>
    tpu.vector_store %arg15[%c0_225, %c7_226, %c0_227, %c0_228], %458 {strides = array<i32>} : memref<1x8x16x16xf32, #tpu.memory_space<vmem>>, vector<1x1x16x16xf32>,
    return
  }
  func.func @transform_0(%arg0: i32, %arg1: i32) -> (i32, i32, i32, i32) {
    %c0_i32 = arith.constant 0 : i32
    %0 = arith.addi %arg1, %c0_i32 : i32
    %c0_i32_0 = arith.constant 0 : i32
    %c0_i32_1 = arith.constant 0 : i32
    %c0_i32_2 = arith.constant 0 : i32
    return %arg0, %0, %c0_i32_0, %c0_i32_1 : i32, i32, i32, i32
  }
  func.func @transform_1(%arg0: i32, %arg1: i32) -> (i32, i32, i32, i32) {
    %c1_i32 = arith.constant 1 : i32
    %0 = arith.addi %arg1, %c1_i32 : i32
    %c0_i32 = arith.constant 0 : i32
    %c0_i32_0 = arith.constant 0 : i32
    %c0_i32_1 = arith.constant 0 : i32
    return %arg0, %0, %c0_i32, %c0_i32_0 : i32, i32, i32, i32
  }
  func.func @transform_2(%arg0: i32, %arg1: i32) -> (i32, i32, i32, i32) {
    %c0_i32 = arith.constant 0 : i32
    %c0_i32_0 = arith.constant 0 : i32
    %c0_i32_1 = arith.constant 0 : i32
    return %arg0, %arg1, %c0_i32, %c0_i32_0 : i32, i32, i32, i32
  }
  func.func @transform_3(%arg0: i32, %arg1: i32) -> (i32, i32, i32, i32) {
    %c0_i32 = arith.constant 0 : i32
    %c0_i32_0 = arith.constant 0 : i32
    %c0_i32_1 = arith.constant 0 : i32
    %c0_i32_2 = arith.constant 0 : i32
    %c0_i32_3 = arith.constant 0 : i32
    return %c0_i32, %c0_i32_0, %c0_i32_1, %c0_i32_2 : i32, i32, i32, i32
  }
  func.func @transform_4(%arg0: i32, %arg1: i32) -> (i32, i32) {
    %c0_i32 = arith.constant 0 : i32
    %c0_i32_0 = arith.constant 0 : i32
    %c0_i32_1 = arith.constant 0 : i32
    return %c0_i32, %c0_i32_0 : i32, i32
  }
  func.func @transform_5(%arg0: i32, %arg1: i32) -> (i32, i32) {
    %c0_i32 = arith.constant 0 : i32
    %c0_i32_0 = arith.constant 0 : i32
    %c0_i32_1 = arith.constant 0 : i32
    return %c0_i32, %c0_i32_0 : i32, i32
  }
  func.func @transform_6(%arg0: i32, %arg1: i32) -> (i32, i32) {
    %c0_i32 = arith.constant 0 : i32
    %c0_i32_0 = arith.constant 0 : i32
    %c0_i32_1 = arith.constant 0 : i32
    return %c0_i32, %c0_i32_0 : i32, i32
  }
  func.func @transform_7(%arg0: i32, %arg1: i32) -> (i32, i32) {
    %c0_i32 = arith.constant 0 : i32
    %c0_i32_0 = arith.constant 0 : i32
    %c0_i32_1 = arith.constant 0 : i32
    return %c0_i32, %c0_i32_0 : i32, i32
  }
  func.func @transform_8(%arg0: i32, %arg1: i32) -> (i32, i32) {
    %c0_i32 = arith.constant 0 : i32
    %c0_i32_0 = arith.constant 0 : i32
    %c0_i32_1 = arith.constant 0 : i32
    return %c0_i32, %c0_i32_0 : i32, i32
  }
  func.func @transform_9(%arg0: i32, %arg1: i32) -> (i32, i32) {
    %c0_i32 = arith.constant 0 : i32
    %c0_i32_0 = arith.constant 0 : i32
    %c0_i32_1 = arith.constant 0 : i32
    return %c0_i32, %c0_i32_0 : i32, i32
  }
  func.func @transform_10(%arg0: i32, %arg1: i32) -> (i32, i32) {
    %c0_i32 = arith.constant 0 : i32
    %c0_i32_0 = arith.constant 0 : i32
    %c0_i32_1 = arith.constant 0 : i32
    return %c0_i32, %c0_i32_0 : i32, i32
  }
  func.func @transform_11(%arg0: i32, %arg1: i32) -> (i32, i32) {
    %c0_i32 = arith.constant 0 : i32
    %c0_i32_0 = arith.constant 0 : i32
    %c0_i32_1 = arith.constant 0 : i32
    return %c0_i32, %c0_i32_0 : i32, i32
  }
  func.func @transform_12(%arg0: i32, %arg1: i32) -> (i32, i32) {
    %c0_i32 = arith.constant 0 : i32
    %c0_i32_0 = arith.constant 0 : i32
    %c0_i32_1 = arith.constant 0 : i32
    return %c0_i32, %c0_i32_0 : i32, i32
  }
  func.func @transform_13(%arg0: i32, %arg1: i32) -> (i32, i32, i32, i32) {
    %c0_i32 = arith.constant 0 : i32
    %c0_i32_0 = arith.constant 0 : i32
    %c0_i32_1 = arith.constant 0 : i32
    return %arg0, %arg1, %c0_i32, %c0_i32_0 : i32, i32, i32, i32
  }
}

</mosaic_0001>

<bundles_post_ra>
// kernel: og2_forward.1
= control target key start
LH: loop header
LB: loop body
LE: loop exit
PB: predicated region body
PF: predicated region fallthrough
CT: control target
= control target key end

     0   :  { %s5884_s25 = smov 0   ;;  %s5886_s26 = smov 0   ;;  %s6862_s0 = inlined_call_operand.vmem [shape: bf16[2,12,10,32], index: 0, kind: input, shape index: {}, may-alias: {0,1}]   ;;  %s6863_s1 = inlined_call_operand.vmem [shape: bf16[2,12,10,32], index: 1, kind: input, shape index: {}, may-alias: {0,1}]   ;;  %s6864_s2 = inlined_call_operand.vmem [shape: bf16[2,16,16,16], index: 2, kind: input, shape index: {}]   ;;  %s6865_s3 = inlined_call_operand.vmem [shape: bf16[3,3,32,16], index: 3, kind: input, shape index: {}]   ;;  %s6866_s4 = inlined_call_operand.vmem [shape: f32[1,16], index: 4, kind: input, shape index: {}]   ;;  %s6867_s5 = inlined_call_operand.vmem [shape: bf16[16,16], index: 5, kind: input, shape index: {}]   ;;  %s6868_s6 = inlined_call_operand.vmem [shape: bf16[16,4], index: 6, kind: input, shape index: {}]   ;;  %s6869_s7 = inlined_call_operand.vmem [shape: f32[1,4], index: 7, kind: input, shape index: {}]   ;;  %s6870_s8 = inlined_call_operand.vmem [shape: bf16[4,16], index: 8, kind: input, shape index: {}]   ;;  %s6871_s9 = inlined_call_operand.vmem [shape: f32[1,16], index: 9, kind: input, shape index: {}]   ;;  %s6872_s10 = inlined_call_operand.vmem [shape: bf16[16,16], index: 10, kind: input, shape index: {}]   ;;  %s6873_s11 = inlined_call_operand.vmem [shape: f32[1,16], index: 11, kind: input, shape index: {}]   ;;  %s6874_s12 = inlined_call_operand.vmem [shape: f32[16,8], index: 12, kind: input, shape index: {}]   ;;  %s6875_s13 = inlined_call_operand.vmem [shape: f32[2,16,16,16], index: 13, kind: output, shape index: {}]  }
   0x1   :  { %s5888_s27 = smov 0   ;;  %s5890_s28 = smov 0  }
   0x2   :  { %s5892_s29 = smov 0  }
   0x3 LB: > { %s32_s30 = sadd.s32 1, %s5802_s27  ;;  %s35_s14 = sadd.s32 1, %s5806_s28  ;;  %s5810_s29 = sphi %s5892_s29, %s23_s29   ;;  %s5806_s28 = sphi %s5890_s28, %s6881_s28   ;;  %s5802_s27 = sphi %s5888_s27, %s6880_s27   ;;  %s5798_s26 = sphi %s5886_s26, %s6879_s26   ;;  %s5794_s25 = sphi %s5884_s25, %s6878_s25  }
   0x4   : > { %p33_p0 = scmp.ge.s32.totalorder %s32_s30, 2  ;;  %p4555_p1 = scmp.ge.s32.totalorder %s5810_s29, 1 }
   0x5   : > { %p449_p2 = scmp.lt.s32.totalorder %s5810_s29, 5 }
   0x6   : > { %s6883_s30 = smov (%p33_p0, %s32_s30), 0  ;;  %s6885_s14 = smov (!%p33_p0, %s35_s14), %s5806_s28 }
   0x7   : > { %p450_p3 = pnand %p4555_p1, %p449_p2  ;;  %p37_p4 = scmp.ge.s32.totalorder %s6885_s14, 2 }
   0x8   : > { %v5921_v0 = vld [vmem:[%s6865_s3 + $0x10] sm:$0xff] (!%p450_p3)   ;;  %v5812_v1 = vmov (!%p450_p3), 0.0   ;;  %v5928_v2 = vld [vmem:[%s6865_s3] sm:$0xff] (!%p450_p3)   ;;  %v5934_v3 = vld [vmem:[%s6865_s3 + $0x18] sm:$0xff] (!%p450_p3)   ;;  %vm5813_vm0 = vmmov (!%p450_p3), 0   ;;  %s5939_s21 = sshll.u32 (!%p450_p3), %s5794_s25, 2 }
   0x9   : > { %s6887_s14 = smov (%p37_p4, %s6885_s14), 0  ;;  %453 = sbr.rel (%p450_p3) target bundleno = 4405 (0x1135), region = 72 }
   0xa   : > { %6876 = sst [smem:[#allocation2_spill]] %s6887_s14  ;;  %4981 = vmatprep.subr.bf16.mxu0 (!%p450_p3), %v5812_v1  ;;  %4989 = vmatprep.subr.bf16.mxu1 (!%p450_p3), %v5812_v1  ;;  %v5946_v4 = vld [vmem:[%s6865_s3 + $0x8] sm:$0xff] (!%p450_p3)   ;;  %p525_p5 = scmp.lt.s32.totalorder (!%p450_p3), %s5798_s26, 1  ;;  %vm668_vm1 = vcmask (!%p450_p3), 261120   ;;  %v5968_v5 = vld [vmem:[%s6865_s3 + $0x30] sm:$0xff] (!%p450_p3)   ;;  %v5987_v11 = vld [vmem:[%s6865_s3 + $0x38] sm:$0xff] (!%p450_p3)  }
   0xb   : > { %4982 = vmatpush3.bf16.msra.mxu0 (!%p450_p3), %v5921_v0  ;;  %4985 = vmatprep.mubr.msk.bf16.mxu0 (!%p450_p3), %vm5813_vm0, %v5812_v1  ;;  %p527_p6 = scmp.lt.s32.totalorder (!%p450_p3), %s5939_s21, 11  ;;  %s4562_s24 = sshll.u32 (!%p450_p3), %s5794_s25, 3  ;;  %v6000_v15 = vld [vmem:[%s6865_s3 + $0x20] sm:$0xff] (!%p450_p3)   ;;  %v6005_v17 = vld [vmem:[%s6865_s3 + $0x50] sm:$0xff] (!%p450_p3)   ;;  %v6020_v23 = vld [vmem:[%s6865_s3 + $0x28] sm:$0xff] (!%p450_p3)   ;;  %vm1207_vm2 = vcmask (!%p450_p3), 130048  }
   0xc   : > { %4990 = vmatpush3.bf16.msra.mxu1 (!%p450_p3), %v5928_v2  ;;  %4983 = vmatprep.subr.bf16.mxu0 (!%p450_p3), %v5812_v1  ;;  %p551_p7 = scmp.lt.s32.totalorder (!%p450_p3), %s4562_s24, 15  ;;  %v6036_v26 = vld [vmem:[%s6865_s3 + $0x58] sm:$0xff] (!%p450_p3)   ;;  %v6044_v28 = vld [vmem:[%s6865_s3 + $0x40] sm:$0xff] (!%p450_p3)   ;;  %v6053_v31 = vld [vmem:[%s6865_s3 + $0x70] sm:$0xff] (!%p450_p3)   ;;  %vm1251_vm3 = vcmask (!%p450_p3), 64512   ;;  %vm1421_vm4 = vcmask (!%p450_p3), 1041408  }
   0xd   : > { %4991 = vmatprep.subr.bf16.mxu1 (!%p450_p3), %v5812_v1  ;;  %4993 = vmatprep.mubr.msk.bf16.mxu1 (!%p450_p3), %vm5813_vm0, %v5812_v1  ;;  %v6063_v32 = vld [vmem:[%s6865_s3 + $0x48] sm:$0xff] (!%p450_p3)   ;;  %v6075_v35 = vld [vmem:[%s6865_s3 + $0x78] sm:$0xff] (!%p450_p3)   ;;  %v6086_v37 = vld [vmem:[%s6865_s3 + $0x60] sm:$0xff] (!%p450_p3)   ;;  %vm1417_vm5 = vcmask (!%p450_p3), 31744  }
   0xe   : > { %v6099_v39 = vld [vmem:[%s6865_s3 + $0x68] sm:$0xff] (!%p450_p3)   ;;  %v6112_v40 = vld [vmem:[%s6865_s3 + $0x80] sm:$0xff] (!%p450_p3)  }
   0xf   : > { %4984 = vmatpush3.bf16.msra.mxu0 (!%p450_p3), %v5934_v3  ;;  %v6121_v41 = vld [vmem:[%s6865_s3 + $0x88] sm:$0xff] (!%p450_p3)   ;;  %v6134_v43 = vld [vmem:[%s6867_s5] sm:$0xff] (!%p450_p3)  }
  0x10   : > { %s6889_s26 = smov (!%p525_p5, %s5798_s26), 1  ;;  %4992 = vmatpush3.bf16.msra.mxu1 %v5946_v4  ;;  %4997 = vmatprep.subr.bf16.mxu0 %v5812_v1  ;;  %s6891_s24 = smov (!%p551_p7, %s4562_s24), 15 }
  0x11   : > { %s528_s15 = scalar_select %p527_p6, %s5939_s21, 11  ;;  %5005 = vmatprep.subr.bf16.mxu1 %v5812_v1 }
  0x12   : > { %s5457_s16 = smul.u32 24, %s6889_s26 }
  0x13   : > { %s4557_s17 = sshll.u32 %s528_s15, 1  ;;  %s4564_s15 = sshll.u32 %s6889_s26, 5 }
  0x14   : > { %s531_s25 = sadd.s32 %s5457_s16, %s4557_s17  ;;  %s4563_s17 = sshll.u32 %s6891_s24, 1 }
  0x15   : > { %s4558_s18 = sshll.u32 %s531_s25, 2  ;;  %s5994_s19 = sadd.s32 %s4564_s15, %s4563_s17 }
  0x16   : > { %s5973_s14 = scalar_lea.vmem %s6862_s0, %s4558_s18  ;;  %s4565_s25 = sshll.u32 %s5994_s19, 2 }
  0x17   : > { %v628_v6 = vld [vmem:[%s5973_s14] sm:$0xf]  ;;  %v629_v7 = vld [vmem:[%s5973_s14 + $0x4] sm:$0x1]  ;;  %v5980_v9 = vld [vmem:[%s5973_s14 + $0x8] sm:$0xf]  ;;  %s6027_s20 = scalar_lea.vmem %s6864_s2, %s4565_s25 }
  0x18   : > { %v4610_v8 = vcombine.low %v628_v6, %v629_v7  ;;  %4994 = vmatmul.mubr.msk.bf16.vlgmr.msra.gmra.mrb[0].mxu1 %vm668_vm1, %v628_v6  ;;  %v4603_v10 = vld [vmem:[%s5973_s14 + $0xc] sm:$0x1]  ;;  %v6012_v20 = vld [vmem:[%s5973_s14 + $0x10] sm:$0xf]  ;;  %v4605_v21 = vld [vmem:[%s5973_s14 + $0x14] sm:$0x1] }
  0x19   : > { %5006 = vmatpush3.bf16.msra.mxu1 %v5968_v5  ;;  %5009 = vmatprep.mubr.msk.bf16.mxu1 %vm5813_vm0, %v5812_v1  ;;  %v5992_v12 = vcombine.low %v5980_v9, %v4603_v10  ;;  %v4633_v22 = vcombine.low %v6012_v20, %v4605_v21  ;;  %s4569_s15 = sshll.u32 %s5994_s19, 3  ;;  %s4804_s25 = sadd.s32 4, %s5939_s21 }
  0x1a   : > { %v650_v13 = vshrl.u32 %v4610_v8, 16  ;;  %v652_v14 = vshll.u32 %v4610_v8, 16  ;;  %5007 = vmatprep.subr.bf16.mxu1 %v5812_v1  ;;  %v767_v24 = vrot.slane %v4610_v8, 1  ;;  %s6295_s24 = scalar_lea.vmem %s6875_s13, %s4569_s15  ;;  %p539_p8 = scmp.lt.s32.totalorder %s4804_s25, 11 }
  0x1b   : > { %v888_v18 = vshll.u32 %v5992_v12, 16  ;;  %v886_v25 = vshrl.u32 %v5992_v12, 16  ;;  %v948_v27 = vrot.slane %v5992_v12, 1  ;;  %v1069_v30 = vshll.u32 %v4633_v22, 16 }
  0x1c   : > { %v654_v16 = vrot.slane %v652_v14, 1  ;;  %v1067_v33 = vshrl.u32 %v4633_v22, 16  ;;  %v6126_v42 = vrot.slane %v4633_v22, 1  ;;  %s6893_s25 = smov (!%p539_p8, %s4804_s25), 11 }
  0x1d   : > { %5008 = vmatpush3.bf16.msra.mxu1 %v5987_v11  ;;  %v890_v29 = vrot.slane %v888_v18, 1  ;;  %v1071_v34 = vrot.slane %v1069_v30, 1  ;;  %s4560_s15 = sshll.u32 %s6893_s25, 1 }
  0x1e   : > { %v655_v19 = vor.u32 %v654_v16, %v650_v13  ;;  %5021 = vmatprep.subr.bf16.mxu1 %v5812_v1  ;;  %s543_s17 = sadd.s32 %s5457_s16, %s4560_s15 }
  0x1f   : > { %v6079_v36 = vor.u32 %v890_v29, %v886_v25  ;;  %v6089_v38 = vor.u32 %v1071_v34, %v1067_v33  ;;  %s4561_s18 = sshll.u32 %s543_s17, 2 }
  0x20   : > { %4986 = vmatmul.mubr.msk.bf16.vlgmr.msra.gmra.mrb[0].mxu0 %vm668_vm1, %v655_v19  ;;  %5010 = vmatmul.mubr.msk.bf16.vlgmr.msra.gmra.mrb[4].mxu1 %vm668_vm1, %v5980_v9  ;;  %s6458_s23 = scalar_lea.vmem %s6863_s1, %s4561_s18 }
  0x21   : > { %4998 = vmatpush3.bf16.msra.mxu0 %v6000_v15  ;;  %5001 = vmatprep.mubr.msk.bf16.mxu0 %vm5813_vm0, %v5812_v1 }
  0x22   : > { %4999 = vmatprep.subr.bf16.mxu0 %v5812_v1  ;;  %5022 = vmatpush3.bf16.msra.mxu1 %v6005_v17 }
  0x23   : > { %5023 = vmatprep.subr.bf16.mxu1 %v5812_v1  ;;  %5025 = vmatprep.mubr.msk.bf16.mxu1 %vm5813_vm0, %v5812_v1 }
  0x25   : > { %5000 = vmatpush3.bf16.msra.mxu0 %v6020_v23 }
  0x26   : > { %5013 = vmatprep.subr.bf16.mxu0 %v5812_v1  ;;  %5024 = vmatpush3.bf16.msra.mxu1 %v6036_v26 }
  0x27   : > { %5037 = vmatprep.subr.bf16.mxu1 %v5812_v1 }
  0x28   : > { %5002 = vmatmul.mubr.msk.bf16.vlgmr.msra.gmra.mrb[4].mxu0 %vm668_vm1, %v767_v24 }
  0x29   : > { %5014 = vmatpush3.bf16.msra.mxu0 %v6044_v28  ;;  %5017 = vmatprep.mubr.msk.bf16.mxu0 %vm5813_vm0, %v5812_v1 }
  0x2a   : > { %5015 = vmatprep.subr.bf16.mxu0 %v5812_v1  ;;  %5026 = vmatmul.mubr.msk.bf16.vlgmr.msra.gmra.mrb[8].mxu1 %vm668_vm1, %v948_v27 }
  0x2b   : > { %5038 = vmatpush3.bf16.msra.mxu1 %v6053_v31  ;;  %5041 = vmatprep.mubr.msk.bf16.mxu1 %vm5813_vm0, %v5812_v1 }
  0x2c   : > { %5039 = vmatprep.subr.bf16.mxu1 %v5812_v1 }
  0x2d   : > { %5016 = vmatpush3.bf16.msra.mxu0 %v6063_v32 }
  0x2e   : > { %5029 = vmatprep.subr.bf16.mxu0 %v5812_v1 }
  0x2f   : > { %5040 = vmatpush3.bf16.msra.mxu1 %v6075_v35 }
  0x30   : > { %5018 = vmatmul.mubr.msk.bf16.vlgmr.msra.gmra.mrb[8].mxu0 %vm668_vm1, %v6079_v36  ;;  %5053 = vmatprep.subr.bf16.mxu1 %v5812_v1 }
  0x31   : > { %5030 = vmatpush3.bf16.msra.mxu0 %v6086_v37  ;;  %5033 = vmatprep.mubr.msk.bf16.mxu0 %vm5813_vm0, %v5812_v1 }
  0x32   : > { %5031 = vmatprep.subr.bf16.mxu0 %v5812_v1  ;;  %5042 = vmatmul.mubr.msk.bf16.vlgmr.msra.gmra.mrb[12].mxu1 %vm668_vm1, %v6089_v38 }
  0x33   : > { %5055 = vmatprep.mubr.msk.bf16.mxu1 %vm5813_vm0, %v5812_v1  ;;  %5054 = vmatpush3.bf16.msra.mxu1 %v6134_v43 }
  0x34   : > { %5064 = vmatprep.subr.bf16.mxu1 %v5812_v1 }
  0x35   : > { %5032 = vmatpush3.bf16.msra.mxu0 %v6099_v39 }
  0x36   : > { %5045 = vmatprep.subr.bf16.mxu0 %v5812_v1 }
  0x38   : > { %5034 = vmatmul.mubr.msk.bf16.vlgmr.msra.gmra.mrb[12].mxu0 %vm668_vm1, %v6012_v20 }
  0x39   : > { %5046 = vmatpush3.bf16.msra.mxu0 %v6112_v40  ;;  %5049 = vmatprep.mubr.msk.bf16.mxu0 %vm5813_vm0, %v5812_v1 }
  0x3a   : > { %5047 = vmatprep.subr.bf16.mxu0 %v5812_v1 }
  0x3d   : > { %5048 = vmatpush3.bf16.msra.mxu0 %v6121_v41 }
  0x40   : > { %5050 = vmatmul.mubr.msk.bf16.vlgmr.msra.gmra.mrb[16].mxu0 %vm668_vm1, %v6126_v42 }
  0xeb   : > { %v761_v44 = vpop.f32.mrb[0].mxu1 }
  0xec   : > { %v4995_v45 = vpop.f32.mrb[1].mxu1 }
  0xed   : > { %v764_v46 = vpop.f32.mrb[2].mxu1 }
  0xee   : > { %v4996_v47 = vpop.f32.mrb[3].mxu1  ;;  %v6141_v46 = vld [vmem:[%s6866_s4] ss:$0 sm:$0xff] }
  0xf3   : > { %v706_v48 = vpop.f32.mrb[0].mxu0  ;;  %v873_v49 = vpop.f32.mrb[4].mxu1 }
  0xf4   : > { %v762_v50 = vadd.f32 %v761_v44, %v706_v48  ;;  %v4987_v51 = vpop.f32.mrb[1].mxu0  ;;  %v5011_v52 = vpop.f32.mrb[5].mxu1 }
  0xf5   : > { %v709_v53 = vpop.f32.mrb[2].mxu0  ;;  %v876_v54 = vpop.f32.mrb[6].mxu1 }
  0xf6   : > { %v4988_v55 = vpop.f32.mrb[3].mxu0  ;;  %v5012_v56 = vpop.f32.mrb[7].mxu1 }
  0xfb   : > { %v817_v57 = vpop.f32.mrb[4].mxu0 }
  0xfc   : > { %v823_v58 = vadd.f32 %v817_v57, %v762_v50  ;;  %v5003_v59 = vpop.f32.mrb[5].mxu0 }
  0xfd   : > { %v820_v60 = vpop.f32.mrb[6].mxu0  ;;  %v998_v61 = vpop.f32.mrb[8].mxu1 }
  0xfe   : > { %v879_v62 = vadd.f32 %v873_v49, %v823_v58  ;;  %v5004_v63 = vpop.f32.mrb[7].mxu0  ;;  %v5027_v6 = vpop.f32.mrb[9].mxu1  ;;  %v6147_v58 = vld [vmem:[%s6868_s6] sm:$0xff]  }
  0xff   : > { %v1001_v7 = vpop.f32.mrb[10].mxu1  ;;  %v5523_v60 = vld [vmem:[%s6027_s20] sm:$0xff]   ;;  %v6171_v6 = vld [vmem:[%s6874_s12 + $0x8] sm:$0xff] }
 0x100   : > { %v5028_v8 = vpop.f32.mrb[11].mxu1 }
 0x103   : > { %v941_v10 = vpop.f32.mrb[8].mxu0 }
 0x104   : > { %v947_v13 = vadd.f32 %v941_v10, %v879_v62  ;;  %v5019_v14 = vpop.f32.mrb[9].mxu0  ;;  %v621_v62 = vld [vmem:[%s6870_s8] sm:$0x3] }
 0x105   : > { %v944_v16 = vpop.f32.mrb[10].mxu0  ;;  %v1122_v18 = vpop.f32.mrb[12].mxu1  ;;  %v6173_v8 = vsel %vm1421_vm4, %v621_v62, 0  ;;  %v6185_v14 = vld [vmem:[%s6869_s7] ss:$0 sm:$0xff] }
 0x106   : > { %v1004_v19 = vadd.f32 %v998_v61, %v947_v13  ;;  %v5020_v21 = vpop.f32.mrb[11].mxu0  ;;  %v5043_v22 = vpop.f32.mrb[13].mxu1  ;;  %v6161_v61 = vld [vmem:[%s6874_s12] sm:$0xff] }
 0x107   : > { %v1125_v24 = vpop.f32.mrb[14].mxu1  ;;  %5061 = vmatprep.mubr.msk.f32.mxu0 %vm1251_vm3, %v6161_v61 }
 0x108   : > { %v5044_v25 = vpop.f32.mrb[15].mxu1 }
 0x10b   : > { %v1054_v29 = vpop.f32.mrb[12].mxu0 }
 0x10c   : > { %v1060_v30 = vadd.f32 %v1054_v29, %v1004_v19  ;;  %v5035_v33 = vpop.f32.mrb[13].mxu0 }
 0x10d   : > { %v1057_v34 = vpop.f32.mrb[14].mxu0 }
 0x10e   : > { %v1128_v44 = vadd.f32 %v1122_v18, %v1060_v30  ;;  %v5036_v45 = vpop.f32.mrb[15].mxu0 }
 0x113   : > { %v1179_v47 = vpop.f32.mrb[16].mxu0 }
 0x114   : > { %v1185_v48 = vadd.f32 %v1179_v47, %v1128_v44  ;;  %v5051_v49 = vpop.f32.mrb[17].mxu0 }
 0x115   : > { %v1182_v50 = vpop.f32.mrb[18].mxu0 }
 0x116   : > { %v1192_v51 = vadd.f32 %v6141_v46, %v1185_v48  ;;  %v5052_v52 = vpop.f32.mrb[19].mxu0 }
 0x117   : > { %v6201_v52 = vld [vmem:[%s6872_s10] sm:$0xff]  }
 0x118   : > { %v4641_v53 = vmul.f32 -1.442695, %v1192_v51 }
 0x11a   : > { %5535 = vpow2.f32 %v4641_v53 }
 0x124   : > { %v5536_v54 = vpop.eup %5535 }
 0x125   : > { %v1196_v55 = vadd.f32 1.0, %v5536_v54 }
 0x127   : > { %5537 = vrcp.f32 %v1196_v55  ;;  %v6214_v55 = vld [vmem:[%s6871_s9] ss:$0 sm:$0xff] }
 0x131   : > { %v5538_v56 = vpop.eup %5537 }
 0x132   : > { %v1199_v57 = vmul.f32 %v5538_v56, %v1192_v51  ;;  %v5524_v51 = vld [vmem:[%s6027_s20 + $0x8] sm:$0xff]  }
 0x134   : > { %v1200_v59 = vpack.c.bf16 %v1199_v57, %v1199_v57 }
 0x136   : > { %5056 = vmatmul.mubr.msk.bf16.vlgmr.msra.gmra.mrb[16].mxu1 %vm1207_vm2, %v1200_v59 }
 0x137   : > { %5065 = vmatpush3.bf16.msra.mxu1 %v6147_v58  ;;  %5066 = vmatprep.mubr.msk.bf16.mxu1 %vm5813_vm0, %v5812_v1 }
 0x138   : > { %5076 = vmatprep.subr.bf16.mxu1 %v5812_v1 }
 0x13e   : > { %5067 = vmatmul.mubr.msk.bf16.vlgmr.msra.gmra.mrb[20].mxu1 %vm1207_vm2, %v5523_v60 }
 0x13f   : > { %5078 = vmatprep.mubr.msk.bf16.mxu1 %vm5813_vm0, %v5812_v1  ;;  %5077 = vmatpush3.bf16.msra.mxu1 %v6201_v52 }
 0x140   : > { %5088 = vmatprep.subr.bf16.mxu1 %v5812_v1 }
 0x209   : > { %v1245_v63 = vpop.f32.mrb[16].mxu1 }
 0x20a   : > { %v5057_v7 = vpop.f32.mrb[17].mxu1  ;;  %5059 = vmatprep.subr.mxu0 %v1245_v63 }
 0x20b   : > { %v1248_v10 = vpop.f32.mrb[18].mxu1  ;;  %5060 = vmatpush3.msra.mxu0 %v1245_v63 }
 0x20c   : > { %v5058_v13 = vpop.f32.mrb[19].mxu1  ;;  %5062 = vmatmul.mubr.msk.f32.vlgmr.msra.gmra.mrb[20].mxu0 %vm1251_vm3, %v6171_v6  ;;  %5070 = vmatprep.subr.bf16.mxu0 %v5812_v1 }
 0x20d   : > { %5071 = vmatpush3.bf16.msra.mxu0 %v6173_v8  ;;  %5072 = vmatprep.mubr.msk.bf16.mxu0 %vm5813_vm0, %v5812_v1 }
 0x20e   : > { %5082 = vmatprep.subr.bf16.mxu0 %v5812_v1 }
 0x211   : > { %v1389_v16 = vpop.f32.mrb[20].mxu1 }
 0x212   : > { %v1390_v18 = vadd.f32 %v6185_v14, %v1389_v16  ;;  %v5068_v19 = vpop.f32.mrb[21].mxu1 }
 0x213   : > { %v1392_v21 = vpop.f32.mrb[22].mxu1 }
 0x214   : > { %v4650_v22 = vmul.f32 -1.442695, %v1390_v18  ;;  %v1393_v24 = vadd.f32 %v6185_v14, %v1392_v21  ;;  %v5069_v25 = vpop.f32.mrb[23].mxu1 }
 0x216   : > { %5539 = vpow2.f32 %v4650_v22  ;;  %v4651_v29 = vmul.f32 -1.442695, %v1393_v24 }
 0x218   : > { %5541 = vpow2.f32 %v4651_v29 }
 0x220   : > { %v5540_v30 = vpop.eup %5539 }
 0x221   : > { %v1402_v33 = vadd.f32 1.0, %v5540_v30 }
 0x222   : > { %v5542_v34 = vpop.eup %5541 }
 0x223   : > { %5543 = vrcp.f32 %v1402_v33  ;;  %v1403_v44 = vadd.f32 1.0, %v5542_v34 }
 0x225   : > { %5545 = vrcp.f32 %v1403_v44 }
 0x22d   : > { %v5544_v45 = vpop.eup %5543 }
 0x22e   : > { %v1408_v48 = vmul.f32 %v5544_v45, %v1390_v18 }
 0x22f   : > { %v5546_v47 = vpop.eup %5545 }
 0x230   : > { %v1409_v49 = vmul.f32 %v5546_v47, %v1393_v24 }
 0x232   : > { %v1410_v50 = vpack.c.bf16 %v1409_v49, %v1408_v48 }
 0x234   : > { %5073 = vmatmul.mubr.msk.bf16.vlgmr.msra.gmra.mrb[24].mxu0 %vm1417_vm5, %v1410_v50 }
 0x235   : > { %5083 = vmatpush3.bf16.msra.mxu0 %v6147_v58  ;;  %5084 = vmatprep.mubr.msk.bf16.mxu0 %vm5813_vm0, %v5812_v1 }
 0x236   : > { %5094 = vmatprep.subr.bf16.mxu0 %v5812_v1 }
 0x23c   : > { %5085 = vmatmul.mubr.msk.bf16.vlgmr.msra.gmra.mrb[28].mxu0 %vm1207_vm2, %v5524_v51 }
 0x23d   : > { %5096 = vmatprep.mubr.msk.bf16.mxu0 %vm5813_vm0, %v5812_v1  ;;  %5095 = vmatpush3.bf16.msra.mxu0 %v6201_v52 }
 0x23e   : > { %5108 = vmatprep.subr.bf16.mxu0 %v5812_v1 }
 0x2df   : > { %v6207_v53 = vpop.f32.mrb[20].mxu0 }
 0x2e0   : > { %v6209_v54 = vpop.f32.mrb[21].mxu0 }
 0x307   : > { %v1459_v56 = vpop.f32.mrb[24].mxu0 }
 0x308   : > { %v1460_v57 = vadd.f32 %v6214_v55, %v1459_v56  ;;  %v5074_v59 = vpop.f32.mrb[25].mxu0 }
 0x309   : > { %v1462_v60 = vpop.f32.mrb[26].mxu0 }
 0x30a   : > { %v4654_v62 = vmul.f32 -1.442695, %v1460_v57  ;;  %v1463_v63 = vadd.f32 %v6214_v55, %v1462_v60  ;;  %v5075_v7 = vpop.f32.mrb[27].mxu0 }
 0x30c   : > { %5547 = vpow2.f32 %v4654_v62  ;;  %v4655_v10 = vmul.f32 -1.442695, %v1463_v63 }
 0x30e   : > { %5549 = vpow2.f32 %v4655_v10 }
 0x30f   : > { %v1598_v13 = vpop.f32.mrb[28].mxu0 }
 0x310   : > { %v1599_v16 = vadd.f32 %v6185_v14, %v1598_v13  ;;  %v5086_v18 = vpop.f32.mrb[29].mxu0 }
 0x311   : > { %v1601_v19 = vpop.f32.mrb[30].mxu0 }
 0x312   : > { %v4665_v21 = vmul.f32 -1.442695, %v1599_v16  ;;  %v1602_v22 = vadd.f32 %v6185_v14, %v1601_v19  ;;  %v5087_v24 = vpop.f32.mrb[31].mxu0 }
 0x314   : > { %5551 = vpow2.f32 %v4665_v21  ;;  %v4666_v25 = vmul.f32 -1.442695, %v1602_v22 }
 0x316   : > { %v5548_v29 = vpop.eup %5547  ;;  %5553 = vpow2.f32 %v4666_v25 }
 0x317   : > { %v1472_v30 = vadd.f32 1.0, %v5548_v29 }
 0x318   : > { %v5550_v33 = vpop.eup %5549 }
 0x319   : > { %v1473_v34 = vadd.f32 1.0, %v5550_v33  ;;  %5555 = vrcp.f32 %v1472_v30 }
 0x31b   : > { %5557 = vrcp.f32 %v1473_v34 }
 0x31e   : > { %v5552_v44 = vpop.eup %5551 }
 0x31f   : > { %v1611_v45 = vadd.f32 1.0, %v5552_v44 }
 0x320   : > { %v5554_v47 = vpop.eup %5553 }
 0x321   : > { %5559 = vrcp.f32 %v1611_v45  ;;  %v1612_v48 = vadd.f32 1.0, %v5554_v47 }
 0x323   : > { %5561 = vrcp.f32 %v1612_v48  ;;  %v5556_v49 = vpop.eup %5555 }
 0x325   : > { %v5558_v50 = vpop.eup %5557 }
 0x326   : > { %v1478_v51 = vpack.c.bf16 %v5558_v50, %v5556_v49 }
 0x328   : > { %5079 = vmatmul.mubr.msk.bf16.vlgmr.msra.gmra.mrb[24].mxu1 %vm1207_vm2, %v1478_v51 }
 0x329   : > { %5089 = vmatpush3.bf16.msra.mxu1 %v6173_v8  ;;  %5090 = vmatprep.mubr.msk.bf16.mxu1 %vm5813_vm0, %v5812_v1 }
 0x32a   : > { %5100 = vmatprep.subr.bf16.mxu1 %v5812_v1 }
 0x32b   : > { %v5560_v56 = vpop.eup %5559 }
 0x32c   : > { %v1617_v59 = vmul.f32 %v5560_v56, %v1599_v16 }
 0x32d   : > { %v5562_v57 = vpop.eup %5561 }
 0x32e   : > { %v1618_v60 = vmul.f32 %v5562_v57, %v1602_v22 }
 0x330   : > { %v1619_v62 = vpack.c.bf16 %v1618_v60, %v1617_v59 }
 0x332   : > { %5091 = vmatmul.mubr.msk.bf16.vlgmr.msra.gmra.mrb[28].mxu1 %vm1417_vm5, %v1619_v62 }
 0x333   : > { %5101 = vmatpush3.bf16.msra.mxu1 %v5921_v0  ;;  %5104 = vmatprep.mubr.msk.bf16.mxu1 %vm5813_vm0, %v5812_v1  ;;  %v6258_v0 = vld [vmem:[%s5973_s14 + $0x18] sm:$0xf] }
 0x334   : > { %5102 = vmatprep.subr.bf16.mxu1 %v5812_v1 }
 0x337   : > { %5103 = vmatpush3.bf16.msra.mxu1 %v5934_v3  ;;  %v4607_v3 = vld [vmem:[%s5973_s14 + $0x1c] sm:$0x1] }
 0x338   : > { %5116 = vmatprep.subr.bf16.mxu1 %v5812_v1  ;;  %v6268_v12 = vcombine.low %v6258_v0, %v4607_v3 }
 0x33a   : > { %5105 = vmatmul.mubr.msk.bf16.vlgmr.msra.gmra.mrb[32].mxu1 %vm668_vm1, %v6079_v36 }
 0x33b   : > { %5117 = vmatpush3.bf16.msra.mxu1 %v6000_v15  ;;  %5120 = vmatprep.mubr.msk.bf16.mxu1 %vm5813_vm0, %v5812_v1  ;;  %v6272_v15 = vrot.slane %v6268_v12, 1 }
 0x33c   : > { %5118 = vmatprep.subr.bf16.mxu1 %v5812_v1 }
 0x33f   : > { %5119 = vmatpush3.bf16.msra.mxu1 %v6020_v23  ;;  %v6281_v23 = vld [vmem:[%s6873_s11] ss:$0 sm:$0xff] }
 0x340   : > { %5132 = vmatprep.subr.bf16.mxu1 %v5812_v1 }
 0x342   : > { %5121 = vmatmul.mubr.msk.bf16.vlgmr.msra.gmra.mrb[36].mxu1 %vm668_vm1, %v948_v27 }
 0x343   : > { %5133 = vmatpush3.bf16.msra.mxu1 %v6044_v28  ;;  %5136 = vmatprep.mubr.msk.bf16.mxu1 %vm5813_vm0, %v5812_v1 }
 0x344   : > { %5134 = vmatprep.subr.bf16.mxu1 %v5812_v1 }
 0x347   : > { %5135 = vmatpush3.bf16.msra.mxu1 %v6063_v32 }
 0x348   : > { %5148 = vmatprep.subr.bf16.mxu1 %v5812_v1 }
 0x34a   : > { %5137 = vmatmul.mubr.msk.bf16.vlgmr.msra.gmra.mrb[40].mxu1 %vm668_vm1, %v6089_v38 }
 0x34b   : > { %5149 = vmatpush3.bf16.msra.mxu1 %v6086_v37  ;;  %5152 = vmatprep.mubr.msk.bf16.mxu1 %vm5813_vm0, %v5812_v1 }
 0x34c   : > { %5150 = vmatprep.subr.bf16.mxu1 %v5812_v1 }
 0x34f   : > { %5151 = vmatpush3.bf16.msra.mxu1 %v6099_v39 }
 0x350   : > { %5164 = vmatprep.subr.bf16.mxu1 %v5812_v1 }
 0x352   : > { %5153 = vmatmul.mubr.msk.bf16.vlgmr.msra.gmra.mrb[44].mxu1 %vm668_vm1, %v6258_v0 }
 0x353   : > { %5165 = vmatpush3.bf16.msra.mxu1 %v6112_v40  ;;  %5168 = vmatprep.mubr.msk.bf16.mxu1 %vm5813_vm0, %v5812_v1 }
 0x354   : > { %5166 = vmatprep.subr.bf16.mxu1 %v5812_v1 }
 0x357   : > { %5167 = vmatpush3.bf16.msra.mxu1 %v6121_v41 }
 0x35a   : > { %5169 = vmatmul.mubr.msk.bf16.vlgmr.msra.gmra.mrb[48].mxu1 %vm668_vm1, %v6272_v15 }
 0x35b   : > { %5180 = vmatprep.mubr.msk.f32.mxu1 %vm1251_vm3, %v6161_v61 }
 0x3fb   : > { %v1522_v27 = vpop.f32.mrb[24].mxu1 }
 0x3fc   : > { %v1523_v28 = vadd.f32 %v1522_v27, %v6209_v54  ;;  %v5080_v36 = vpop.f32.mrb[25].mxu1 }
 0x3fd   : > { %v1525_v63 = vpop.f32.mrb[26].mxu1 }
 0x3fe   : > { %v1535_v7 = vadd.f32 %v6281_v23, %v1523_v28  ;;  %v1526_v10 = vadd.f32 %v6207_v53, %v1525_v63  ;;  %v5081_v13 = vpop.f32.mrb[27].mxu1 }
 0x400   : > { %v4659_v16 = vmul.f32 -1.442695, %v1535_v7  ;;  %v1536_v18 = vadd.f32 %v6281_v23, %v1526_v10 }
 0x402   : > { %5563 = vpow2.f32 %v4659_v16  ;;  %v4660_v19 = vmul.f32 -1.442695, %v1536_v18 }
 0x404   : > { %5565 = vpow2.f32 %v4660_v19 }
 0x405   : > { %v1657_v21 = vpop.f32.mrb[28].mxu1 }
 0x406   : > { %v1658_v22 = vadd.f32 %v6214_v55, %v1657_v21  ;;  %v5092_v24 = vpop.f32.mrb[29].mxu1 }
 0x407   : > { %v1660_v25 = vpop.f32.mrb[30].mxu1 }
 0x408   : > { %v4668_v29 = vmul.f32 -1.442695, %v1658_v22  ;;  %v1661_v30 = vadd.f32 %v6214_v55, %v1660_v25  ;;  %v5093_v33 = vpop.f32.mrb[31].mxu1 }
 0x40a   : > { %5567 = vpow2.f32 %v4668_v29  ;;  %v4669_v34 = vmul.f32 -1.442695, %v1661_v30 }
 0x40c   : > { %v5564_v44 = vpop.eup %5563  ;;  %5569 = vpow2.f32 %v4669_v34 }
 0x40d   : > { %v1543_v45 = vadd.f32 1.0, %v5564_v44  ;;  %v6289_v47 = vpop.f32.mrb[32].mxu1 }
 0x40e   : > { %v5566_v48 = vpop.eup %5565  ;;  %v5106_v49 = vpop.f32.mrb[33].mxu1 }
 0x40f   : > { %5571 = vrcp.f32 %v1543_v45  ;;  %v1544_v50 = vadd.f32 1.0, %v5566_v48  ;;  %v1777_v51 = vpop.f32.mrb[34].mxu1 }
 0x410   : > { %v5107_v56 = vpop.f32.mrb[35].mxu1 }
 0x411   : > { %5573 = vrcp.f32 %v1544_v50 }
 0x414   : > { %v5568_v57 = vpop.eup %5567 }
 0x415   : > { %v1670_v59 = vadd.f32 1.0, %v5568_v57 }
 0x416   : > { %v5570_v60 = vpop.eup %5569 }
 0x417   : > { %v1671_v62 = vadd.f32 1.0, %v5570_v60  ;;  %5575 = vrcp.f32 %v1670_v59 }
 0x419   : > { %v5572_v3 = vpop.eup %5571  ;;  %5577 = vrcp.f32 %v1671_v62 }
 0x41a   : > { %v1549_v27 = vmul.f32 %v5572_v3, %v1535_v7 }
 0x41b   : > { %v5574_v28 = vpop.eup %5573 }
 0x41c   : > { %1551 = vst.msk [vmem:[%s6295_s24] sm:$0xff] %vm1207_vm2, %v1549_v27  ;;  %v1550_v36 = vmul.f32 %v5574_v28, %v1536_v18 }
 0x41e   : > { %1552 = vst.msk [vmem:[%s6295_s24 + $0x8] sm:$0xff] %vm1207_vm2, %v1550_v36 }
 0x421   : > { %v5576_v63 = vpop.eup %5575 }
 0x423   : > { %v5578_v10 = vpop.eup %5577 }
 0x424   : > { %v1676_v13 = vpack.c.bf16 %v5578_v10, %v5576_v63 }
 0x426   : > { %5097 = vmatmul.mubr.msk.bf16.vlgmr.msra.gmra.mrb[32].mxu0 %vm1207_vm2, %v1676_v13 }
 0x427   : > { %5109 = vmatpush3.bf16.msra.mxu0 %v5928_v2  ;;  %5112 = vmatprep.mubr.msk.bf16.mxu0 %vm5813_vm0, %v5812_v1  ;;  %v2036_v2 = vshll.u32 %v6268_v12, 16 }
 0x428   : > { %5110 = vmatprep.subr.bf16.mxu0 %v5812_v1 }
 0x42b   : > { %5111 = vmatpush3.bf16.msra.mxu0 %v5946_v4  ;;  %v2034_v4 = vshrl.u32 %v6268_v12, 16 }
 0x42c   : > { %5124 = vmatprep.subr.bf16.mxu0 %v5812_v1 }
 0x42e   : > { %5113 = vmatmul.mubr.msk.bf16.vlgmr.msra.gmra.mrb[36].mxu0 %vm668_vm1, %v5980_v9 }
 0x42f   : > { %5125 = vmatpush3.bf16.msra.mxu0 %v5968_v5  ;;  %5128 = vmatprep.mubr.msk.bf16.mxu0 %vm5813_vm0, %v5812_v1  ;;  %v2038_v5 = vrot.slane %v2036_v2, 1 }
 0x430   : > { %5126 = vmatprep.subr.bf16.mxu0 %v5812_v1 }
 0x431   : > { %v6332_v9 = vor.u32 %v2038_v5, %v2034_v4 }
 0x433   : > { %5127 = vmatpush3.bf16.msra.mxu0 %v5987_v11  ;;  %v1854_v11 = vpop.f32.mrb[36].mxu1 }
 0x434   : > { %5140 = vmatprep.subr.bf16.mxu0 %v5812_v1 }
 0x436   : > { %5129 = vmatmul.mubr.msk.bf16.vlgmr.msra.gmra.mrb[40].mxu0 %vm668_vm1, %v6012_v20 }
 0x437   : > { %5141 = vmatpush3.bf16.msra.mxu0 %v6005_v17  ;;  %5144 = vmatprep.mubr.msk.bf16.mxu0 %vm5813_vm0, %v5812_v1  ;;  %v5122_v17 = vpop.f32.mrb[37].mxu1 }
 0x438   : > { %5142 = vmatprep.subr.bf16.mxu0 %v5812_v1  ;;  %v1857_v20 = vpop.f32.mrb[38].mxu1 }
 0x43b   : > { %5143 = vmatpush3.bf16.msra.mxu0 %v6036_v26  ;;  %v5123_v26 = vpop.f32.mrb[39].mxu1 }
 0x43c   : > { %5156 = vmatprep.subr.bf16.mxu0 %v5812_v1 }
 0x43e   : > { %5145 = vmatmul.mubr.msk.bf16.vlgmr.msra.gmra.mrb[44].mxu0 %vm668_vm1, %v6126_v42 }
 0x43f   : > { %5157 = vmatpush3.bf16.msra.mxu0 %v6053_v31  ;;  %5160 = vmatprep.mubr.msk.bf16.mxu0 %vm5813_vm0, %v5812_v1  ;;  %v1936_v31 = vpop.f32.mrb[40].mxu1 }
 0x440   : > { %5158 = vmatprep.subr.bf16.mxu0 %v5812_v1  ;;  %v5138_v12 = vpop.f32.mrb[41].mxu1 }
 0x441   : > { %v1939_v7 = vpop.f32.mrb[42].mxu1 }
 0x443   : > { %5159 = vmatpush3.bf16.msra.mxu0 %v6075_v35  ;;  %v5139_v35 = vpop.f32.mrb[43].mxu1 }
 0x444   : > { %5172 = vmatprep.subr.bf16.mxu0 %v5812_v1  ;;  %v2021_v16 = vpop.f32.mrb[44].mxu1 }
 0x445   : > { %v5154_v18 = vpop.f32.mrb[45].mxu1 }
 0x446   : > { %5161 = vmatmul.mubr.msk.bf16.vlgmr.msra.gmra.mrb[48].mxu0 %vm668_vm1, %v6332_v9  ;;  %v2024_v19 = vpop.f32.mrb[46].mxu1 }
 0x447   : > { %5173 = vmatpush3.bf16.msra.mxu0 %v6134_v43  ;;  %5174 = vmatprep.mubr.msk.bf16.mxu0 %vm5813_vm0, %v5812_v1  ;;  %v5155_v21 = vpop.f32.mrb[47].mxu1 }
 0x448   : > { %5183 = vmatprep.subr.bf16.mxu0 %v5812_v1  ;;  %v2122_v22 = vpop.f32.mrb[48].mxu1 }
 0x449   : > { %v5170_v24 = vpop.f32.mrb[49].mxu1 }
 0x44a   : > { %v2125_v43 = vpop.f32.mrb[50].mxu1 }
 0x44b   : > { %v5171_v25 = vpop.f32.mrb[51].mxu1 }
 0x4f9   : > { %v1714_v29 = vpop.f32.mrb[32].mxu0 }
 0x4fa   : > { %v1715_v30 = vadd.f32 %v1714_v29, %v6209_v54  ;;  %v5098_v33 = vpop.f32.mrb[33].mxu0 }
 0x4fb   : > { %v1717_v34 = vpop.f32.mrb[34].mxu0 }
 0x4fc   : > { %v1721_v44 = vadd.f32 %v6281_v23, %v1715_v30  ;;  %v1718_v45 = vadd.f32 %v6207_v53, %v1717_v34  ;;  %v5099_v48 = vpop.f32.mrb[35].mxu0 }
 0x4fe   : > { %v4671_v49 = vmul.f32 -1.442695, %v1721_v44  ;;  %v1722_v50 = vadd.f32 %v6281_v23, %v1718_v45 }
 0x500   : > { %5579 = vpow2.f32 %v4671_v49  ;;  %v4672_v51 = vmul.f32 -1.442695, %v1722_v50 }
 0x501   : > { %v1814_v56 = vpop.f32.mrb[36].mxu0 }
 0x502   : > { %5581 = vpow2.f32 %v4672_v51  ;;  %v1815_v57 = vadd.f32 %v1814_v56, %v6289_v47  ;;  %v5114_v59 = vpop.f32.mrb[37].mxu0 }
 0x503   : > { %v1817_v60 = vpop.f32.mrb[38].mxu0 }
 0x504   : > { %v5115_v62 = vpop.f32.mrb[39].mxu0  ;;  %v1860_v54 = vadd.f32 %v1854_v11, %v1815_v57 }
 0x509   : > { %v1895_v3 = vpop.f32.mrb[40].mxu0 }
 0x50a   : > { %v5580_v27 = vpop.eup %5579  ;;  %v1901_v28 = vadd.f32 %v1895_v3, %v1860_v54  ;;  %v5130_v36 = vpop.f32.mrb[41].mxu0 }
 0x50b   : > { %v1729_v63 = vadd.f32 1.0, %v5580_v27  ;;  %v1898_v53 = vpop.f32.mrb[42].mxu0 }
 0x50c   : > { %v5582_v10 = vpop.eup %5581  ;;  %v5131_v13 = vpop.f32.mrb[43].mxu0  ;;  %v1942_v2 = vadd.f32 %v1936_v31, %v1901_v28 }
 0x50d   : > { %5583 = vrcp.f32 %v1729_v63  ;;  %v1730_v4 = vadd.f32 1.0, %v5582_v10 }
 0x50f   : > { %5585 = vrcp.f32 %v1730_v4  ;;  %v5528_v4 = vld [vmem:[%s6027_s20 + $0x18] sm:$0xff]  }
 0x511   : > { %v1977_v5 = vpop.f32.mrb[44].mxu0 }
 0x512   : > { %v1983_v47 = vadd.f32 %v1977_v5, %v1942_v2  ;;  %v5146_v17 = vpop.f32.mrb[45].mxu0 }
 0x513   : > { %v1980_v20 = vpop.f32.mrb[46].mxu0 }
 0x514   : > { %v5147_v26 = vpop.f32.mrb[47].mxu0  ;;  %v2027_v11 = vadd.f32 %v2021_v16, %v1983_v47 }
 0x517   : > { %v5584_v12 = vpop.eup %5583 }
 0x518   : > { %v1735_v7 = vmul.f32 %v5584_v12, %v1721_v44 }
 0x519   : > { %v5586_v35 = vpop.eup %5585  ;;  %v2077_v18 = vpop.f32.mrb[48].mxu0 }
 0x51a   : > { %4673 = vst.msk [vmem:[%s6295_s24 + $0x10] sm:$0xff] %vm1207_vm2, %v1735_v7  ;;  %v1736_v19 = vmul.f32 %v5586_v35, %v1722_v50  ;;  %v2083_v21 = vadd.f32 %v2077_v18, %v2027_v11  ;;  %v5162_v24 = vpop.f32.mrb[49].mxu0 }
 0x51b   : > { %v2080_v31 = vpop.f32.mrb[50].mxu0 }
 0x51c   : > { %4674 = vst.msk [vmem:[%s6295_s24 + $0x18] sm:$0xff] %vm1207_vm2, %v1736_v19  ;;  %v2128_v43 = vadd.f32 %v2122_v22, %v2083_v21  ;;  %v5163_v25 = vpop.f32.mrb[51].mxu0  ;;  %v5527_v22 = vld [vmem:[%s6027_s20 + $0x10] sm:$0xff]  }
 0x51e   : > { %v2129_v29 = vadd.f32 %v6141_v46, %v2128_v43 }
 0x520   : > { %v4685_v30 = vmul.f32 -1.442695, %v2129_v29 }
 0x522   : > { %5587 = vpow2.f32 %v4685_v30 }
 0x52c   : > { %v5588_v16 = vpop.eup %5587 }
 0x52d   : > { %v2133_v33 = vadd.f32 1.0, %v5588_v16 }
 0x52f   : > { %5589 = vrcp.f32 %v2133_v33 }
 0x539   : > { %v5590_v34 = vpop.eup %5589 }
 0x53a   : > { %v2136_v44 = vmul.f32 %v5590_v34, %v2129_v29 }
 0x53c   : > { %v2137_v45 = vpack.c.bf16 %v2136_v44, %v2136_v44 }
 0x53e   : > { %5175 = vmatmul.mubr.msk.bf16.vlgmr.msra.gmra.mrb[52].mxu0 %vm1207_vm2, %v2137_v45 }
 0x53f   : > { %5184 = vmatpush3.bf16.msra.mxu0 %v6147_v58  ;;  %5185 = vmatprep.mubr.msk.bf16.mxu0 %vm5813_vm0, %v5812_v1 }
 0x540   : > { %5195 = vmatprep.subr.bf16.mxu0 %v5812_v1 }
 0x546   : > { %5186 = vmatmul.mubr.msk.bf16.vlgmr.msra.gmra.mrb[56].mxu0 %vm1207_vm2, %v5527_v22 }
 0x547   : > { %5196 = vmatpush3.bf16.msra.mxu0 %v6201_v52  ;;  %5197 = vmatprep.mubr.msk.bf16.mxu0 %vm5813_vm0, %v5812_v1 }
 0x548   : > { %5207 = vmatprep.subr.bf16.mxu0 %v5812_v1 }
 0x611   : > { %v2175_v46 = vpop.f32.mrb[52].mxu0 }
 0x612   : > { %v5176_v48 = vpop.f32.mrb[53].mxu0  ;;  %5178 = vmatprep.subr.mxu1 %v2175_v46 }
 0x613   : > { %v2178_v49 = vpop.f32.mrb[54].mxu0  ;;  %5179 = vmatpush3.msra.mxu1 %v2175_v46 }
 0x614   : > { %v5177_v50 = vpop.f32.mrb[55].mxu0  ;;  %5181 = vmatmul.mubr.msk.f32.vlgmr.msra.gmra.mrb[52].mxu1 %vm1251_vm3, %v6171_v6  ;;  %5189 = vmatprep.subr.bf16.mxu1 %v5812_v1 }
 0x615   : > { %5190 = vmatpush3.bf16.msra.mxu1 %v6173_v8  ;;  %5191 = vmatprep.mubr.msk.bf16.mxu1 %vm5813_vm0, %v5812_v1 }
 0x616   : > { %5201 = vmatprep.subr.bf16.mxu1 %v5812_v1 }
 0x619   : > { %v2301_v51 = vpop.f32.mrb[56].mxu0 }
 0x61a   : > { %v2302_v56 = vadd.f32 %v6185_v14, %v2301_v51  ;;  %v5187_v57 = vpop.f32.mrb[57].mxu0 }
 0x61b   : > { %v2304_v59 = vpop.f32.mrb[58].mxu0 }
 0x61c   : > { %v4693_v60 = vmul.f32 -1.442695, %v2302_v56  ;;  %v2305_v62 = vadd.f32 %v6185_v14, %v2304_v59  ;;  %v5188_v54 = vpop.f32.mrb[59].mxu0  ;;  %v6400_v59 = vld [vmem:[%s6865_s3 + $0x10] sm:$0xff]  }
 0x61d   : > { %v6427_v54 = vld [vmem:[%s6865_s3 + $0x28] sm:$0xff]  }
 0x61e   : > { %5591 = vpow2.f32 %v4693_v60  ;;  %v4694_v6 = vmul.f32 -1.442695, %v2305_v62  ;;  %v6409_v60 = vld [vmem:[%s6865_s3 + $0x18] sm:$0xff]  }
 0x620   : > { %5593 = vpow2.f32 %v4694_v6 }
 0x628   : > { %v5592_v3 = vpop.eup %5591 }
 0x629   : > { %v2314_v27 = vadd.f32 1.0, %v5592_v3 }
 0x62a   : > { %v5594_v28 = vpop.eup %5593 }
 0x62b   : > { %5595 = vrcp.f32 %v2314_v27  ;;  %v2315_v36 = vadd.f32 1.0, %v5594_v28 }
 0x62d   : > { %5597 = vrcp.f32 %v2315_v36 }
 0x635   : > { %v5596_v63 = vpop.eup %5595 }
 0x636   : > { %v2320_v10 = vmul.f32 %v5596_v63, %v2302_v56 }
 0x637   : > { %v5598_v53 = vpop.eup %5597 }
 0x638   : > { %v2321_v13 = vmul.f32 %v5598_v53, %v2305_v62  ;;  %v6418_v62 = vld [vmem:[%s6865_s3 + $0x20] sm:$0xff]  }
 0x63a   : > { %v2322_v2 = vpack.c.bf16 %v2321_v13, %v2320_v10 }
 0x63c   : > { %5192 = vmatmul.mubr.msk.bf16.vlgmr.msra.gmra.mrb[56].mxu1 %vm1417_vm5, %v2322_v2 }
 0x63d   : > { %5202 = vmatpush3.bf16.msra.mxu1 %v6147_v58  ;;  %5203 = vmatprep.mubr.msk.bf16.mxu1 %vm5813_vm0, %v5812_v1 }
 0x63e   : > { %5213 = vmatprep.subr.bf16.mxu1 %v5812_v1 }
 0x644   : > { %5204 = vmatmul.mubr.msk.bf16.vlgmr.msra.gmra.mrb[60].mxu1 %vm1207_vm2, %v5528_v4 }
 0x645   : > { %5214 = vmatpush3.bf16.msra.mxu1 %v6201_v52  ;;  %5215 = vmatprep.mubr.msk.bf16.mxu1 %vm5813_vm0, %v5812_v1 }
 0x646   : > { %5227 = vmatprep.subr.bf16.mxu1 %v5812_v1 }
 0x6e7   : > { %v6383_v5 = vpop.f32.mrb[52].mxu1 }
 0x6e8   : > { %v6385_v47 = vpop.f32.mrb[53].mxu1 }
 0x70f   : > { %v2360_v58 = vpop.f32.mrb[56].mxu1 }
 0x710   : > { %v2361_v17 = vadd.f32 %v6214_v55, %v2360_v58  ;;  %v5193_v20 = vpop.f32.mrb[57].mxu1 }
 0x711   : > { %v2363_v26 = vpop.f32.mrb[58].mxu1 }
 0x712   : > { %v4696_v11 = vmul.f32 -1.442695, %v2361_v17  ;;  %v2364_v12 = vadd.f32 %v6214_v55, %v2363_v26  ;;  %v5194_v7 = vpop.f32.mrb[59].mxu1 }
 0x714   : > { %5599 = vpow2.f32 %v4696_v11  ;;  %v4697_v52 = vmul.f32 -1.442695, %v2364_v12 }
 0x716   : > { %5601 = vpow2.f32 %v4697_v52 }
 0x717   : > { %v2488_v35 = vpop.f32.mrb[60].mxu1 }
 0x718   : > { %v2489_v18 = vadd.f32 %v6185_v14, %v2488_v35  ;;  %v5205_v19 = vpop.f32.mrb[61].mxu1 }
 0x719   : > { %v2491_v21 = vpop.f32.mrb[62].mxu1 }
 0x71a   : > { %v4707_v24 = vmul.f32 -1.442695, %v2489_v18  ;;  %v2492_v31 = vadd.f32 %v6185_v14, %v2491_v21  ;;  %v5206_v43 = vpop.f32.mrb[63].mxu1 }
 0x71c   : > { %5603 = vpow2.f32 %v4707_v24  ;;  %v4708_v25 = vmul.f32 -1.442695, %v2492_v31 }
 0x71e   : > { %v5600_v29 = vpop.eup %5599  ;;  %5605 = vpow2.f32 %v4708_v25 }
 0x71f   : > { %v2373_v30 = vadd.f32 1.0, %v5600_v29 }
 0x720   : > { %v5602_v16 = vpop.eup %5601 }
 0x721   : > { %v2374_v33 = vadd.f32 1.0, %v5602_v16  ;;  %5607 = vrcp.f32 %v2373_v30 }
 0x723   : > { %5609 = vrcp.f32 %v2374_v33 }
 0x726   : > { %v5604_v34 = vpop.eup %5603 }
 0x727   : > { %v2501_v44 = vadd.f32 1.0, %v5604_v34 }
 0x728   : > { %v5606_v45 = vpop.eup %5605 }
 0x729   : > { %5611 = vrcp.f32 %v2501_v44  ;;  %v2502_v22 = vadd.f32 1.0, %v5606_v45  ;;  %v6496_v45 = vld [vmem:[%s6865_s3] sm:$0xff]  }
 0x72b   : > { %5613 = vrcp.f32 %v2502_v22  ;;  %v5608_v46 = vpop.eup %5607  ;;  %v6505_v22 = vld [vmem:[%s6865_s3 + $0x8] sm:$0xff]  }
 0x72d   : > { %v5610_v48 = vpop.eup %5609 }
 0x72e   : > { %v2379_v49 = vpack.c.bf16 %v5610_v48, %v5608_v46  ;;  %v5750_v46 = vld [vmem:[%s5973_s14 + $0x10] sm:$0xf] }
 0x72f   : > { %v6514_v48 = vld [vmem:[%s6865_s3 + $0x30] sm:$0xff]  }
 0x730   : > { %5198 = vmatmul.mubr.msk.bf16.vlgmr.msra.gmra.mrb[60].mxu0 %vm1207_vm2, %v2379_v49  ;;  %v6523_v49 = vld [vmem:[%s6865_s3 + $0x38] sm:$0xff]  }
 0x731   : > { %5208 = vmatpush3.bf16.msra.mxu0 %v6173_v8  ;;  %5209 = vmatprep.mubr.msk.bf16.mxu0 %vm5813_vm0, %v5812_v1 }
 0x732   : > { %5219 = vmatprep.subr.bf16.mxu0 %v5812_v1 }
 0x733   : > { %v5612_v14 = vpop.eup %5611 }
 0x734   : > { %v2507_v51 = vmul.f32 %v5612_v14, %v2489_v18  ;;  %v6532_v14 = vld [vmem:[%s6865_s3 + $0x50] sm:$0xff]  }
 0x735   : > { %v5614_v50 = vpop.eup %5613 }
 0x736   : > { %v2508_v56 = vmul.f32 %v5614_v50, %v2492_v31 }
 0x738   : > { %v2509_v57 = vpack.c.bf16 %v2508_v56, %v2507_v51  ;;  %v6542_v51 = vld [vmem:[%s6865_s3 + $0x58] sm:$0xff]  }
 0x73a   : > { %5210 = vmatmul.mubr.msk.bf16.vlgmr.msra.gmra.mrb[64].mxu0 %vm1417_vm5, %v2509_v57  ;;  %v6552_v57 = vld [vmem:[%s6865_s3 + $0x70] sm:$0xff]  }
 0x73b   : > { %5220 = vmatpush3.bf16.msra.mxu0 %v6400_v59  ;;  %5223 = vmatprep.mubr.msk.bf16.mxu0 %vm5813_vm0, %v5812_v1 }
 0x73c   : > { %5221 = vmatprep.subr.bf16.mxu0 %v5812_v1 }
 0x73f   : > { %5222 = vmatpush3.bf16.msra.mxu0 %v6409_v60 }
 0x740   : > { %5235 = vmatprep.subr.bf16.mxu0 %v5812_v1 }
 0x742   : > { %5224 = vmatmul.mubr.msk.bf16.vlgmr.msra.gmra.mrb[68].mxu0 %vm668_vm1, %v6089_v38  ;;  %v6436_v38 = vld [vmem:[%s6865_s3 + $0x40] sm:$0xff]  }
 0x743   : > { %5236 = vmatpush3.bf16.msra.mxu0 %v6418_v62  ;;  %5239 = vmatprep.mubr.msk.bf16.mxu0 %vm5813_vm0, %v5812_v1 }
 0x744   : > { %5237 = vmatprep.subr.bf16.mxu0 %v5812_v1 }
 0x747   : > { %5238 = vmatpush3.bf16.msra.mxu0 %v6427_v54 }
 0x748   : > { %5251 = vmatprep.subr.bf16.mxu0 %v5812_v1 }
 0x74a   : > { %5240 = vmatmul.mubr.msk.bf16.vlgmr.msra.gmra.mrb[72].mxu0 %vm668_vm1, %v6126_v42 }
 0x74b   : > { %5252 = vmatpush3.bf16.msra.mxu0 %v6436_v38  ;;  %5255 = vmatprep.mubr.msk.bf16.mxu0 %vm5813_vm0, %v5812_v1 }
 0x74c   : > { %5253 = vmatprep.subr.bf16.mxu0 %v5812_v1 }
 0x74f   : > { %5254 = vmatpush3.bf16.msra.mxu0 %v6063_v32  ;;  %v6461_v32 = vld [vmem:[%s6458_s23] sm:$0xf] }
 0x750   : > { %5267 = vmatprep.subr.bf16.mxu0 %v5812_v1 }
 0x752   : > { %5256 = vmatmul.mubr.msk.bf16.vlgmr.msra.gmra.mrb[76].mxu0 %vm668_vm1, %v6332_v9 }
 0x753   : > { %5268 = vmatpush3.bf16.msra.mxu0 %v6086_v37  ;;  %5271 = vmatprep.mubr.msk.bf16.mxu0 %vm5813_vm0, %v5812_v1  ;;  %v640_v37 = vld [vmem:[%s6458_s23 + $0x4] sm:$0x1] }
 0x754   : > { %5269 = vmatprep.subr.bf16.mxu0 %v5812_v1 }
 0x757   : > { %5270 = vmatpush3.bf16.msra.mxu0 %v6099_v39  ;;  %v6471_v39 = vcombine.low %v6461_v32, %v640_v37 }
 0x758   : > { %5283 = vmatprep.subr.bf16.mxu0 %v5812_v1 }
 0x759   : > { %v2974_v42 = vrot.slane %v6471_v39, 1  ;;  %v2926_v50 = vshll.u32 %v6471_v39, 16 }
 0x75a   : > { %5272 = vmatmul.mubr.msk.bf16.vlgmr.msra.gmra.mrb[80].mxu0 %vm668_vm1, %v6461_v32 }
 0x75b   : > { %5284 = vmatpush3.bf16.msra.mxu0 %v6112_v40  ;;  %5287 = vmatprep.mubr.msk.bf16.mxu0 %vm5813_vm0, %v5812_v1  ;;  %v2928_v56 = vrot.slane %v2926_v50, 1 }
 0x75c   : > { %5285 = vmatprep.subr.bf16.mxu0 %v5812_v1 }
 0x75f   : > { %5286 = vmatpush3.bf16.msra.mxu0 %v6121_v41 }
 0x762   : > { %5288 = vmatmul.mubr.msk.bf16.vlgmr.msra.gmra.mrb[84].mxu0 %vm668_vm1, %v2974_v42 }
 0x763   : > { %5299 = vmatprep.mubr.msk.f32.mxu0 %vm1251_vm3, %v6161_v61 }
 0x803   : > { %v2417_v40 = vpop.f32.mrb[60].mxu0 }
 0x804   : > { %v2418_v6 = vadd.f32 %v2417_v40, %v6385_v47  ;;  %v5199_v3 = vpop.f32.mrb[61].mxu0  ;;  %v6563_v40 = vld [vmem:[%s6865_s3 + $0x78] sm:$0xff]  }
 0x805   : > { %v2420_v27 = vpop.f32.mrb[62].mxu0 }
 0x806   : > { %v2424_v28 = vadd.f32 %v6281_v23, %v2418_v6  ;;  %v2421_v36 = vadd.f32 %v6383_v5, %v2420_v27  ;;  %v5200_v63 = vpop.f32.mrb[63].mxu0  ;;  %v6572_v6 = vld [vmem:[%s6867_s5] sm:$0xff]  }
 0x808   : > { %v4699_v41 = vmul.f32 -1.442695, %v2424_v28  ;;  %v2425_v53 = vadd.f32 %v6281_v23, %v2421_v36 }
 0x80a   : > { %5615 = vpow2.f32 %v4699_v41  ;;  %v4700_v10 = vmul.f32 -1.442695, %v2425_v53 }
 0x80c   : > { %5617 = vpow2.f32 %v4700_v10 }
 0x80d   : > { %v2547_v13 = vpop.f32.mrb[64].mxu0 }
 0x80e   : > { %v2548_v2 = vadd.f32 %v6214_v55, %v2547_v13  ;;  %v5211_v61 = vpop.f32.mrb[65].mxu0 }
 0x80f   : > { %v2550_v4 = vpop.f32.mrb[66].mxu0 }
 0x810   : > { %v4710_v58 = vmul.f32 -1.442695, %v2548_v2  ;;  %v2551_v17 = vadd.f32 %v6214_v55, %v2550_v4  ;;  %v5212_v20 = vpop.f32.mrb[67].mxu0 }
 0x812   : > { %5619 = vpow2.f32 %v4710_v58  ;;  %v4711_v26 = vmul.f32 -1.442695, %v2551_v17 }
 0x814   : > { %v5616_v11 = vpop.eup %5615  ;;  %5621 = vpow2.f32 %v4711_v26 }
 0x815   : > { %v2432_v12 = vadd.f32 1.0, %v5616_v11  ;;  %v6486_v7 = vpop.f32.mrb[68].mxu0 }
 0x816   : > { %v5618_v52 = vpop.eup %5617  ;;  %v5225_v35 = vpop.f32.mrb[69].mxu0 }
 0x817   : > { %5623 = vrcp.f32 %v2432_v12  ;;  %v2433_v18 = vadd.f32 1.0, %v5618_v52  ;;  %v2667_v19 = vpop.f32.mrb[70].mxu0 }
 0x818   : > { %v5226_v21 = vpop.f32.mrb[71].mxu0 }
 0x819   : > { %5625 = vrcp.f32 %v2433_v18 }
 0x81c   : > { %v5620_v24 = vpop.eup %5619 }
 0x81d   : > { %v2560_v31 = vadd.f32 1.0, %v5620_v24  ;;  %v2744_v3 = vpop.f32.mrb[72].mxu0 }
 0x81e   : > { %v5622_v55 = vpop.eup %5621  ;;  %v5241_v27 = vpop.f32.mrb[73].mxu0 }
 0x81f   : > { %v2561_v43 = vadd.f32 1.0, %v5622_v55  ;;  %5627 = vrcp.f32 %v2560_v31 }
 0x821   : > { %v5624_v25 = vpop.eup %5623  ;;  %5629 = vrcp.f32 %v2561_v43 }
 0x822   : > { %v2438_v29 = vmul.f32 %v5624_v25, %v2424_v28  ;;  %v2747_v28 = vpop.f32.mrb[74].mxu0 }
 0x823   : > { %v5626_v30 = vpop.eup %5625  ;;  %v5242_v36 = vpop.f32.mrb[75].mxu0 }
 0x824   : > { %4701 = vst.msk [vmem:[%s6295_s24 + $0x20] sm:$0xff] %vm1207_vm2, %v2438_v29  ;;  %v2439_v16 = vmul.f32 %v5626_v30, %v2425_v53 }
 0x825   : > { %v2826_v63 = vpop.f32.mrb[76].mxu0 }
 0x826   : > { %4702 = vst.msk [vmem:[%s6295_s24 + $0x28] sm:$0xff] %vm1207_vm2, %v2439_v16  ;;  %v5257_v41 = vpop.f32.mrb[77].mxu0 }
 0x827   : > { %v2829_v53 = vpop.f32.mrb[78].mxu0 }
 0x828   : > { %v5258_v10 = vpop.f32.mrb[79].mxu0 }
 0x829   : > { %v5628_v33 = vpop.eup %5627 }
 0x82b   : > { %v5630_v34 = vpop.eup %5629 }
 0x82c   : > { %v2566_v44 = vpack.c.bf16 %v5630_v34, %v5628_v33 }
 0x82d   : > { %v2911_v13 = vpop.f32.mrb[80].mxu0 }
 0x82e   : > { %5216 = vmatmul.mubr.msk.bf16.vlgmr.msra.gmra.mrb[64].mxu1 %vm1207_vm2, %v2566_v44  ;;  %v5273_v2 = vpop.f32.mrb[81].mxu0 }
 0x82f   : > { %5228 = vmatpush3.bf16.msra.mxu1 %v6496_v45  ;;  %5231 = vmatprep.mubr.msk.bf16.mxu1 %vm5813_vm0, %v5812_v1  ;;  %v2914_v61 = vpop.f32.mrb[82].mxu0 }
 0x830   : > { %5229 = vmatprep.subr.bf16.mxu1 %v5812_v1  ;;  %v5274_v4 = vpop.f32.mrb[83].mxu0 }
 0x833   : > { %5230 = vmatpush3.bf16.msra.mxu1 %v6505_v22 }
 0x834   : > { %5243 = vmatprep.subr.bf16.mxu1 %v5812_v1 }
 0x835   : > { %v3012_v58 = vpop.f32.mrb[84].mxu0 }
 0x836   : > { %5232 = vmatmul.mubr.msk.bf16.vlgmr.msra.gmra.mrb[68].mxu1 %vm668_vm1, %v5750_v46  ;;  %v5289_v17 = vpop.f32.mrb[85].mxu0 }
 0x837   : > { %5244 = vmatpush3.bf16.msra.mxu1 %v6514_v48  ;;  %5247 = vmatprep.mubr.msk.bf16.mxu1 %vm5813_vm0, %v5812_v1  ;;  %v3015_v20 = vpop.f32.mrb[86].mxu0 }
 0x838   : > { %5245 = vmatprep.subr.bf16.mxu1 %v5812_v1  ;;  %v5290_v26 = vpop.f32.mrb[87].mxu0 }
 0x83b   : > { %5246 = vmatpush3.bf16.msra.mxu1 %v6523_v49 }
 0x83c   : > { %5259 = vmatprep.subr.bf16.mxu1 %v5812_v1 }
 0x83e   : > { %5248 = vmatmul.mubr.msk.bf16.vlgmr.msra.gmra.mrb[72].mxu1 %vm668_vm1, %v6258_v0  ;;  %v2924_v0 = vshrl.u32 %v6471_v39, 16 }
 0x83f   : > { %5260 = vmatpush3.bf16.msra.mxu1 %v6532_v14  ;;  %5263 = vmatprep.mubr.msk.bf16.mxu1 %vm5813_vm0, %v5812_v1 }
 0x840   : > { %5261 = vmatprep.subr.bf16.mxu1 %v5812_v1  ;;  %v6558_v37 = vor.u32 %v2928_v56, %v2924_v0 }
 0x843   : > { %5262 = vmatpush3.bf16.msra.mxu1 %v6542_v51 }
 0x844   : > { %5275 = vmatprep.subr.bf16.mxu1 %v5812_v1 }
 0x846   : > { %5264 = vmatmul.mubr.msk.bf16.vlgmr.msra.gmra.mrb[76].mxu1 %vm668_vm1, %v6272_v15 }
 0x847   : > { %5276 = vmatpush3.bf16.msra.mxu1 %v6552_v57  ;;  %5279 = vmatprep.mubr.msk.bf16.mxu1 %vm5813_vm0, %v5812_v1 }
 0x848   : > { %5277 = vmatprep.subr.bf16.mxu1 %v5812_v1 }
 0x84b   : > { %5278 = vmatpush3.bf16.msra.mxu1 %v6563_v40 }
 0x84c   : > { %5291 = vmatprep.subr.bf16.mxu1 %v5812_v1 }
 0x84e   : > { %5280 = vmatmul.mubr.msk.bf16.vlgmr.msra.gmra.mrb[80].mxu1 %vm668_vm1, %v6558_v37 }
 0x84f   : > { %5292 = vmatpush3.bf16.msra.mxu1 %v6572_v6  ;;  %5293 = vmatprep.mubr.msk.bf16.mxu1 %vm5813_vm0, %v5812_v1 }
 0x850   : > { %5302 = vmatprep.subr.bf16.mxu1 %v5812_v1 }
 0x901   : > { %v2604_v11 = vpop.f32.mrb[64].mxu1 }
 0x902   : > { %v2605_v12 = vadd.f32 %v2604_v11, %v6385_v47  ;;  %v5217_v52 = vpop.f32.mrb[65].mxu1 }
 0x903   : > { %v2607_v35 = vpop.f32.mrb[66].mxu1  ;;  %v6590_v52 = vld [vmem:[%s6866_s4] ss:$0 sm:$0xff] }
 0x904   : > { %v2611_v18 = vadd.f32 %v6281_v23, %v2605_v12  ;;  %v2608_v19 = vadd.f32 %v6383_v5, %v2607_v35  ;;  %v5218_v21 = vpop.f32.mrb[67].mxu1 }
 0x906   : > { %v4713_v24 = vmul.f32 -1.442695, %v2611_v18  ;;  %v2612_v31 = vadd.f32 %v6281_v23, %v2608_v19 }
 0x908   : > { %5631 = vpow2.f32 %v4713_v24  ;;  %v4714_v55 = vmul.f32 -1.442695, %v2612_v31 }
 0x909   : > { %v2704_v43 = vpop.f32.mrb[68].mxu1 }
 0x90a   : > { %5633 = vpow2.f32 %v4714_v55  ;;  %v2705_v25 = vadd.f32 %v2704_v43, %v6486_v7  ;;  %v5233_v29 = vpop.f32.mrb[69].mxu1  ;;  %v5530_v55 = vld [vmem:[%s6027_s20 + $0x20] sm:$0xff]  }
 0x90b   : > { %v2707_v30 = vpop.f32.mrb[70].mxu1  ;;  %v6608_v43 = vld [vmem:[%s6872_s10] sm:$0xff]  }
 0x90c   : > { %v5234_v16 = vpop.f32.mrb[71].mxu1  ;;  %v2750_v47 = vadd.f32 %v2744_v3, %v2705_v25 }
 0x911   : > { %v2785_v33 = vpop.f32.mrb[72].mxu1 }
 0x912   : > { %v5632_v34 = vpop.eup %5631  ;;  %v2791_v44 = vadd.f32 %v2785_v33, %v2750_v47  ;;  %v5249_v46 = vpop.f32.mrb[73].mxu1  ;;  %v6617_v47 = vld [vmem:[%s6874_s12 + $0x8] sm:$0xff] }
 0x913   : > { %v2619_v50 = vadd.f32 1.0, %v5632_v34  ;;  %v2788_v5 = vpop.f32.mrb[74].mxu1  ;;  %v6629_v34 = vld [vmem:[%s6869_s7] ss:$0 sm:$0xff] }
 0x914   : > { %v5634_v0 = vpop.eup %5633  ;;  %v5250_v56 = vpop.f32.mrb[75].mxu1  ;;  %v2832_v23 = vadd.f32 %v2826_v63, %v2791_v44 }
 0x915   : > { %5635 = vrcp.f32 %v2619_v50  ;;  %v2620_v27 = vadd.f32 1.0, %v5634_v0 }
 0x917   : > { %5637 = vrcp.f32 %v2620_v27 }
 0x919   : > { %v2867_v28 = vpop.f32.mrb[76].mxu1 }
 0x91a   : > { %v2873_v7 = vadd.f32 %v2867_v28, %v2832_v23  ;;  %v5265_v36 = vpop.f32.mrb[77].mxu1 }
 0x91b   : > { %v2870_v41 = vpop.f32.mrb[78].mxu1 }
 0x91c   : > { %v5266_v53 = vpop.f32.mrb[79].mxu1  ;;  %v2917_v3 = vadd.f32 %v2911_v13, %v2873_v7 }
 0x91f   : > { %v5636_v10 = vpop.eup %5635 }
 0x920   : > { %v2625_v2 = vmul.f32 %v5636_v10, %v2611_v18 }
 0x921   : > { %v5638_v61 = vpop.eup %5637  ;;  %v2967_v4 = vpop.f32.mrb[80].mxu1 }
 0x922   : > { %4715 = vst.msk [vmem:[%s6295_s24 + $0x30] sm:$0xff] %vm1207_vm2, %v2625_v2  ;;  %v2626_v17 = vmul.f32 %v5638_v61, %v2612_v31  ;;  %v2973_v20 = vadd.f32 %v2967_v4, %v2917_v3  ;;  %v5281_v26 = vpop.f32.mrb[81].mxu1  ;;  %v5531_v61 = vld [vmem:[%s6027_s20 + $0x28] sm:$0xff]  }
 0x923   : > { %v2970_v63 = vpop.f32.mrb[82].mxu1  ;;  %v6651_v26 = vld [vmem:[%s6871_s9] ss:$0 sm:$0xff] }
 0x924   : > { %4716 = vst.msk [vmem:[%s6295_s24 + $0x38] sm:$0xff] %vm1207_vm2, %v2626_v17  ;;  %v3018_v11 = vadd.f32 %v3012_v58, %v2973_v20  ;;  %v5282_v12 = vpop.f32.mrb[83].mxu1  ;;  %v6597_v58 = vld [vmem:[%s6868_s6] sm:$0xff]  }
 0x926   : > { %v3019_v13 = vadd.f32 %v6590_v52, %v3018_v11 }
 0x928   : > { %v4727_v35 = vmul.f32 -1.442695, %v3019_v13 }
 0x92a   : > { %5639 = vpow2.f32 %v4727_v35 }
 0x934   : > { %v5640_v18 = vpop.eup %5639 }
 0x935   : > { %v3023_v19 = vadd.f32 1.0, %v5640_v18 }
 0x937   : > { %5641 = vrcp.f32 %v3023_v19 }
 0x941   : > { %v5642_v21 = vpop.eup %5641 }
 0x942   : > { %v3026_v24 = vmul.f32 %v5642_v21, %v3019_v13 }
 0x944   : > { %v3027_v31 = vpack.c.bf16 %v3026_v24, %v3026_v24 }
 0x946   : > { %5294 = vmatmul.mubr.msk.bf16.vlgmr.msra.gmra.mrb[84].mxu1 %vm1207_vm2, %v3027_v31 }
 0x947   : > { %5303 = vmatpush3.bf16.msra.mxu1 %v6597_v58  ;;  %5304 = vmatprep.mubr.msk.bf16.mxu1 %vm5813_vm0, %v5812_v1 }
 0x948   : > { %5314 = vmatprep.subr.bf16.mxu1 %v5812_v1 }
 0x94e   : > { %5305 = vmatmul.mubr.msk.bf16.vlgmr.msra.gmra.mrb[88].mxu1 %vm1207_vm2, %v5530_v55 }
 0x94f   : > { %5315 = vmatpush3.bf16.msra.mxu1 %v6608_v43  ;;  %5316 = vmatprep.mubr.msk.bf16.mxu1 %vm5813_vm0, %v5812_v1 }
 0x950   : > { %5326 = vmatprep.subr.bf16.mxu1 %v5812_v1 }
 0xa19   : > { %v3065_v25 = vpop.f32.mrb[84].mxu1 }
 0xa1a   : > { %v5295_v29 = vpop.f32.mrb[85].mxu1  ;;  %5297 = vmatprep.subr.mxu0 %v3065_v25 }
 0xa1b   : > { %v3068_v30 = vpop.f32.mrb[86].mxu1  ;;  %5298 = vmatpush3.msra.mxu0 %v3065_v25 }
 0xa1c   : > { %v5296_v16 = vpop.f32.mrb[87].mxu1  ;;  %5300 = vmatmul.mubr.msk.f32.vlgmr.msra.gmra.mrb[22].mxu0 %vm1251_vm3, %v6617_v47  ;;  %5308 = vmatprep.subr.bf16.mxu0 %v5812_v1 }
 0xa1d   : > { %5309 = vmatpush3.bf16.msra.mxu0 %v6173_v8  ;;  %5310 = vmatprep.mubr.msk.bf16.mxu0 %vm5813_vm0, %v5812_v1 }
 0xa1e   : > { %5320 = vmatprep.subr.bf16.mxu0 %v5812_v1 }
 0xa21   : > { %v3191_v33 = vpop.f32.mrb[88].mxu1 }
 0xa22   : > { %v3192_v44 = vadd.f32 %v6629_v34, %v3191_v33  ;;  %v5306_v46 = vpop.f32.mrb[89].mxu1 }
 0xa23   : > { %v3194_v50 = vpop.f32.mrb[90].mxu1 }
 0xa24   : > { %v4735_v5 = vmul.f32 -1.442695, %v3192_v44  ;;  %v3195_v0 = vadd.f32 %v6629_v34, %v3194_v50  ;;  %v5307_v56 = vpop.f32.mrb[91].mxu1 }
 0xa26   : > { %5643 = vpow2.f32 %v4735_v5  ;;  %v4736_v23 = vmul.f32 -1.442695, %v3195_v0 }
 0xa28   : > { %5645 = vpow2.f32 %v4736_v23 }
 0xa30   : > { %v5644_v27 = vpop.eup %5643 }
 0xa31   : > { %v3204_v28 = vadd.f32 1.0, %v5644_v27 }
 0xa32   : > { %v5646_v7 = vpop.eup %5645 }
 0xa33   : > { %5647 = vrcp.f32 %v3204_v28  ;;  %v3205_v36 = vadd.f32 1.0, %v5646_v7 }
 0xa35   : > { %5649 = vrcp.f32 %v3205_v36 }
 0xa3d   : > { %v5648_v41 = vpop.eup %5647 }
 0xa3e   : > { %v3210_v3 = vmul.f32 %v5648_v41, %v3192_v44 }
 0xa3f   : > { %v5650_v53 = vpop.eup %5649 }
 0xa40   : > { %v3211_v10 = vmul.f32 %v5650_v53, %v3195_v0 }
 0xa42   : > { %v3212_v2 = vpack.c.bf16 %v3211_v10, %v3210_v3 }
 0xa44   : > { %5311 = vmatmul.mubr.msk.bf16.vlgmr.msra.gmra.mrb[88].mxu0 %vm1417_vm5, %v3212_v2  ;;  %v5768_v2 = vld [vmem:[%s6865_s3 + $0x88] sm:$0xff]  }
 0xa45   : > { %5321 = vmatpush3.bf16.msra.mxu0 %v6597_v58  ;;  %5322 = vmatprep.mubr.msk.bf16.mxu0 %vm5813_vm0, %v5812_v1 }
 0xa46   : > { %5332 = vmatprep.subr.bf16.mxu0 %v5812_v1 }
 0xa4c   : > { %5323 = vmatmul.mubr.msk.bf16.vlgmr.msra.gmra.mrb[92].mxu0 %vm1207_vm2, %v5531_v61  ;;  %v5769_v61 = vld [vmem:[%s6874_s12] sm:$0xff] }
 0xa4d   : > { %5333 = vmatpush3.bf16.msra.mxu0 %v6608_v43  ;;  %5334 = vmatprep.mubr.msk.bf16.mxu0 %vm5813_vm0, %v5812_v1 }
 0xa4e   : > { %5346 = vmatprep.subr.bf16.mxu0 %v5812_v1 }
 0xaef   : > { %v6644_v4 = vpop.f32.mrb[22].mxu0 }
 0xaf0   : > { %v6646_v17 = vpop.f32.mrb[23].mxu0 }
 0xb17   : > { %v3250_v20 = vpop.f32.mrb[88].mxu0 }
 0xb18   : > { %v3251_v63 = vadd.f32 %v6651_v26, %v3250_v20  ;;  %v5312_v11 = vpop.f32.mrb[89].mxu0 }
 0xb19   : > { %v3253_v12 = vpop.f32.mrb[90].mxu0 }
 0xb1a   : > { %v4738_v13 = vmul.f32 -1.442695, %v3251_v63  ;;  %v3254_v35 = vadd.f32 %v6651_v26, %v3253_v12  ;;  %v5313_v18 = vpop.f32.mrb[91].mxu0 }
 0xb1c   : > { %5651 = vpow2.f32 %v4738_v13  ;;  %v4739_v19 = vmul.f32 -1.442695, %v3254_v35  ;;  %v6723_v13 = vld [vmem:[%s6873_s11] ss:$0 sm:$0xff] }
 0xb1e   : > { %5653 = vpow2.f32 %v4739_v19 }
 0xb1f   : > { %v3378_v21 = vpop.f32.mrb[92].mxu0 }
 0xb20   : > { %v3379_v24 = vadd.f32 %v6629_v34, %v3378_v21  ;;  %v5324_v31 = vpop.f32.mrb[93].mxu0 }
 0xb21   : > { %v3381_v55 = vpop.f32.mrb[94].mxu0 }
 0xb22   : > { %v4749_v25 = vmul.f32 -1.442695, %v3379_v24  ;;  %v3382_v29 = vadd.f32 %v6629_v34, %v3381_v55  ;;  %v5325_v30 = vpop.f32.mrb[95].mxu0 }
 0xb24   : > { %5655 = vpow2.f32 %v4749_v25  ;;  %v4750_v16 = vmul.f32 -1.442695, %v3382_v29 }
 0xb26   : > { %v5652_v33 = vpop.eup %5651  ;;  %5657 = vpow2.f32 %v4750_v16 }
 0xb27   : > { %v3263_v44 = vadd.f32 1.0, %v5652_v33 }
 0xb28   : > { %v5654_v46 = vpop.eup %5653 }
 0xb29   : > { %v3264_v50 = vadd.f32 1.0, %v5654_v46  ;;  %5659 = vrcp.f32 %v3263_v44 }
 0xb2b   : > { %5661 = vrcp.f32 %v3264_v50 }
 0xb2e   : > { %v5656_v5 = vpop.eup %5655 }
 0xb2f   : > { %v3391_v0 = vadd.f32 1.0, %v5656_v5 }
 0xb30   : > { %v5658_v56 = vpop.eup %5657 }
 0xb31   : > { %5663 = vrcp.f32 %v3391_v0  ;;  %v3392_v23 = vadd.f32 1.0, %v5658_v56 }
 0xb33   : > { %5665 = vrcp.f32 %v3392_v23  ;;  %v5660_v27 = vpop.eup %5659 }
 0xb35   : > { %v5662_v28 = vpop.eup %5661 }
 0xb36   : > { %v3269_v7 = vpack.c.bf16 %v5662_v28, %v5660_v27 }
 0xb38   : > { %5317 = vmatmul.mubr.msk.bf16.vlgmr.msra.gmra.mrb[92].mxu1 %vm1207_vm2, %v3269_v7 }
 0xb39   : > { %5327 = vmatpush3.bf16.msra.mxu1 %v6173_v8  ;;  %5328 = vmatprep.mubr.msk.bf16.mxu1 %vm5813_vm0, %v5812_v1 }
 0xb3a   : > { %5338 = vmatprep.subr.bf16.mxu1 %v5812_v1 }
 0xb3b   : > { %v5664_v36 = vpop.eup %5663 }
 0xb3c   : > { %v3397_v53 = vmul.f32 %v5664_v36, %v3379_v24 }
 0xb3d   : > { %v5666_v41 = vpop.eup %5665 }
 0xb3e   : > { %v3398_v3 = vmul.f32 %v5666_v41, %v3382_v29 }
 0xb40   : > { %v3399_v10 = vpack.c.bf16 %v3398_v3, %v3397_v53 }
 0xb42   : > { %5329 = vmatmul.mubr.msk.bf16.vlgmr.msra.gmra.mrb[96].mxu1 %vm1417_vm5, %v3399_v10 }
 0xb43   : > { %5339 = vmatpush3.bf16.msra.mxu1 %v6400_v59  ;;  %5342 = vmatprep.mubr.msk.bf16.mxu1 %vm5813_vm0, %v5812_v1  ;;  %v5766_v59 = vld [vmem:[%s6865_s3 + $0x68] sm:$0xff]  }
 0xb44   : > { %5340 = vmatprep.subr.bf16.mxu1 %v5812_v1 }
 0xb47   : > { %5341 = vmatpush3.bf16.msra.mxu1 %v6409_v60  ;;  %v4608_v60 = vld [vmem:[%s6458_s23 + $0x8] sm:$0xf] }
 0xb48   : > { %5354 = vmatprep.subr.bf16.mxu1 %v5812_v1 }
 0xb4a   : > { %5343 = vmatmul.mubr.msk.bf16.vlgmr.msra.gmra.mrb[100].mxu1 %vm668_vm1, %v6332_v9  ;;  %v5764_v9 = vld [vmem:[%s6865_s3 + $0x48] sm:$0xff]  }
 0xb4b   : > { %5355 = vmatpush3.bf16.msra.mxu1 %v6418_v62  ;;  %5358 = vmatprep.mubr.msk.bf16.mxu1 %vm5813_vm0, %v5812_v1  ;;  %v4609_v62 = vld [vmem:[%s6458_s23 + $0xc] sm:$0x1] }
 0xb4c   : > { %5356 = vmatprep.subr.bf16.mxu1 %v5812_v1 }
 0xb4f   : > { %5357 = vmatpush3.bf16.msra.mxu1 %v6427_v54  ;;  %v5767_v54 = vld [vmem:[%s6865_s3 + $0x80] sm:$0xff]  }
 0xb50   : > { %5370 = vmatprep.subr.bf16.mxu1 %v5812_v1 }
 0xb52   : > { %5359 = vmatmul.mubr.msk.bf16.vlgmr.msra.gmra.mrb[104].mxu1 %vm668_vm1, %v6272_v15  ;;  %v5765_v15 = vld [vmem:[%s6865_s3 + $0x60] sm:$0xff]  }
 0xb53   : > { %5371 = vmatpush3.bf16.msra.mxu1 %v6436_v38  ;;  %5374 = vmatprep.mubr.msk.bf16.mxu1 %vm5813_vm0, %v5812_v1  ;;  %v6707_v38 = vcombine.low %v4608_v60, %v4609_v62 }
 0xb54   : > { %5372 = vmatprep.subr.bf16.mxu1 %v5812_v1 }
 0xb57   : > { %5373 = vmatpush3.bf16.msra.mxu1 %v5764_v9 }
 0xb58   : > { %5386 = vmatprep.subr.bf16.mxu1 %v5812_v1 }
 0xb5a   : > { %5375 = vmatmul.mubr.msk.bf16.vlgmr.msra.gmra.mrb[108].mxu1 %vm668_vm1, %v6558_v37  ;;  %v3864_v37 = vrot.slane %v6707_v38, 1 }
 0xb5b   : > { %5387 = vmatpush3.bf16.msra.mxu1 %v5765_v15  ;;  %5390 = vmatprep.mubr.msk.bf16.mxu1 %vm5813_vm0, %v5812_v1 }
 0xb5c   : > { %5388 = vmatprep.subr.bf16.mxu1 %v5812_v1 }
 0xb5f   : > { %5389 = vmatpush3.bf16.msra.mxu1 %v5766_v59 }
 0xb60   : > { %5402 = vmatprep.subr.bf16.mxu1 %v5812_v1 }
 0xb62   : > { %5391 = vmatmul.mubr.msk.bf16.vlgmr.msra.gmra.mrb[112].mxu1 %vm668_vm1, %v4608_v60 }
 0xb63   : > { %5403 = vmatpush3.bf16.msra.mxu1 %v5767_v54  ;;  %5406 = vmatprep.mubr.msk.bf16.mxu1 %vm5813_vm0, %v5812_v1 }
 0xb64   : > { %5404 = vmatprep.subr.bf16.mxu1 %v5812_v1 }
 0xb67   : > { %5405 = vmatpush3.bf16.msra.mxu1 %v5768_v2 }
 0xb6a   : > { %5407 = vmatmul.mubr.msk.bf16.vlgmr.msra.gmra.mrb[116].mxu1 %vm668_vm1, %v3864_v37  ;;  %v5771_v37 = vld [vmem:[%s5973_s14 + $0x18] sm:$0xf] }
 0xb6b   : > { %5418 = vmatprep.mubr.msk.f32.mxu1 %vm1251_vm3, %v5769_v61 }
 0xc0b   : > { %v3307_v20 = vpop.f32.mrb[92].mxu1 }
 0xc0c   : > { %v3308_v63 = vadd.f32 %v3307_v20, %v6646_v17  ;;  %v5318_v11 = vpop.f32.mrb[93].mxu1 }
 0xc0d   : > { %v3310_v12 = vpop.f32.mrb[94].mxu1 }
 0xc0e   : > { %v3314_v35 = vadd.f32 %v6723_v13, %v3308_v63  ;;  %v3311_v18 = vadd.f32 %v6644_v4, %v3310_v12  ;;  %v5319_v19 = vpop.f32.mrb[95].mxu1 }
 0xc10   : > { %v4741_v21 = vmul.f32 -1.442695, %v3314_v35  ;;  %v3315_v24 = vadd.f32 %v6723_v13, %v3311_v18 }
 0xc12   : > { %5667 = vpow2.f32 %v4741_v21  ;;  %v4742_v31 = vmul.f32 -1.442695, %v3315_v24 }
 0xc14   : > { %5669 = vpow2.f32 %v4742_v31 }
 0xc15   : > { %v3437_v55 = vpop.f32.mrb[96].mxu1 }
 0xc16   : > { %v3438_v25 = vadd.f32 %v6651_v26, %v3437_v55  ;;  %v5330_v29 = vpop.f32.mrb[97].mxu1 }
 0xc17   : > { %v3440_v30 = vpop.f32.mrb[98].mxu1 }
 0xc18   : > { %v4752_v16 = vmul.f32 -1.442695, %v3438_v25  ;;  %v3441_v33 = vadd.f32 %v6651_v26, %v3440_v30  ;;  %v5331_v44 = vpop.f32.mrb[99].mxu1 }
 0xc1a   : > { %5671 = vpow2.f32 %v4752_v16  ;;  %v4753_v46 = vmul.f32 -1.442695, %v3441_v33 }
 0xc1c   : > { %v5668_v50 = vpop.eup %5667  ;;  %5673 = vpow2.f32 %v4753_v46 }
 0xc1d   : > { %v3322_v5 = vadd.f32 1.0, %v5668_v50  ;;  %v6730_v0 = vpop.f32.mrb[100].mxu1 }
 0xc1e   : > { %v5670_v56 = vpop.eup %5669  ;;  %v5344_v23 = vpop.f32.mrb[101].mxu1 }
 0xc1f   : > { %5675 = vrcp.f32 %v3322_v5  ;;  %v3323_v27 = vadd.f32 1.0, %v5670_v56  ;;  %v3557_v28 = vpop.f32.mrb[102].mxu1 }
 0xc20   : > { %v5345_v7 = vpop.f32.mrb[103].mxu1 }
 0xc21   : > { %5677 = vrcp.f32 %v3323_v27 }
 0xc24   : > { %v5672_v36 = vpop.eup %5671 }
 0xc25   : > { %v3450_v41 = vadd.f32 1.0, %v5672_v36  ;;  %v3634_v39 = vpop.f32.mrb[104].mxu1 }
 0xc26   : > { %v5674_v53 = vpop.eup %5673 }
 0xc27   : > { %v3451_v3 = vadd.f32 1.0, %v5674_v53  ;;  %5679 = vrcp.f32 %v3450_v41 }
 0xc29   : > { %v5676_v10 = vpop.eup %5675  ;;  %5681 = vrcp.f32 %v3451_v3 }
 0xc2a   : > { %v3328_v9 = vmul.f32 %v5676_v10, %v3314_v35 }
 0xc2b   : > { %v5678_v15 = vpop.eup %5677 }
 0xc2c   : > { %4743 = vst.msk [vmem:[%s6295_s24 + $0x40] sm:$0xff] %vm1207_vm2, %v3328_v9  ;;  %v3329_v59 = vmul.f32 %v5678_v15, %v3315_v24 }
 0xc2e   : > { %4744 = vst.msk [vmem:[%s6295_s24 + $0x48] sm:$0xff] %vm1207_vm2, %v3329_v59 }
 0xc31   : > { %v5680_v60 = vpop.eup %5679 }
 0xc33   : > { %v5682_v62 = vpop.eup %5681 }
 0xc34   : > { %v3456_v54 = vpack.c.bf16 %v5682_v62, %v5680_v60 }
 0xc36   : > { %5335 = vmatmul.mubr.msk.bf16.vlgmr.msra.gmra.mrb[96].mxu0 %vm1207_vm2, %v3456_v54 }
 0xc37   : > { %5347 = vmatpush3.bf16.msra.mxu0 %v6496_v45  ;;  %5350 = vmatprep.mubr.msk.bf16.mxu0 %vm5813_vm0, %v5812_v1  ;;  %v3816_v45 = vshll.u32 %v6707_v38, 16 }
 0xc38   : > { %5348 = vmatprep.subr.bf16.mxu0 %v5812_v1 }
 0xc3b   : > { %5349 = vmatpush3.bf16.msra.mxu0 %v6505_v22  ;;  %v3814_v22 = vshrl.u32 %v6707_v38, 16 }
 0xc3c   : > { %5362 = vmatprep.subr.bf16.mxu0 %v5812_v1 }
 0xc3e   : > { %5351 = vmatmul.mubr.msk.bf16.vlgmr.msra.gmra.mrb[100].mxu0 %vm668_vm1, %v5771_v37 }
 0xc3f   : > { %5363 = vmatpush3.bf16.msra.mxu0 %v6514_v48  ;;  %5366 = vmatprep.mubr.msk.bf16.mxu0 %vm5813_vm0, %v5812_v1  ;;  %v3818_v48 = vrot.slane %v3816_v45, 1 }
 0xc40   : > { %5364 = vmatprep.subr.bf16.mxu0 %v5812_v1 }
 0xc43   : > { %5365 = vmatpush3.bf16.msra.mxu0 %v6523_v49 }
 0xc44   : > { %5378 = vmatprep.subr.bf16.mxu0 %v5812_v1 }
 0xc46   : > { %5367 = vmatmul.mubr.msk.bf16.vlgmr.msra.gmra.mrb[104].mxu0 %vm668_vm1, %v6461_v32  ;;  %v3819_v32 = vor.u32 %v3818_v48, %v3814_v22 }
 0xc47   : > { %5379 = vmatpush3.bf16.msra.mxu0 %v6532_v14  ;;  %5382 = vmatprep.mubr.msk.bf16.mxu0 %vm5813_vm0, %v5812_v1 }
 0xc48   : > { %5380 = vmatprep.subr.bf16.mxu0 %v5812_v1 }
 0xc4b   : > { %5381 = vmatpush3.bf16.msra.mxu0 %v6542_v51 }
 0xc4c   : > { %5394 = vmatprep.subr.bf16.mxu0 %v5812_v1 }
 0xc4e   : > { %5383 = vmatmul.mubr.msk.bf16.vlgmr.msra.gmra.mrb[108].mxu0 %vm668_vm1, %v2974_v42  ;;  %v5360_v42 = vpop.f32.mrb[105].mxu1 }
 0xc4f   : > { %5395 = vmatpush3.bf16.msra.mxu0 %v6552_v57  ;;  %5398 = vmatprep.mubr.msk.bf16.mxu0 %vm5813_vm0, %v5812_v1  ;;  %v3637_v49 = vpop.f32.mrb[106].mxu1 }
 0xc50   : > { %5396 = vmatprep.subr.bf16.mxu0 %v5812_v1  ;;  %v5361_v14 = vpop.f32.mrb[107].mxu1 }
 0xc51   : > { %v3716_v51 = vpop.f32.mrb[108].mxu1 }
 0xc52   : > { %v5376_v57 = vpop.f32.mrb[109].mxu1 }
 0xc53   : > { %5397 = vmatpush3.bf16.msra.mxu0 %v6563_v40  ;;  %v3719_v38 = vpop.f32.mrb[110].mxu1 }
 0xc54   : > { %5410 = vmatprep.subr.bf16.mxu0 %v5812_v1  ;;  %v5377_v2 = vpop.f32.mrb[111].mxu1 }
 0xc55   : > { %v3801_v40 = vpop.f32.mrb[112].mxu1 }
 0xc56   : > { %5399 = vmatmul.mubr.msk.bf16.vlgmr.msra.gmra.mrb[112].mxu0 %vm668_vm1, %v3819_v32  ;;  %v5392_v61 = vpop.f32.mrb[113].mxu1 }
 0xc57   : > { %5411 = vmatpush3.bf16.msra.mxu0 %v6572_v6  ;;  %5412 = vmatprep.mubr.msk.bf16.mxu0 %vm5813_vm0, %v5812_v1  ;;  %v3804_v20 = vpop.f32.mrb[114].mxu1 }
 0xc58   : > { %5421 = vmatprep.subr.bf16.mxu0 %v5812_v1  ;;  %v5393_v63 = vpop.f32.mrb[115].mxu1  ;;  %v5533_v20 = vld [vmem:[%s6027_s20 + $0x30] sm:$0xff]  }
 0xc59   : > { %v3902_v11 = vpop.f32.mrb[116].mxu1 }
 0xc5a   : > { %v5408_v12 = vpop.f32.mrb[117].mxu1 }
 0xc5b   : > { %v3905_v6 = vpop.f32.mrb[118].mxu1 }
 0xc5c   : > { %v5409_v35 = vpop.f32.mrb[119].mxu1 }
 0xd09   : > { %v3494_v18 = vpop.f32.mrb[96].mxu0 }
 0xd0a   : > { %v3495_v19 = vadd.f32 %v3494_v18, %v6646_v17  ;;  %v5336_v21 = vpop.f32.mrb[97].mxu0 }
 0xd0b   : > { %v3497_v24 = vpop.f32.mrb[98].mxu0 }
 0xd0c   : > { %v3501_v31 = vadd.f32 %v6723_v13, %v3495_v19  ;;  %v3498_v55 = vadd.f32 %v6644_v4, %v3497_v24  ;;  %v5337_v25 = vpop.f32.mrb[99].mxu0 }
 0xd0e   : > { %v4755_v29 = vmul.f32 -1.442695, %v3501_v31  ;;  %v3502_v30 = vadd.f32 %v6723_v13, %v3498_v55 }
 0xd10   : > { %5683 = vpow2.f32 %v4755_v29  ;;  %v4756_v16 = vmul.f32 -1.442695, %v3502_v30 }
 0xd11   : > { %v3594_v33 = vpop.f32.mrb[100].mxu0 }
 0xd12   : > { %5685 = vpow2.f32 %v4756_v16  ;;  %v3595_v44 = vadd.f32 %v3594_v33, %v6730_v0  ;;  %v5352_v46 = vpop.f32.mrb[101].mxu0 }
 0xd13   : > { %v3597_v50 = vpop.f32.mrb[102].mxu0 }
 0xd14   : > { %v5353_v5 = vpop.f32.mrb[103].mxu0  ;;  %v3640_v17 = vadd.f32 %v3634_v39, %v3595_v44 }
 0xd15   : > { %v5534_v5 = vld [vmem:[%s6027_s20 + $0x38] sm:$0xff]  }
 0xd19   : > { %v3675_v56 = vpop.f32.mrb[104].mxu0 }
 0xd1a   : > { %v5684_v23 = vpop.eup %5683  ;;  %v3681_v27 = vadd.f32 %v3675_v56, %v3640_v17  ;;  %v5368_v28 = vpop.f32.mrb[105].mxu0 }
 0xd1b   : > { %v3509_v7 = vadd.f32 1.0, %v5684_v23  ;;  %v3678_v4 = vpop.f32.mrb[106].mxu0 }
 0xd1c   : > { %v5686_v36 = vpop.eup %5685  ;;  %v5369_v41 = vpop.f32.mrb[107].mxu0  ;;  %v3722_v53 = vadd.f32 %v3716_v51, %v3681_v27 }
 0xd1d   : > { %5687 = vrcp.f32 %v3509_v7  ;;  %v3510_v3 = vadd.f32 1.0, %v5686_v36 }
 0xd1f   : > { %5689 = vrcp.f32 %v3510_v3 }
 0xd21   : > { %v3757_v10 = vpop.f32.mrb[108].mxu0 }
 0xd22   : > { %v3763_v0 = vadd.f32 %v3757_v10, %v3722_v53  ;;  %v5384_v9 = vpop.f32.mrb[109].mxu0 }
 0xd23   : > { %v3760_v15 = vpop.f32.mrb[110].mxu0 }
 0xd24   : > { %v5385_v59 = vpop.f32.mrb[111].mxu0  ;;  %v3807_v60 = vadd.f32 %v3801_v40, %v3763_v0 }
 0xd27   : > { %v5688_v62 = vpop.eup %5687 }
 0xd28   : > { %v3515_v54 = vmul.f32 %v5688_v62, %v3501_v31 }
 0xd29   : > { %v5690_v37 = vpop.eup %5689  ;;  %v3857_v45 = vpop.f32.mrb[112].mxu0 }
 0xd2a   : > { %4757 = vst.msk [vmem:[%s6295_s24 + $0x50] sm:$0xff] %vm1207_vm2, %v3515_v54  ;;  %v3516_v22 = vmul.f32 %v5690_v37, %v3502_v30  ;;  %v3863_v48 = vadd.f32 %v3857_v45, %v3807_v60  ;;  %v5400_v32 = vpop.f32.mrb[113].mxu0 }
 0xd2b   : > { %v3860_v39 = vpop.f32.mrb[114].mxu0 }
 0xd2c   : > { %4758 = vst.msk [vmem:[%s6295_s24 + $0x58] sm:$0xff] %vm1207_vm2, %v3516_v22  ;;  %v3908_v42 = vadd.f32 %v3902_v11, %v3863_v48  ;;  %v5401_v49 = vpop.f32.mrb[115].mxu0 }
 0xd2e   : > { %v3909_v14 = vadd.f32 %v6590_v52, %v3908_v42 }
 0xd30   : > { %v4769_v51 = vmul.f32 -1.442695, %v3909_v14 }
 0xd32   : > { %5691 = vpow2.f32 %v4769_v51 }
 0xd3c   : > { %v5692_v57 = vpop.eup %5691 }
 0xd3d   : > { %v3913_v38 = vadd.f32 1.0, %v5692_v57 }
 0xd3f   : > { %5693 = vrcp.f32 %v3913_v38 }
 0xd49   : > { %v5694_v2 = vpop.eup %5693 }
 0xd4a   : > { %v3916_v40 = vmul.f32 %v5694_v2, %v3909_v14 }
 0xd4c   : > { %v3917_v61 = vpack.c.bf16 %v3916_v40, %v3916_v40 }
 0xd4e   : > { %5413 = vmatmul.mubr.msk.bf16.vlgmr.msra.gmra.mrb[116].mxu0 %vm1207_vm2, %v3917_v61 }
 0xd4f   : > { %5422 = vmatpush3.bf16.msra.mxu0 %v6597_v58  ;;  %5423 = vmatprep.mubr.msk.bf16.mxu0 %vm5813_vm0, %v5812_v1 }
 0xd50   : > { %5433 = vmatprep.subr.bf16.mxu0 %v5812_v1 }
 0xd56   : > { %5424 = vmatmul.mubr.msk.bf16.vlgmr.msra.gmra.mrb[120].mxu0 %vm1207_vm2, %v5533_v20 }
 0xd57   : > { %5434 = vmatpush3.bf16.msra.mxu0 %v6608_v43  ;;  %5435 = vmatprep.mubr.msk.bf16.mxu0 %vm5813_vm0, %v5812_v1 }
 0xd58   : > { %5445 = vmatprep.subr.bf16.mxu0 %v5812_v1 }
 0xe21   : > { %v3955_v52 = vpop.f32.mrb[116].mxu0 }
 0xe22   : > { %v5414_v63 = vpop.f32.mrb[117].mxu0  ;;  %5416 = vmatprep.subr.mxu1 %v3955_v52 }
 0xe23   : > { %v3958_v11 = vpop.f32.mrb[118].mxu0  ;;  %5417 = vmatpush3.msra.mxu1 %v3955_v52 }
 0xe24   : > { %v5415_v12 = vpop.f32.mrb[119].mxu0  ;;  %5419 = vmatmul.mubr.msk.f32.vlgmr.msra.gmra.mrb[54].mxu1 %vm1251_vm3, %v6617_v47  ;;  %5427 = vmatprep.subr.bf16.mxu1 %v5812_v1 }
 0xe25   : > { %5428 = vmatpush3.bf16.msra.mxu1 %v6173_v8  ;;  %5429 = vmatprep.mubr.msk.bf16.mxu1 %vm5813_vm0, %v5812_v1 }
 0xe26   : > { %5439 = vmatprep.subr.bf16.mxu1 %v5812_v1 }
 0xe29   : > { %v4081_v6 = vpop.f32.mrb[120].mxu0 }
 0xe2a   : > { %v4082_v35 = vadd.f32 %v6629_v34, %v4081_v6  ;;  %v5425_v18 = vpop.f32.mrb[121].mxu0 }
 0xe2b   : > { %v4084_v19 = vpop.f32.mrb[122].mxu0 }
 0xe2c   : > { %v4777_v21 = vmul.f32 -1.442695, %v4082_v35  ;;  %v4085_v24 = vadd.f32 %v6629_v34, %v4084_v19  ;;  %v5426_v31 = vpop.f32.mrb[123].mxu0 }
 0xe2e   : > { %5695 = vpow2.f32 %v4777_v21  ;;  %v4778_v47 = vmul.f32 -1.442695, %v4085_v24 }
 0xe30   : > { %5697 = vpow2.f32 %v4778_v47 }
 0xe38   : > { %v5696_v55 = vpop.eup %5695 }
 0xe39   : > { %v4094_v25 = vadd.f32 1.0, %v5696_v55 }
 0xe3a   : > { %v5698_v29 = vpop.eup %5697 }
 0xe3b   : > { %5699 = vrcp.f32 %v4094_v25  ;;  %v4095_v30 = vadd.f32 1.0, %v5698_v29 }
 0xe3d   : > { %5701 = vrcp.f32 %v4095_v30 }
 0xe45   : > { %v5700_v16 = vpop.eup %5699 }
 0xe46   : > { %v4100_v44 = vmul.f32 %v5700_v16, %v4082_v35 }
 0xe47   : > { %v5702_v33 = vpop.eup %5701 }
 0xe48   : > { %v4101_v46 = vmul.f32 %v5702_v33, %v4085_v24 }
 0xe4a   : > { %v4102_v50 = vpack.c.bf16 %v4101_v46, %v4100_v44 }
 0xe4c   : > { %5430 = vmatmul.mubr.msk.bf16.vlgmr.msra.gmra.mrb[120].mxu1 %vm1417_vm5, %v4102_v50 }
 0xe4d   : > { %5440 = vmatpush3.bf16.msra.mxu1 %v6597_v58  ;;  %5441 = vmatprep.mubr.msk.bf16.mxu1 %vm5813_vm0, %v5812_v1 }
 0xe4e   : > { %5451 = vmatprep.subr.bf16.mxu1 %v5812_v1 }
 0xe54   : > { %5442 = vmatmul.mubr.msk.bf16.vlgmr.msra.gmra.mrb[124].mxu1 %vm1207_vm2, %v5534_v5 }
 0xe55   : > { %5452 = vmatpush3.bf16.msra.mxu1 %v6608_v43  ;;  %5453 = vmatprep.mubr.msk.bf16.mxu1 %vm5813_vm0, %v5812_v1 }
 0xef7   : > { %v6815_v17 = vpop.f32.mrb[54].mxu1 }
 0xef8   : > { %v6817_v56 = vpop.f32.mrb[55].mxu1 }
 0xf1f   : > { %v4140_v23 = vpop.f32.mrb[120].mxu1 }
 0xf20   : > { %v4141_v58 = vadd.f32 %v6651_v26, %v4140_v23  ;;  %v5431_v27 = vpop.f32.mrb[121].mxu1 }
 0xf21   : > { %v4143_v28 = vpop.f32.mrb[122].mxu1 }
 0xf22   : > { %v4780_v7 = vmul.f32 -1.442695, %v4141_v58  ;;  %v4144_v4 = vadd.f32 %v6651_v26, %v4143_v28  ;;  %v5432_v36 = vpop.f32.mrb[123].mxu1 }
 0xf24   : > { %5703 = vpow2.f32 %v4780_v7  ;;  %v4781_v41 = vmul.f32 -1.442695, %v4144_v4 }
 0xf26   : > { %5705 = vpow2.f32 %v4781_v41 }
 0xf27   : > { %v4268_v43 = vpop.f32.mrb[124].mxu1 }
 0xf28   : > { %v4269_v53 = vadd.f32 %v6629_v34, %v4268_v43  ;;  %v5443_v3 = vpop.f32.mrb[125].mxu1 }
 0xf29   : > { %v4271_v10 = vpop.f32.mrb[126].mxu1 }
 0xf2a   : > { %v4791_v0 = vmul.f32 -1.442695, %v4269_v53  ;;  %v4272_v9 = vadd.f32 %v6629_v34, %v4271_v10  ;;  %v5444_v15 = vpop.f32.mrb[127].mxu1 }
 0xf2c   : > { %5707 = vpow2.f32 %v4791_v0  ;;  %v4792_v59 = vmul.f32 -1.442695, %v4272_v9 }
 0xf2e   : > { %v5704_v60 = vpop.eup %5703  ;;  %5709 = vpow2.f32 %v4792_v59 }
 0xf2f   : > { %v4153_v62 = vadd.f32 1.0, %v5704_v60 }
 0xf30   : > { %v5706_v54 = vpop.eup %5705 }
 0xf31   : > { %v4154_v37 = vadd.f32 1.0, %v5706_v54  ;;  %5711 = vrcp.f32 %v4153_v62 }
 0xf33   : > { %5713 = vrcp.f32 %v4154_v37 }
 0xf36   : > { %v5708_v45 = vpop.eup %5707 }
 0xf37   : > { %v4281_v22 = vadd.f32 1.0, %v5708_v45 }
 0xf38   : > { %v5710_v48 = vpop.eup %5709 }
 0xf39   : > { %5715 = vrcp.f32 %v4281_v22  ;;  %v4282_v32 = vadd.f32 1.0, %v5710_v48 }
 0xf3b   : > { %5717 = vrcp.f32 %v4282_v32  ;;  %v5712_v39 = vpop.eup %5711 }
 0xf3d   : > { %v5714_v42 = vpop.eup %5713 }
 0xf3e   : > { %v4159_v49 = vpack.c.bf16 %v5714_v42, %v5712_v39 }
 0xf40   : > { %5436 = vmatmul.mubr.msk.bf16.vlgmr.msra.gmra.mrb[124].mxu0 %vm1207_vm2, %v4159_v49 }
 0xf41   : > { %5446 = vmatpush3.bf16.msra.mxu0 %v6173_v8  ;;  %5447 = vmatprep.mubr.msk.bf16.mxu0 %vm5813_vm0, %v5812_v1 }
 0xf43   : > { %v5716_v34 = vpop.eup %5715 }
 0xf44   : > { %v4287_v51 = vmul.f32 %v5716_v34, %v4269_v53 }
 0xf45   : > { %v5718_v14 = vpop.eup %5717 }
 0xf46   : > { %v4288_v57 = vmul.f32 %v5718_v14, %v4272_v9 }
 0xf48   : > { %v4289_v38 = vpack.c.bf16 %v4288_v57, %v4287_v51 }
 0xf4a   : > { %5448 = vmatmul.mubr.msk.bf16.vlgmr.msra.gmra.mrb[128].mxu0 %vm1417_vm5, %v4289_v38 }
0x1013   : > { %v4197_v2 = vpop.f32.mrb[124].mxu0 }
0x1014   : > { %v4198_v40 = vadd.f32 %v4197_v2, %v6817_v56  ;;  %v5437_v61 = vpop.f32.mrb[125].mxu0 }
0x1015   : > { %v4200_v20 = vpop.f32.mrb[126].mxu0 }
0x1016   : > { %v4204_v52 = vadd.f32 %v6723_v13, %v4198_v40  ;;  %v4201_v63 = vadd.f32 %v6815_v17, %v4200_v20  ;;  %v5438_v8 = vpop.f32.mrb[127].mxu0 }
0x1018   : > { %v4783_v11 = vmul.f32 -1.442695, %v4204_v52  ;;  %v4205_v1 = vadd.f32 %v6723_v13, %v4201_v63 }
0x101a   : > { %5719 = vpow2.f32 %v4783_v11  ;;  %v4784_v12 = vmul.f32 -1.442695, %v4205_v1 }
0x101c   : > { %5721 = vpow2.f32 %v4784_v12 }
0x101d   : > { %v4327_v6 = vpop.f32.mrb[128].mxu0 }
0x101e   : > { %v4328_v35 = vadd.f32 %v6651_v26, %v4327_v6  ;;  %v5449_v18 = vpop.f32.mrb[129].mxu0 }
0x101f   : > { %v4330_v19 = vpop.f32.mrb[130].mxu0 }
0x1020   : > { %v4794_v21 = vmul.f32 -1.442695, %v4328_v35  ;;  %v4331_v24 = vadd.f32 %v6651_v26, %v4330_v19  ;;  %v5450_v31 = vpop.f32.mrb[131].mxu0 }
0x1022   : > { %5723 = vpow2.f32 %v4794_v21  ;;  %v4795_v47 = vmul.f32 -1.442695, %v4331_v24 }
0x1024   : > { %v5720_v55 = vpop.eup %5719  ;;  %5725 = vpow2.f32 %v4795_v47 }
0x1025   : > { %v4212_v25 = vadd.f32 1.0, %v5720_v55 }
0x1026   : > { %v5722_v29 = vpop.eup %5721 }
0x1027   : > { %5727 = vrcp.f32 %v4212_v25  ;;  %v4213_v30 = vadd.f32 1.0, %v5722_v29 }
0x1029   : > { %5729 = vrcp.f32 %v4213_v30 }
0x102c   : > { %v5724_v16 = vpop.eup %5723 }
0x102d   : > { %v4340_v33 = vadd.f32 1.0, %v5724_v16 }
0x102e   : > { %v5726_v44 = vpop.eup %5725 }
0x102f   : > { %v4341_v46 = vadd.f32 1.0, %v5726_v44  ;;  %5731 = vrcp.f32 %v4340_v33 }
0x1031   : > { %v5728_v50 = vpop.eup %5727  ;;  %5733 = vrcp.f32 %v4341_v46 }
0x1032   : > { %v4218_v26 = vmul.f32 %v5728_v50, %v4204_v52 }
0x1033   : > { %v5730_v5 = vpop.eup %5729 }
0x1034   : > { %4785 = vst.msk [vmem:[%s6295_s24 + $0x60] sm:$0xff] %vm1207_vm2, %v4218_v26  ;;  %v4219_v23 = vmul.f32 %v5730_v5, %v4205_v1 }
0x1036   : > { %4786 = vst.msk [vmem:[%s6295_s24 + $0x68] sm:$0xff] %vm1207_vm2, %v4219_v23 }
0x1039   : > { %v5732_v58 = vpop.eup %5731 }
0x103b   : > { %v5734_v27 = vpop.eup %5733 }
0x103c   : > { %v4346_v28 = vpack.c.bf16 %v5734_v27, %v5732_v58 }
0x103e   : > { %5454 = vmatmul.mubr.msk.bf16.vlgmr.msra.gmra.mrb[128].mxu1 %vm1207_vm2, %v4346_v28 }
0x1111   : > { %v4384_v7 = vpop.f32.mrb[128].mxu1 }
0x1112   : > { %v4385_v4 = vadd.f32 %v4384_v7, %v6817_v56  ;;  %v5455_v36 = vpop.f32.mrb[129].mxu1 }
0x1113   : > { %v4387_v41 = vpop.f32.mrb[130].mxu1 }
0x1114   : > { %v4391_v43 = vadd.f32 %v6723_v13, %v4385_v4  ;;  %v4388_v53 = vadd.f32 %v6815_v17, %v4387_v41  ;;  %v5456_v3 = vpop.f32.mrb[131].mxu1 }
0x1116   : > { %v4797_v10 = vmul.f32 -1.442695, %v4391_v43  ;;  %v4392_v0 = vadd.f32 %v6723_v13, %v4388_v53 }
0x1118   : > { %5735 = vpow2.f32 %v4797_v10  ;;  %v4798_v9 = vmul.f32 -1.442695, %v4392_v0 }
0x111a   : > { %5737 = vpow2.f32 %v4798_v9 }
0x1122   : > { %v5736_v15 = vpop.eup %5735 }
0x1123   : > { %v4399_v59 = vadd.f32 1.0, %v5736_v15 }
0x1124   : > { %v5738_v60 = vpop.eup %5737 }
0x1125   : > { %5739 = vrcp.f32 %v4399_v59  ;;  %v4400_v56 = vadd.f32 1.0, %v5738_v60 }
0x1127   : > { %5741 = vrcp.f32 %v4400_v56 }
0x112f   : > { %v5740_v62 = vpop.eup %5739 }
0x1130   : > { %v4405_v54 = vmul.f32 %v5740_v62, %v4391_v43 }
0x1131   : > { %v5742_v37 = vpop.eup %5741 }
0x1132   : > { %4799 = vst.msk [vmem:[%s6295_s24 + $0x70] sm:$0xff] %vm1207_vm2, %v4405_v54  ;;  %v4406_v17 = vmul.f32 %v5742_v37, %v4392_v0 }
0x1134   : > { %4800 = vst.msk [vmem:[%s6295_s24 + $0x78] sm:$0xff] %vm1207_vm2, %v4406_v17 }
0x1135 PF: > { %s23_s29 = sadd.s32 1, %s5810_s29   ;;  %s6877_s14 = sld [smem:[#allocation2_spill]] }
0x1136   : > { %p20_p9 = scmp.ge.s32.totalorder %s23_s29, 6   ;;  %s6878_s25 = smov %s5802_s27 }
0x1137   : > { %s6879_s26 = smov %s5806_s28  ;;  %s6880_s27 = smov %s6883_s30 }
0x1138   :  { %22 = sbr.rel (!%p20_p9) target bundleno = 3 (0x3), region = 134 }
0x113b   : > { %s6881_s28 = smov %s6877_s14 }

</bundles_post_ra>
